<compile_context>
chip_gen: v5e
topology: v5e:2x2
jax: 0.10.0
libtpu: 0.0.40
codegen_flags: <defaults>
</compile_context>

<pallas_src>
import functools

import jax
import jax.numpy as jnp
from jax.experimental import pallas as pl
from jax.experimental.pallas import tpu as pltpu


LRELU_SLOPE = 0.2
BN_EPS = 1e-5
TM_MAX = 512                      # M-tile rows; ~85%+ of HBM roofline per measurements
_VMEM_LIMIT = 32 * 1024 * 1024    # explicit per-call VMEM budget (fits v5e/v6e/v7x)


def _round_up(x, m):
    return (x + m - 1) // m * m


def _cparams(sem):
    return pltpu.CompilerParams(
        dimension_semantics=(sem,),
        vmem_limit_bytes=_VMEM_LIMIT,
    )


# ----------------------------- Pallas kernels -----------------------------

def conv_bias_lrelu_kernel(p_ref, w_ref, b_ref, o_ref):
    # p_ref: (tm, Kp) bf16, w_ref: (Kp, Np) bf16, b_ref: (1, Np) f32, o_ref: (tm, Np) f32
    y = jnp.dot(p_ref[...], w_ref[...], preferred_element_type=jnp.float32)
    y = y + b_ref[...]
    o_ref[...] = jnp.where(y >= 0.0, y, LRELU_SLOPE * y)


def conv_stats_kernel(p_ref, w_ref, y_ref, stats_ref):
    # BN layers, pass 1: matmul (bias dropped — cancelled by BN mean subtraction)
    # plus per-tile sum / sum-of-squares accumulated across the M grid axis.
    @pl.when(pl.program_id(0) == 0)
    def _():
        stats_ref[...] = jnp.zeros_like(stats_ref)

    y = jnp.dot(p_ref[...], w_ref[...], preferred_element_type=jnp.float32)
    y_ref[...] = y
    stats_ref[0:1, :] += jnp.sum(y, axis=0, keepdims=True)
    stats_ref[1:2, :] += jnp.sum(y * y, axis=0, keepdims=True)


def bn_lrelu_kernel(inv_m, y_ref, stats_ref, g_ref, beta_ref, o_ref):
    # BN layers, pass 2: train-mode BatchNorm2d (biased variance, eps=1e-5),
    # gamma folded into the rsqrt scale, then LeakyReLU(0.2).
    mean = stats_ref[0:1, :] * inv_m
    var = jnp.maximum(stats_ref[1:2, :] * inv_m - mean * mean, 0.0)
    scale = g_ref[...] * jax.lax.rsqrt(var + BN_EPS)
    shift = beta_ref[...] - mean * scale
    y = y_ref[...] * scale + shift
    o_ref[...] = jnp.where(y >= 0.0, y, LRELU_SLOPE * y)


def linear_kernel(x_ref, w_ref, b_ref, o_ref):
    # Final regressor as a VPU multiply + lane reduction (avoids a 1-column matmul).
    o_ref[...] = (
        jnp.sum(x_ref[...] * w_ref[...], axis=-1, keepdims=True) + b_ref[...]
    )


_VMEM = pl.BlockSpec(memory_space=pltpu.MemorySpace.VMEM)


# ------------------------------- JAX glue ---------------------------------

def im2col_nhwc(x, k, stride, pad):
    """x: (B, H, W, C) -> ((B*Ho*Wo, k*k*C), Ho, Wo); features ordered [kh, kw, C]."""
    B, H, W, C = x.shape
    xp = jnp.pad(x, ((0, 0), (pad, pad), (pad, pad), (0, 0)))
    Ho = (H + 2 * pad - k) // stride + 1
    Wo = (W + 2 * pad - k) // stride + 1
    cols = []
    for i in range(k):
        for j in range(k):
            cols.append(
                xp[:, i: i + stride * (Ho - 1) + 1: stride,
                      j: j + stride * (Wo - 1) + 1: stride, :]
            )  # (B, Ho, Wo, C)
    p = jnp.stack(cols, axis=3)                       # (B, Ho, Wo, k*k, C)
    return p.reshape(B * Ho * Wo, k * k * C), Ho, Wo


def _choose_tile(m):
    """Pick an M tile (multiple of 16 for bf16 sublane packing) and padded M."""
    if m >= TM_MAX:
        return TM_MAX, _round_up(m, TM_MAX)
    m_pad = _round_up(m, 16)
    return m_pad, m_pad


def conv_block(x_nhwc, layer, *, stride=2, pad=2):
    """One Conv2d(5,2,2) [+ train-mode BatchNorm2d] + LeakyReLU(0.2). NHWC in/out."""
    B = x_nhwc.shape[0]
    k, cout = layer["k"], layer["cout"]
    patches, Ho, Wo = im2col_nhwc(x_nhwc, k, stride, pad)
    M, K = patches.shape
    wmat = layer["w"]                                  # (Kp, Np) bf16, zero-padded
    Kp, Np = wmat.shape

    tm, m_pad = _choose_tile(M)
    n_m = m_pad // tm
    # zero rows / zero K-columns: padded rows give 0 matmul output (no bias in BN
    # layers), so BN statistics divided by the REAL M stay exact.
    p = jnp.pad(patches, ((0, m_pad - M), (0, Kp - K))).astype(jnp.bfloat16)

    y_shape = jax.ShapeDtypeStruct((m_pad, Np), jnp.float32)
    p_spec = pl.BlockSpec((tm, Kp), lambda i: (i, 0))
    w_spec = pl.BlockSpec((Kp, Np), lambda i: (0, 0))
    row_spec = pl.BlockSpec((1, Np), lambda i: (0, 0))
    y_spec = pl.BlockSpec((tm, Np), lambda i: (i, 0))
    stats_spec = pl.BlockSpec((2, Np), lambda i: (0, 0))

    if layer["kind"] == "conv":
        y = pl.pallas_call(
            conv_bias_lrelu_kernel,
            grid=(n_m,),
            in_specs=[p_spec, w_spec, row_spec],
            out_specs=y_spec,
            out_shape=y_shape,
            compiler_params=_cparams("parallel"),
        )(p, wmat, layer["b"])
    else:
        y_raw, stats = pl.pallas_call(
            conv_stats_kernel,
            grid=(n_m,),
            in_specs=[p_spec, w_spec],
            out_specs=(y_spec, stats_spec),
            out_shape=(y_shape, jax.ShapeDtypeStruct((2, Np), jnp.float32)),
            compiler_params=_cparams("arbitrary"),     # cross-tile stats accumulator
        )(p, wmat)
        y = pl.pallas_call(
            functools.partial(bn_lrelu_kernel, 1.0 / M),
            grid=(n_m,),
            in_specs=[y_spec, stats_spec, row_spec, row_spec],
            out_specs=y_spec,
            out_shape=y_shape,
            compiler_params=_cparams("parallel"),
        )(y_raw, stats, layer["gamma"], layer["beta"])

    return y[:M, :cout].reshape(B, Ho, Wo, cout)


def init_params(key, size=1, in_cha=3):
    """Deterministic synthetic params matching the PyTorch module's shapes."""
    chans = [(in_cha, 16), (16, 32), (32, 64), (64, 128), (128, 128)]
    params = {"convs": [], "bns": []}
    for li, (ci, co) in enumerate(chans):
        key, kw, kb = jax.random.split(key, 3)
        w = 0.05 * jax.random.normal(kw, (co, ci, 5, 5), jnp.float32)
        b = 0.01 * jax.random.normal(kb, (co,), jnp.float32)
        params["convs"].append((w, b))
        if li > 0:  # layers 2..5 have BatchNorm2d (PyTorch init: gamma=1, beta=0)
            params["bns"].append((jnp.ones((co,), jnp.float32),
                                  jnp.zeros((co,), jnp.float32)))
        else:
            params["bns"].append(None)
    feat = 128 * size * size
    key, kw, kb = jax.random.split(key, 3)
    params["fc_w"] = 0.05 * jax.random.normal(kw, (1, feat), jnp.float32)
    params["fc_b"] = 0.01 * jax.random.normal(kb, (1,), jnp.float32)
    return params


def prepare_params(params):
    """PyTorch-layout params -> kernel-ready padded bf16 weight matrices (done once)."""
    layers = []
    for (w, b), bn in zip(params["convs"], params["bns"]):
        cout, cin, k, _ = w.shape
        K = k * k * cin
        Kp = _round_up(K, 128)
        Np = _round_up(cout, 128)
        # [kh, kw, Cin] feature order to match NHWC im2col, Cout on the lane axis.
        wmat = jnp.transpose(w, (2, 3, 1, 0)).reshape(K, cout)
        wmat = jnp.pad(wmat, ((0, Kp - K), (0, Np - cout))).astype(jnp.bfloat16)
        layer = {"w": wmat, "k": k, "cout": cout}
        if bn is None:
            layer["kind"] = "conv"
            layer["b"] = jnp.pad(b.reshape(1, cout), ((0, 0), (0, Np - cout)))
        else:
            gamma, beta = bn
            layer["kind"] = "conv_bn"  # conv bias dropped: cancelled by BN mean-sub
            layer["gamma"] = jnp.pad(gamma.reshape(1, cout),
                                     ((0, 0), (0, Np - cout)), constant_values=1.0)
            layer["beta"] = jnp.pad(beta.reshape(1, cout), ((0, 0), (0, Np - cout)))
        layers.append(layer)
    return {"layers": layers,
            "fc_w": params["fc_w"].reshape(1, -1),
            "fc_b": params["fc_b"].reshape(1, 1)}


def simple_discriminator_forward(prepared, img):
    """img: (B, in_cha, H, W) NCHW (PyTorch interface), H = W = size * 32 -> (B, 1)."""
    x = jnp.transpose(img, (0, 2, 3, 1))               # NCHW -> NHWC once at the input
    for layer in prepared["layers"]:
        x = conv_block(x, layer)
    B = x.shape[0]
    # PyTorch flattens NCHW: restore [C, H, W] feature order for the regressor.
    feats = jnp.transpose(x, (0, 3, 1, 2)).reshape(B, -1)
    out = pl.pallas_call(
        linear_kernel,
        out_shape=jax.ShapeDtypeStruct((B, 1), jnp.float32),
        in_specs=[_VMEM, _VMEM, _VMEM],
        out_specs=_VMEM,
    )(feats, prepared["fc_w"], prepared["fc_b"])
    return out


# --------------------------------- main ------------------------------------

if __name__ == "__main__":
    size = 1          # input spatial = size * 2**5 = 32
    in_cha = 3
    B = 2
    H = W = size * 32

    key = jax.random.PRNGKey(0)
    key, kimg = jax.random.split(key)
    img = jax.random.normal(kimg, (B, in_cha, H, W), jnp.float32)

    params = init_params(key, size=size, in_cha=in_cha)
    prepared = prepare_params(params)

    fwd = jax.jit(functools.partial(simple_discriminator_forward, prepared))
    out = jax.block_until_ready(fwd(img))
    assert out.shape == (B, 1), out.shape
    assert bool(jnp.all(jnp.isfinite(out)))
    print("KERNEL_OK")
</pallas_src>

<mosaic_0001>
module attributes {stable_mosaic.version = 11 : i64} {
  func.func @conv_bias_lrelu_kernel(%arg0: i32, %arg1: memref<512x128xbf16, #tpu.memory_space<vmem>>, %arg2: memref<128x128xbf16, #tpu.memory_space<vmem>>, %arg3: memref<1x128xf32, #tpu.memory_space<vmem>>, %arg4: memref<512x128xf32, #tpu.memory_space<vmem>>) attributes {dimension_semantics = [#tpu.dimension_semantics<parallel>], iteration_bounds = array<i64: 1>, scalar_prefetch = 0 : i64, scratch_operands = 0 : i64, tpu.core_type = #tpu.core_type<tc>, window_params = [{transform_indices = @transform_0, window_bounds = array<i64: 512, 128>}, {pipeline_mode = #tpu.pipeline_mode<synchronous>, transform_indices = @transform_1, window_bounds = array<i64: 128, 128>}, {pipeline_mode = #tpu.pipeline_mode<synchronous>, transform_indices = @transform_2, window_bounds = array<i64: 1, 128>}, {transform_indices = @transform_3, window_bounds = array<i64: 512, 128>}]} {
    %c0 = arith.constant 0 : index
    %c0_0 = arith.constant 0 : index
    %0 = vector.load %arg1[%c0, %c0_0] : memref<512x128xbf16, #tpu.memory_space<vmem>>, vector<512x128xbf16>
    %c0_1 = arith.constant 0 : index
    %c0_2 = arith.constant 0 : index
    %1 = vector.load %arg2[%c0_1, %c0_2] : memref<128x128xbf16, #tpu.memory_space<vmem>>, vector<128x128xbf16>
    %cst = arith.constant dense<0.000000e+00> : vector<512x128xf32>
    %2 = tpu.matmul %0, %1, %cst {dimension_numbers = #tpu.dot_dimension_numbers<[1], [0], [0], [1], [0, 0, 1, 1], [], []>} : vector<512x128xbf16>, vector<128x128xbf16>, vector<512x128xf32> -> vector<512x128xf32>
    %c0_3 = arith.constant 0 : index
    %c0_4 = arith.constant 0 : index
    %3 = vector.load %arg3[%c0_3, %c0_4] : memref<1x128xf32, #tpu.memory_space<vmem>>, vector<1x128xf32>
    %4 = vector.broadcast %3 : vector<1x128xf32> to vector<512x128xf32>
    %5 = arith.addf %2, %4 : vector<512x128xf32>
    %cst_5 = arith.constant 0.000000e+00 : f32
    %6 = vector.broadcast %cst_5 : f32 to vector<512x128xf32>
    %7 = arith.cmpf oge, %5, %6 : vector<512x128xf32>
    %cst_6 = arith.constant 2.000000e-01 : f32
    %8 = vector.broadcast %cst_6 : f32 to vector<512x128xf32>
    %9 = arith.mulf %8, %5 : vector<512x128xf32>
    %10 = arith.select %7, %5, %9 : vector<512x128xi1>, vector<512x128xf32>
    %c0_7 = arith.constant 0 : index
    %c0_8 = arith.constant 0 : index
    %11 = vector.load %arg4[%c0_7, %c0_8] : memref<512x128xf32, #tpu.memory_space<vmem>>, vector<512x128xf32>
    tpu.vector_store %arg4[%c0_7, %c0_8], %10 {strides = array<i32>} : memref<512x128xf32, #tpu.memory_space<vmem>>, vector<512x128xf32>,
    return
  }
  func.func @transform_0(%arg0: i32) -> (i32, i32) {
    %c0_i32 = arith.constant 0 : i32
    %c0_i32_0 = arith.constant 0 : i32
    return %arg0, %c0_i32 : i32, i32
  }
  func.func @transform_1(%arg0: i32) -> (i32, i32) {
    %c0_i32 = arith.constant 0 : i32
    %c0_i32_0 = arith.constant 0 : i32
    %c0_i32_1 = arith.constant 0 : i32
    return %c0_i32, %c0_i32_0 : i32, i32
  }
  func.func @transform_2(%arg0: i32) -> (i32, i32) {
    %c0_i32 = arith.constant 0 : i32
    %c0_i32_0 = arith.constant 0 : i32
    %c0_i32_1 = arith.constant 0 : i32
    return %c0_i32, %c0_i32_0 : i32, i32
  }
  func.func @transform_3(%arg0: i32) -> (i32, i32) {
    %c0_i32 = arith.constant 0 : i32
    %c0_i32_0 = arith.constant 0 : i32
    return %arg0, %c0_i32 : i32, i32
  }
}

module attributes {stable_mosaic.version = 11 : i64} {
  func.func @conv_stats_kernel(%arg0: i32, %arg1: memref<128x512xbf16, #tpu.memory_space<vmem>>, %arg2: memref<512x128xbf16, #tpu.memory_space<vmem>>, %arg3: memref<128x128xf32, #tpu.memory_space<vmem>>, %arg4: memref<2x128xf32, #tpu.memory_space<vmem>>) attributes {dimension_semantics = [#tpu.dimension_semantics<arbitrary>], iteration_bounds = array<i64: 1>, scalar_prefetch = 0 : i64, scratch_operands = 0 : i64, tpu.core_type = #tpu.core_type<tc>, window_params = [{transform_indices = @transform_0, window_bounds = array<i64: 128, 512>}, {pipeline_mode = #tpu.pipeline_mode<synchronous>, transform_indices = @transform_1, window_bounds = array<i64: 512, 128>}, {transform_indices = @transform_2, window_bounds = array<i64: 128, 128>}, {pipeline_mode = #tpu.pipeline_mode<synchronous>, transform_indices = @transform_3, window_bounds = array<i64: 2, 128>}]} {
    %c0_i32 = arith.constant 0 : i32
    %0 = arith.cmpi eq, %arg0, %c0_i32 : i32
    %1 = arith.extui %0 : i1 to i32
    %c0_i32_0 = arith.constant 0 : i32
    %2 = arith.cmpi ne, %1, %c0_i32_0 : i32
    scf.if %2 {
      %cst_15 = arith.constant 0.000000e+00 : f32
      %18 = vector.broadcast %cst_15 : f32 to vector<2x128xf32>
      %c0_16 = arith.constant 0 : index
      %c0_17 = arith.constant 0 : index
      %19 = vector.load %arg4[%c0_16, %c0_17] : memref<2x128xf32, #tpu.memory_space<vmem>>, vector<2x128xf32>
      tpu.vector_store %arg4[%c0_16, %c0_17], %18 {strides = array<i32>} : memref<2x128xf32, #tpu.memory_space<vmem>>, vector<2x128xf32>,
    } else {
    }
    %c0 = arith.constant 0 : index
    %c0_1 = arith.constant 0 : index
    %3 = vector.load %arg1[%c0, %c0_1] : memref<128x512xbf16, #tpu.memory_space<vmem>>, vector<128x512xbf16>
    %c0_2 = arith.constant 0 : index
    %c0_3 = arith.constant 0 : index
    %4 = vector.load %arg2[%c0_2, %c0_3] : memref<512x128xbf16, #tpu.memory_space<vmem>>, vector<512x128xbf16>
    %cst = arith.constant dense<0.000000e+00> : vector<128x128xf32>
    %5 = tpu.matmul %3, %4, %cst {dimension_numbers = #tpu.dot_dimension_numbers<[1], [0], [0], [1], [0, 0, 1, 1], [], []>} : vector<128x512xbf16>, vector<512x128xbf16>, vector<128x128xf32> -> vector<128x128xf32>
    %c0_4 = arith.constant 0 : index
    %c0_5 = arith.constant 0 : index
    %6 = vector.load %arg3[%c0_4, %c0_5] : memref<128x128xf32, #tpu.memory_space<vmem>>, vector<128x128xf32>
    tpu.vector_store %arg3[%c0_4, %c0_5], %5 {strides = array<i32>} : memref<128x128xf32, #tpu.memory_space<vmem>>, vector<128x128xf32>,
    %c0_6 = arith.constant 0 : index
    %c0_7 = arith.constant 0 : index
    %7 = vector.load %arg4[%c0_6, %c0_7] : memref<2x128xf32, #tpu.memory_space<vmem>>, vector<1x128xf32>
    %cst_8 = arith.constant dense<0.000000e+00> : vector<128xf32>
    %8 = vector.multi_reduction <add>, %5, %cst_8 [0] : vector<128x128xf32> to vector<128xf32>
    %9 = vector.shape_cast %8 : vector<128xf32> to vector<1x128xf32>
    %10 = arith.addf %7, %9 : vector<1x128xf32>
    %c0_9 = arith.constant 0 : index
    %c0_10 = arith.constant 0 : index
    %11 = vector.load %arg4[%c0_9, %c0_10] : memref<2x128xf32, #tpu.memory_space<vmem>>, vector<1x128xf32>
    tpu.vector_store %arg4[%c0_9, %c0_10], %10 {strides = array<i32>} : memref<2x128xf32, #tpu.memory_space<vmem>>, vector<1x128xf32>,
    %c1 = arith.constant 1 : index
    %c0_11 = arith.constant 0 : index
    %12 = vector.load %arg4[%c1, %c0_11] : memref<2x128xf32, #tpu.memory_space<vmem>>, vector<1x128xf32>
    %13 = arith.mulf %5, %5 : vector<128x128xf32>
    %cst_12 = arith.constant dense<0.000000e+00> : vector<128xf32>
    %14 = vector.multi_reduction <add>, %13, %cst_12 [0] : vector<128x128xf32> to vector<128xf32>
    %15 = vector.shape_cast %14 : vector<128xf32> to vector<1x128xf32>
    %16 = arith.addf %12, %15 : vector<1x128xf32>
    %c1_13 = arith.constant 1 : index
    %c0_14 = arith.constant 0 : index
    %17 = vector.load %arg4[%c1_13, %c0_14] : memref<2x128xf32, #tpu.memory_space<vmem>>, vector<1x128xf32>
    tpu.vector_store %arg4[%c1_13, %c0_14], %16 {strides = array<i32>} : memref<2x128xf32, #tpu.memory_space<vmem>>, vector<1x128xf32>,
    return
  }
  func.func @transform_0(%arg0: i32) -> (i32, i32) {
    %c0_i32 = arith.constant 0 : i32
    %c0_i32_0 = arith.constant 0 : i32
    return %arg0, %c0_i32 : i32, i32
  }
  func.func @transform_1(%arg0: i32) -> (i32, i32) {
    %c0_i32 = arith.constant 0 : i32
    %c0_i32_0 = arith.constant 0 : i32
    %c0_i32_1 = arith.constant 0 : i32
    return %c0_i32, %c0_i32_0 : i32, i32
  }
  func.func @transform_2(%arg0: i32) -> (i32, i32) {
    %c0_i32 = arith.constant 0 : i32
    %c0_i32_0 = arith.constant 0 : i32
    return %arg0, %c0_i32 : i32, i32
  }
  func.func @transform_3(%arg0: i32) -> (i32, i32) {
    %c0_i32 = arith.constant 0 : i32
    %c0_i32_0 = arith.constant 0 : i32
    %c0_i32_1 = arith.constant 0 : i32
    return %c0_i32, %c0_i32_0 : i32, i32
  }
}

module attributes {stable_mosaic.version = 11 : i64} {
  func.func @bn_lrelu_kernel(%arg0: i32, %arg1: memref<128x128xf32, #tpu.memory_space<vmem>>, %arg2: memref<2x128xf32, #tpu.memory_space<vmem>>, %arg3: memref<1x128xf32, #tpu.memory_space<vmem>>, %arg4: memref<1x128xf32, #tpu.memory_space<vmem>>, %arg5: memref<128x128xf32, #tpu.memory_space<vmem>>) attributes {dimension_semantics = [#tpu.dimension_semantics<parallel>], iteration_bounds = array<i64: 1>, scalar_prefetch = 0 : i64, scratch_operands = 0 : i64, tpu.core_type = #tpu.core_type<tc>, window_params = [{transform_indices = @transform_0, window_bounds = array<i64: 128, 128>}, {pipeline_mode = #tpu.pipeline_mode<synchronous>, transform_indices = @transform_1, window_bounds = array<i64: 2, 128>}, {pipeline_mode = #tpu.pipeline_mode<synchronous>, transform_indices = @transform_2, window_bounds = array<i64: 1, 128>}, {pipeline_mode = #tpu.pipeline_mode<synchronous>, transform_indices = @transform_3, window_bounds = array<i64: 1, 128>}, {transform_indices = @transform_4, window_bounds = array<i64: 128, 128>}]} {
    %c0 = arith.constant 0 : index
    %c0_0 = arith.constant 0 : index
    %0 = vector.load %arg2[%c0, %c0_0] : memref<2x128xf32, #tpu.memory_space<vmem>>, vector<1x128xf32>
    %cst = arith.constant 7.812500e-03 : f32
    %1 = vector.broadcast %cst : f32 to vector<1x128xf32>
    %2 = arith.mulf %0, %1 : vector<1x128xf32>
    %c1 = arith.constant 1 : index
    %c0_1 = arith.constant 0 : index
    %3 = vector.load %arg2[%c1, %c0_1] : memref<2x128xf32, #tpu.memory_space<vmem>>, vector<1x128xf32>
    %cst_2 = arith.constant 7.812500e-03 : f32
    %4 = vector.broadcast %cst_2 : f32 to vector<1x128xf32>
    %5 = arith.mulf %3, %4 : vector<1x128xf32>
    %6 = arith.mulf %2, %2 : vector<1x128xf32>
    %7 = arith.subf %5, %6 : vector<1x128xf32>
    %cst_3 = arith.constant 0.000000e+00 : f32
    %8 = vector.broadcast %cst_3 : f32 to vector<1x128xf32>
    %9 = arith.maximumf %7, %8 : vector<1x128xf32>
    %c0_4 = arith.constant 0 : index
    %c0_5 = arith.constant 0 : index
    %10 = vector.load %arg3[%c0_4, %c0_5] : memref<1x128xf32, #tpu.memory_space<vmem>>, vector<1x128xf32>
    %cst_6 = arith.constant 9.99999974E-6 : f32
    %11 = vector.broadcast %cst_6 : f32 to vector<1x128xf32>
    %12 = arith.addf %9, %11 : vector<1x128xf32>
    %13 = math.rsqrt %12 : vector<1x128xf32>
    %14 = arith.mulf %10, %13 : vector<1x128xf32>
    %c0_7 = arith.constant 0 : index
    %c0_8 = arith.constant 0 : index
    %15 = vector.load %arg4[%c0_7, %c0_8] : memref<1x128xf32, #tpu.memory_space<vmem>>, vector<1x128xf32>
    %16 = arith.mulf %2, %14 : vector<1x128xf32>
    %17 = arith.subf %15, %16 : vector<1x128xf32>
    %c0_9 = arith.constant 0 : index
    %c0_10 = arith.constant 0 : index
    %18 = vector.load %arg1[%c0_9, %c0_10] : memref<128x128xf32, #tpu.memory_space<vmem>>, vector<128x128xf32>
    %19 = vector.broadcast %14 : vector<1x128xf32> to vector<128x128xf32>
    %20 = arith.mulf %18, %19 : vector<128x128xf32>
    %21 = vector.broadcast %17 : vector<1x128xf32> to vector<128x128xf32>
    %22 = arith.addf %20, %21 : vector<128x128xf32>
    %cst_11 = arith.constant 0.000000e+00 : f32
    %23 = vector.broadcast %cst_11 : f32 to vector<128x128xf32>
    %24 = arith.cmpf oge, %22, %23 : vector<128x128xf32>
    %cst_12 = arith.constant 2.000000e-01 : f32
    %25 = vector.broadcast %cst_12 : f32 to vector<128x128xf32>
    %26 = arith.mulf %25, %22 : vector<128x128xf32>
    %27 = arith.select %24, %22, %26 : vector<128x128xi1>, vector<128x128xf32>
    %c0_13 = arith.constant 0 : index
    %c0_14 = arith.constant 0 : index
    %28 = vector.load %arg5[%c0_13, %c0_14] : memref<128x128xf32, #tpu.memory_space<vmem>>, vector<128x128xf32>
    tpu.vector_store %arg5[%c0_13, %c0_14], %27 {strides = array<i32>} : memref<128x128xf32, #tpu.memory_space<vmem>>, vector<128x128xf32>,
    return
  }
  func.func @transform_0(%arg0: i32) -> (i32, i32) {
    %c0_i32 = arith.constant 0 : i32
    %c0_i32_0 = arith.constant 0 : i32
    return %arg0, %c0_i32 : i32, i32
  }
  func.func @transform_1(%arg0: i32) -> (i32, i32) {
    %c0_i32 = arith.constant 0 : i32
    %c0_i32_0 = arith.constant 0 : i32
    %c0_i32_1 = arith.constant 0 : i32
    return %c0_i32, %c0_i32_0 : i32, i32
  }
  func.func @transform_2(%arg0: i32) -> (i32, i32) {
    %c0_i32 = arith.constant 0 : i32
    %c0_i32_0 = arith.constant 0 : i32
    %c0_i32_1 = arith.constant 0 : i32
    return %c0_i32, %c0_i32_0 : i32, i32
  }
  func.func @transform_3(%arg0: i32) -> (i32, i32) {
    %c0_i32 = arith.constant 0 : i32
    %c0_i32_0 = arith.constant 0 : i32
    %c0_i32_1 = arith.constant 0 : i32
    return %c0_i32, %c0_i32_0 : i32, i32
  }
  func.func @transform_4(%arg0: i32) -> (i32, i32) {
    %c0_i32 = arith.constant 0 : i32
    %c0_i32_0 = arith.constant 0 : i32
    return %arg0, %c0_i32 : i32, i32
  }
}

module attributes {stable_mosaic.version = 11 : i64} {
  func.func @conv_stats_kernel(%arg0: i32, %arg1: memref<32x896xbf16, #tpu.memory_space<vmem>>, %arg2: memref<896x128xbf16, #tpu.memory_space<vmem>>, %arg3: memref<32x128xf32, #tpu.memory_space<vmem>>, %arg4: memref<2x128xf32, #tpu.memory_space<vmem>>) attributes {dimension_semantics = [#tpu.dimension_semantics<arbitrary>], iteration_bounds = array<i64: 1>, scalar_prefetch = 0 : i64, scratch_operands = 0 : i64, tpu.core_type = #tpu.core_type<tc>, window_params = [{transform_indices = @transform_0, window_bounds = array<i64: 32, 896>}, {pipeline_mode = #tpu.pipeline_mode<synchronous>, transform_indices = @transform_1, window_bounds = array<i64: 896, 128>}, {transform_indices = @transform_2, window_bounds = array<i64: 32, 128>}, {pipeline_mode = #tpu.pipeline_mode<synchronous>, transform_indices = @transform_3, window_bounds = array<i64: 2, 128>}]} {
    %c0_i32 = arith.constant 0 : i32
    %0 = arith.cmpi eq, %arg0, %c0_i32 : i32
    %1 = arith.extui %0 : i1 to i32
    %c0_i32_0 = arith.constant 0 : i32
    %2 = arith.cmpi ne, %1, %c0_i32_0 : i32
    scf.if %2 {
      %cst_15 = arith.constant 0.000000e+00 : f32
      %18 = vector.broadcast %cst_15 : f32 to vector<2x128xf32>
      %c0_16 = arith.constant 0 : index
      %c0_17 = arith.constant 0 : index
      %19 = vector.load %arg4[%c0_16, %c0_17] : memref<2x128xf32, #tpu.memory_space<vmem>>, vector<2x128xf32>
      tpu.vector_store %arg4[%c0_16, %c0_17], %18 {strides = array<i32>} : memref<2x128xf32, #tpu.memory_space<vmem>>, vector<2x128xf32>,
    } else {
    }
    %c0 = arith.constant 0 : index
    %c0_1 = arith.constant 0 : index
    %3 = vector.load %arg1[%c0, %c0_1] : memref<32x896xbf16, #tpu.memory_space<vmem>>, vector<32x896xbf16>
    %c0_2 = arith.constant 0 : index
    %c0_3 = arith.constant 0 : index
    %4 = vector.load %arg2[%c0_2, %c0_3] : memref<896x128xbf16, #tpu.memory_space<vmem>>, vector<896x128xbf16>
    %cst = arith.constant dense<0.000000e+00> : vector<32x128xf32>
    %5 = tpu.matmul %3, %4, %cst {dimension_numbers = #tpu.dot_dimension_numbers<[1], [0], [0], [1], [0, 0, 1, 1], [], []>} : vector<32x896xbf16>, vector<896x128xbf16>, vector<32x128xf32> -> vector<32x128xf32>
    %c0_4 = arith.constant 0 : index
    %c0_5 = arith.constant 0 : index
    %6 = vector.load %arg3[%c0_4, %c0_5] : memref<32x128xf32, #tpu.memory_space<vmem>>, vector<32x128xf32>
    tpu.vector_store %arg3[%c0_4, %c0_5], %5 {strides = array<i32>} : memref<32x128xf32, #tpu.memory_space<vmem>>, vector<32x128xf32>,
    %c0_6 = arith.constant 0 : index
    %c0_7 = arith.constant 0 : index
    %7 = vector.load %arg4[%c0_6, %c0_7] : memref<2x128xf32, #tpu.memory_space<vmem>>, vector<1x128xf32>
    %cst_8 = arith.constant dense<0.000000e+00> : vector<128xf32>
    %8 = vector.multi_reduction <add>, %5, %cst_8 [0] : vector<32x128xf32> to vector<128xf32>
    %9 = vector.shape_cast %8 : vector<128xf32> to vector<1x128xf32>
    %10 = arith.addf %7, %9 : vector<1x128xf32>
    %c0_9 = arith.constant 0 : index
    %c0_10 = arith.constant 0 : index
    %11 = vector.load %arg4[%c0_9, %c0_10] : memref<2x128xf32, #tpu.memory_space<vmem>>, vector<1x128xf32>
    tpu.vector_store %arg4[%c0_9, %c0_10], %10 {strides = array<i32>} : memref<2x128xf32, #tpu.memory_space<vmem>>, vector<1x128xf32>,
    %c1 = arith.constant 1 : index
    %c0_11 = arith.constant 0 : index
    %12 = vector.load %arg4[%c1, %c0_11] : memref<2x128xf32, #tpu.memory_space<vmem>>, vector<1x128xf32>
    %13 = arith.mulf %5, %5 : vector<32x128xf32>
    %cst_12 = arith.constant dense<0.000000e+00> : vector<128xf32>
    %14 = vector.multi_reduction <add>, %13, %cst_12 [0] : vector<32x128xf32> to vector<128xf32>
    %15 = vector.shape_cast %14 : vector<128xf32> to vector<1x128xf32>
    %16 = arith.addf %12, %15 : vector<1x128xf32>
    %c1_13 = arith.constant 1 : index
    %c0_14 = arith.constant 0 : index
    %17 = vector.load %arg4[%c1_13, %c0_14] : memref<2x128xf32, #tpu.memory_space<vmem>>, vector<1x128xf32>
    tpu.vector_store %arg4[%c1_13, %c0_14], %16 {strides = array<i32>} : memref<2x128xf32, #tpu.memory_space<vmem>>, vector<1x128xf32>,
    return
  }
  func.func @transform_0(%arg0: i32) -> (i32, i32) {
    %c0_i32 = arith.constant 0 : i32
    %c0_i32_0 = arith.constant 0 : i32
    return %arg0, %c0_i32 : i32, i32
  }
  func.func @transform_1(%arg0: i32) -> (i32, i32) {
    %c0_i32 = arith.constant 0 : i32
    %c0_i32_0 = arith.constant 0 : i32
    %c0_i32_1 = arith.constant 0 : i32
    return %c0_i32, %c0_i32_0 : i32, i32
  }
  func.func @transform_2(%arg0: i32) -> (i32, i32) {
    %c0_i32 = arith.constant 0 : i32
    %c0_i32_0 = arith.constant 0 : i32
    return %arg0, %c0_i32 : i32, i32
  }
  func.func @transform_3(%arg0: i32) -> (i32, i32) {
    %c0_i32 = arith.constant 0 : i32
    %c0_i32_0 = arith.constant 0 : i32
    %c0_i32_1 = arith.constant 0 : i32
    return %c0_i32, %c0_i32_0 : i32, i32
  }
}

module attributes {stable_mosaic.version = 11 : i64} {
  func.func @bn_lrelu_kernel(%arg0: i32, %arg1: memref<32x128xf32, #tpu.memory_space<vmem>>, %arg2: memref<2x128xf32, #tpu.memory_space<vmem>>, %arg3: memref<1x128xf32, #tpu.memory_space<vmem>>, %arg4: memref<1x128xf32, #tpu.memory_space<vmem>>, %arg5: memref<32x128xf32, #tpu.memory_space<vmem>>) attributes {dimension_semantics = [#tpu.dimension_semantics<parallel>], iteration_bounds = array<i64: 1>, scalar_prefetch = 0 : i64, scratch_operands = 0 : i64, tpu.core_type = #tpu.core_type<tc>, window_params = [{transform_indices = @transform_0, window_bounds = array<i64: 32, 128>}, {pipeline_mode = #tpu.pipeline_mode<synchronous>, transform_indices = @transform_1, window_bounds = array<i64: 2, 128>}, {pipeline_mode = #tpu.pipeline_mode<synchronous>, transform_indices = @transform_2, window_bounds = array<i64: 1, 128>}, {pipeline_mode = #tpu.pipeline_mode<synchronous>, transform_indices = @transform_3, window_bounds = array<i64: 1, 128>}, {transform_indices = @transform_4, window_bounds = array<i64: 32, 128>}]} {
    %c0 = arith.constant 0 : index
    %c0_0 = arith.constant 0 : index
    %0 = vector.load %arg2[%c0, %c0_0] : memref<2x128xf32, #tpu.memory_space<vmem>>, vector<1x128xf32>
    %cst = arith.constant 3.125000e-02 : f32
    %1 = vector.broadcast %cst : f32 to vector<1x128xf32>
    %2 = arith.mulf %0, %1 : vector<1x128xf32>
    %c1 = arith.constant 1 : index
    %c0_1 = arith.constant 0 : index
    %3 = vector.load %arg2[%c1, %c0_1] : memref<2x128xf32, #tpu.memory_space<vmem>>, vector<1x128xf32>
    %cst_2 = arith.constant 3.125000e-02 : f32
    %4 = vector.broadcast %cst_2 : f32 to vector<1x128xf32>
    %5 = arith.mulf %3, %4 : vector<1x128xf32>
    %6 = arith.mulf %2, %2 : vector<1x128xf32>
    %7 = arith.subf %5, %6 : vector<1x128xf32>
    %cst_3 = arith.constant 0.000000e+00 : f32
    %8 = vector.broadcast %cst_3 : f32 to vector<1x128xf32>
    %9 = arith.maximumf %7, %8 : vector<1x128xf32>
    %c0_4 = arith.constant 0 : index
    %c0_5 = arith.constant 0 : index
    %10 = vector.load %arg3[%c0_4, %c0_5] : memref<1x128xf32, #tpu.memory_space<vmem>>, vector<1x128xf32>
    %cst_6 = arith.constant 9.99999974E-6 : f32
    %11 = vector.broadcast %cst_6 : f32 to vector<1x128xf32>
    %12 = arith.addf %9, %11 : vector<1x128xf32>
    %13 = math.rsqrt %12 : vector<1x128xf32>
    %14 = arith.mulf %10, %13 : vector<1x128xf32>
    %c0_7 = arith.constant 0 : index
    %c0_8 = arith.constant 0 : index
    %15 = vector.load %arg4[%c0_7, %c0_8] : memref<1x128xf32, #tpu.memory_space<vmem>>, vector<1x128xf32>
    %16 = arith.mulf %2, %14 : vector<1x128xf32>
    %17 = arith.subf %15, %16 : vector<1x128xf32>
    %c0_9 = arith.constant 0 : index
    %c0_10 = arith.constant 0 : index
    %18 = vector.load %arg1[%c0_9, %c0_10] : memref<32x128xf32, #tpu.memory_space<vmem>>, vector<32x128xf32>
    %19 = vector.broadcast %14 : vector<1x128xf32> to vector<32x128xf32>
    %20 = arith.mulf %18, %19 : vector<32x128xf32>
    %21 = vector.broadcast %17 : vector<1x128xf32> to vector<32x128xf32>
    %22 = arith.addf %20, %21 : vector<32x128xf32>
    %cst_11 = arith.constant 0.000000e+00 : f32
    %23 = vector.broadcast %cst_11 : f32 to vector<32x128xf32>
    %24 = arith.cmpf oge, %22, %23 : vector<32x128xf32>
    %cst_12 = arith.constant 2.000000e-01 : f32
    %25 = vector.broadcast %cst_12 : f32 to vector<32x128xf32>
    %26 = arith.mulf %25, %22 : vector<32x128xf32>
    %27 = arith.select %24, %22, %26 : vector<32x128xi1>, vector<32x128xf32>
    %c0_13 = arith.constant 0 : index
    %c0_14 = arith.constant 0 : index
    %28 = vector.load %arg5[%c0_13, %c0_14] : memref<32x128xf32, #tpu.memory_space<vmem>>, vector<32x128xf32>
    tpu.vector_store %arg5[%c0_13, %c0_14], %27 {strides = array<i32>} : memref<32x128xf32, #tpu.memory_space<vmem>>, vector<32x128xf32>,
    return
  }
  func.func @transform_0(%arg0: i32) -> (i32, i32) {
    %c0_i32 = arith.constant 0 : i32
    %c0_i32_0 = arith.constant 0 : i32
    return %arg0, %c0_i32 : i32, i32
  }
  func.func @transform_1(%arg0: i32) -> (i32, i32) {
    %c0_i32 = arith.constant 0 : i32
    %c0_i32_0 = arith.constant 0 : i32
    %c0_i32_1 = arith.constant 0 : i32
    return %c0_i32, %c0_i32_0 : i32, i32
  }
  func.func @transform_2(%arg0: i32) -> (i32, i32) {
    %c0_i32 = arith.constant 0 : i32
    %c0_i32_0 = arith.constant 0 : i32
    %c0_i32_1 = arith.constant 0 : i32
    return %c0_i32, %c0_i32_0 : i32, i32
  }
  func.func @transform_3(%arg0: i32) -> (i32, i32) {
    %c0_i32 = arith.constant 0 : i32
    %c0_i32_0 = arith.constant 0 : i32
    %c0_i32_1 = arith.constant 0 : i32
    return %c0_i32, %c0_i32_0 : i32, i32
  }
  func.func @transform_4(%arg0: i32) -> (i32, i32) {
    %c0_i32 = arith.constant 0 : i32
    %c0_i32_0 = arith.constant 0 : i32
    return %arg0, %c0_i32 : i32, i32
  }
}

module attributes {stable_mosaic.version = 11 : i64} {
  func.func @bn_lrelu_kernel(%arg0: i32, %arg1: memref<16x128xf32, #tpu.memory_space<vmem>>, %arg2: memref<2x128xf32, #tpu.memory_space<vmem>>, %arg3: memref<1x128xf32, #tpu.memory_space<vmem>>, %arg4: memref<1x128xf32, #tpu.memory_space<vmem>>, %arg5: memref<16x128xf32, #tpu.memory_space<vmem>>) attributes {dimension_semantics = [#tpu.dimension_semantics<parallel>], iteration_bounds = array<i64: 1>, scalar_prefetch = 0 : i64, scratch_operands = 0 : i64, tpu.core_type = #tpu.core_type<tc>, window_params = [{transform_indices = @transform_0, window_bounds = array<i64: 16, 128>}, {pipeline_mode = #tpu.pipeline_mode<synchronous>, transform_indices = @transform_1, window_bounds = array<i64: 2, 128>}, {pipeline_mode = #tpu.pipeline_mode<synchronous>, transform_indices = @transform_2, window_bounds = array<i64: 1, 128>}, {pipeline_mode = #tpu.pipeline_mode<synchronous>, transform_indices = @transform_3, window_bounds = array<i64: 1, 128>}, {transform_indices = @transform_4, window_bounds = array<i64: 16, 128>}]} {
    %c0 = arith.constant 0 : index
    %c0_0 = arith.constant 0 : index
    %0 = vector.load %arg2[%c0, %c0_0] : memref<2x128xf32, #tpu.memory_space<vmem>>, vector<1x128xf32>
    %cst = arith.constant 1.250000e-01 : f32
    %1 = vector.broadcast %cst : f32 to vector<1x128xf32>
    %2 = arith.mulf %0, %1 : vector<1x128xf32>
    %c1 = arith.constant 1 : index
    %c0_1 = arith.constant 0 : index
    %3 = vector.load %arg2[%c1, %c0_1] : memref<2x128xf32, #tpu.memory_space<vmem>>, vector<1x128xf32>
    %cst_2 = arith.constant 1.250000e-01 : f32
    %4 = vector.broadcast %cst_2 : f32 to vector<1x128xf32>
    %5 = arith.mulf %3, %4 : vector<1x128xf32>
    %6 = arith.mulf %2, %2 : vector<1x128xf32>
    %7 = arith.subf %5, %6 : vector<1x128xf32>
    %cst_3 = arith.constant 0.000000e+00 : f32
    %8 = vector.broadcast %cst_3 : f32 to vector<1x128xf32>
    %9 = arith.maximumf %7, %8 : vector<1x128xf32>
    %c0_4 = arith.constant 0 : index
    %c0_5 = arith.constant 0 : index
    %10 = vector.load %arg3[%c0_4, %c0_5] : memref<1x128xf32, #tpu.memory_space<vmem>>, vector<1x128xf32>
    %cst_6 = arith.constant 9.99999974E-6 : f32
    %11 = vector.broadcast %cst_6 : f32 to vector<1x128xf32>
    %12 = arith.addf %9, %11 : vector<1x128xf32>
    %13 = math.rsqrt %12 : vector<1x128xf32>
    %14 = arith.mulf %10, %13 : vector<1x128xf32>
    %c0_7 = arith.constant 0 : index
    %c0_8 = arith.constant 0 : index
    %15 = vector.load %arg4[%c0_7, %c0_8] : memref<1x128xf32, #tpu.memory_space<vmem>>, vector<1x128xf32>
    %16 = arith.mulf %2, %14 : vector<1x128xf32>
    %17 = arith.subf %15, %16 : vector<1x128xf32>
    %c0_9 = arith.constant 0 : index
    %c0_10 = arith.constant 0 : index
    %18 = vector.load %arg1[%c0_9, %c0_10] : memref<16x128xf32, #tpu.memory_space<vmem>>, vector<16x128xf32>
    %19 = vector.broadcast %14 : vector<1x128xf32> to vector<16x128xf32>
    %20 = arith.mulf %18, %19 : vector<16x128xf32>
    %21 = vector.broadcast %17 : vector<1x128xf32> to vector<16x128xf32>
    %22 = arith.addf %20, %21 : vector<16x128xf32>
    %cst_11 = arith.constant 0.000000e+00 : f32
    %23 = vector.broadcast %cst_11 : f32 to vector<16x128xf32>
    %24 = arith.cmpf oge, %22, %23 : vector<16x128xf32>
    %cst_12 = arith.constant 2.000000e-01 : f32
    %25 = vector.broadcast %cst_12 : f32 to vector<16x128xf32>
    %26 = arith.mulf %25, %22 : vector<16x128xf32>
    %27 = arith.select %24, %22, %26 : vector<16x128xi1>, vector<16x128xf32>
    %c0_13 = arith.constant 0 : index
    %c0_14 = arith.constant 0 : index
    %28 = vector.load %arg5[%c0_13, %c0_14] : memref<16x128xf32, #tpu.memory_space<vmem>>, vector<16x128xf32>
    tpu.vector_store %arg5[%c0_13, %c0_14], %27 {strides = array<i32>} : memref<16x128xf32, #tpu.memory_space<vmem>>, vector<16x128xf32>,
    return
  }
  func.func @transform_0(%arg0: i32) -> (i32, i32) {
    %c0_i32 = arith.constant 0 : i32
    %c0_i32_0 = arith.constant 0 : i32
    return %arg0, %c0_i32 : i32, i32
  }
  func.func @transform_1(%arg0: i32) -> (i32, i32) {
    %c0_i32 = arith.constant 0 : i32
    %c0_i32_0 = arith.constant 0 : i32
    %c0_i32_1 = arith.constant 0 : i32
    return %c0_i32, %c0_i32_0 : i32, i32
  }
  func.func @transform_2(%arg0: i32) -> (i32, i32) {
    %c0_i32 = arith.constant 0 : i32
    %c0_i32_0 = arith.constant 0 : i32
    %c0_i32_1 = arith.constant 0 : i32
    return %c0_i32, %c0_i32_0 : i32, i32
  }
  func.func @transform_3(%arg0: i32) -> (i32, i32) {
    %c0_i32 = arith.constant 0 : i32
    %c0_i32_0 = arith.constant 0 : i32
    %c0_i32_1 = arith.constant 0 : i32
    return %c0_i32, %c0_i32_0 : i32, i32
  }
  func.func @transform_4(%arg0: i32) -> (i32, i32) {
    %c0_i32 = arith.constant 0 : i32
    %c0_i32_0 = arith.constant 0 : i32
    return %arg0, %c0_i32 : i32, i32
  }
}

module attributes {stable_mosaic.version = 11 : i64} {
  func.func @conv_stats_kernel(%arg0: i32, %arg1: memref<16x1664xbf16, #tpu.memory_space<vmem>>, %arg2: memref<1664x128xbf16, #tpu.memory_space<vmem>>, %arg3: memref<16x128xf32, #tpu.memory_space<vmem>>, %arg4: memref<2x128xf32, #tpu.memory_space<vmem>>) attributes {dimension_semantics = [#tpu.dimension_semantics<arbitrary>], iteration_bounds = array<i64: 1>, scalar_prefetch = 0 : i64, scratch_operands = 0 : i64, tpu.core_type = #tpu.core_type<tc>, window_params = [{transform_indices = @transform_0, window_bounds = array<i64: 16, 1664>}, {pipeline_mode = #tpu.pipeline_mode<synchronous>, transform_indices = @transform_1, window_bounds = array<i64: 1664, 128>}, {transform_indices = @transform_2, window_bounds = array<i64: 16, 128>}, {pipeline_mode = #tpu.pipeline_mode<synchronous>, transform_indices = @transform_3, window_bounds = array<i64: 2, 128>}]} {
    %c0_i32 = arith.constant 0 : i32
    %0 = arith.cmpi eq, %arg0, %c0_i32 : i32
    %1 = arith.extui %0 : i1 to i32
    %c0_i32_0 = arith.constant 0 : i32
    %2 = arith.cmpi ne, %1, %c0_i32_0 : i32
    scf.if %2 {
      %cst_15 = arith.constant 0.000000e+00 : f32
      %18 = vector.broadcast %cst_15 : f32 to vector<2x128xf32>
      %c0_16 = arith.constant 0 : index
      %c0_17 = arith.constant 0 : index
      %19 = vector.load %arg4[%c0_16, %c0_17] : memref<2x128xf32, #tpu.memory_space<vmem>>, vector<2x128xf32>
      tpu.vector_store %arg4[%c0_16, %c0_17], %18 {strides = array<i32>} : memref<2x128xf32, #tpu.memory_space<vmem>>, vector<2x128xf32>,
    } else {
    }
    %c0 = arith.constant 0 : index
    %c0_1 = arith.constant 0 : index
    %3 = vector.load %arg1[%c0, %c0_1] : memref<16x1664xbf16, #tpu.memory_space<vmem>>, vector<16x1664xbf16>
    %c0_2 = arith.constant 0 : index
    %c0_3 = arith.constant 0 : index
    %4 = vector.load %arg2[%c0_2, %c0_3] : memref<1664x128xbf16, #tpu.memory_space<vmem>>, vector<1664x128xbf16>
    %cst = arith.constant dense<0.000000e+00> : vector<16x128xf32>
    %5 = tpu.matmul %3, %4, %cst {dimension_numbers = #tpu.dot_dimension_numbers<[1], [0], [0], [1], [0, 0, 1, 1], [], []>} : vector<16x1664xbf16>, vector<1664x128xbf16>, vector<16x128xf32> -> vector<16x128xf32>
    %c0_4 = arith.constant 0 : index
    %c0_5 = arith.constant 0 : index
    %6 = vector.load %arg3[%c0_4, %c0_5] : memref<16x128xf32, #tpu.memory_space<vmem>>, vector<16x128xf32>
    tpu.vector_store %arg3[%c0_4, %c0_5], %5 {strides = array<i32>} : memref<16x128xf32, #tpu.memory_space<vmem>>, vector<16x128xf32>,
    %c0_6 = arith.constant 0 : index
    %c0_7 = arith.constant 0 : index
    %7 = vector.load %arg4[%c0_6, %c0_7] : memref<2x128xf32, #tpu.memory_space<vmem>>, vector<1x128xf32>
    %cst_8 = arith.constant dense<0.000000e+00> : vector<128xf32>
    %8 = vector.multi_reduction <add>, %5, %cst_8 [0] : vector<16x128xf32> to vector<128xf32>
    %9 = vector.shape_cast %8 : vector<128xf32> to vector<1x128xf32>
    %10 = arith.addf %7, %9 : vector<1x128xf32>
    %c0_9 = arith.constant 0 : index
    %c0_10 = arith.constant 0 : index
    %11 = vector.load %arg4[%c0_9, %c0_10] : memref<2x128xf32, #tpu.memory_space<vmem>>, vector<1x128xf32>
    tpu.vector_store %arg4[%c0_9, %c0_10], %10 {strides = array<i32>} : memref<2x128xf32, #tpu.memory_space<vmem>>, vector<1x128xf32>,
    %c1 = arith.constant 1 : index
    %c0_11 = arith.constant 0 : index
    %12 = vector.load %arg4[%c1, %c0_11] : memref<2x128xf32, #tpu.memory_space<vmem>>, vector<1x128xf32>
    %13 = arith.mulf %5, %5 : vector<16x128xf32>
    %cst_12 = arith.constant dense<0.000000e+00> : vector<128xf32>
    %14 = vector.multi_reduction <add>, %13, %cst_12 [0] : vector<16x128xf32> to vector<128xf32>
    %15 = vector.shape_cast %14 : vector<128xf32> to vector<1x128xf32>
    %16 = arith.addf %12, %15 : vector<1x128xf32>
    %c1_13 = arith.constant 1 : index
    %c0_14 = arith.constant 0 : index
    %17 = vector.load %arg4[%c1_13, %c0_14] : memref<2x128xf32, #tpu.memory_space<vmem>>, vector<1x128xf32>
    tpu.vector_store %arg4[%c1_13, %c0_14], %16 {strides = array<i32>} : memref<2x128xf32, #tpu.memory_space<vmem>>, vector<1x128xf32>,
    return
  }
  func.func @transform_0(%arg0: i32) -> (i32, i32) {
    %c0_i32 = arith.constant 0 : i32
    %c0_i32_0 = arith.constant 0 : i32
    return %arg0, %c0_i32 : i32, i32
  }
  func.func @transform_1(%arg0: i32) -> (i32, i32) {
    %c0_i32 = arith.constant 0 : i32
    %c0_i32_0 = arith.constant 0 : i32
    %c0_i32_1 = arith.constant 0 : i32
    return %c0_i32, %c0_i32_0 : i32, i32
  }
  func.func @transform_2(%arg0: i32) -> (i32, i32) {
    %c0_i32 = arith.constant 0 : i32
    %c0_i32_0 = arith.constant 0 : i32
    return %arg0, %c0_i32 : i32, i32
  }
  func.func @transform_3(%arg0: i32) -> (i32, i32) {
    %c0_i32 = arith.constant 0 : i32
    %c0_i32_0 = arith.constant 0 : i32
    %c0_i32_1 = arith.constant 0 : i32
    return %c0_i32, %c0_i32_0 : i32, i32
  }
}

module attributes {stable_mosaic.version = 11 : i64} {
  func.func @conv_stats_kernel(%arg0: i32, %arg1: memref<16x3200xbf16, #tpu.memory_space<vmem>>, %arg2: memref<3200x128xbf16, #tpu.memory_space<vmem>>, %arg3: memref<16x128xf32, #tpu.memory_space<vmem>>, %arg4: memref<2x128xf32, #tpu.memory_space<vmem>>) attributes {dimension_semantics = [#tpu.dimension_semantics<arbitrary>], iteration_bounds = array<i64: 1>, scalar_prefetch = 0 : i64, scratch_operands = 0 : i64, tpu.core_type = #tpu.core_type<tc>, window_params = [{transform_indices = @transform_0, window_bounds = array<i64: 16, 3200>}, {pipeline_mode = #tpu.pipeline_mode<synchronous>, transform_indices = @transform_1, window_bounds = array<i64: 3200, 128>}, {transform_indices = @transform_2, window_bounds = array<i64: 16, 128>}, {pipeline_mode = #tpu.pipeline_mode<synchronous>, transform_indices = @transform_3, window_bounds = array<i64: 2, 128>}]} {
    %c0_i32 = arith.constant 0 : i32
    %0 = arith.cmpi eq, %arg0, %c0_i32 : i32
    %1 = arith.extui %0 : i1 to i32
    %c0_i32_0 = arith.constant 0 : i32
    %2 = arith.cmpi ne, %1, %c0_i32_0 : i32
    scf.if %2 {
      %cst_15 = arith.constant 0.000000e+00 : f32
      %18 = vector.broadcast %cst_15 : f32 to vector<2x128xf32>
      %c0_16 = arith.constant 0 : index
      %c0_17 = arith.constant 0 : index
      %19 = vector.load %arg4[%c0_16, %c0_17] : memref<2x128xf32, #tpu.memory_space<vmem>>, vector<2x128xf32>
      tpu.vector_store %arg4[%c0_16, %c0_17], %18 {strides = array<i32>} : memref<2x128xf32, #tpu.memory_space<vmem>>, vector<2x128xf32>,
    } else {
    }
    %c0 = arith.constant 0 : index
    %c0_1 = arith.constant 0 : index
    %3 = vector.load %arg1[%c0, %c0_1] : memref<16x3200xbf16, #tpu.memory_space<vmem>>, vector<16x3200xbf16>
    %c0_2 = arith.constant 0 : index
    %c0_3 = arith.constant 0 : index
    %4 = vector.load %arg2[%c0_2, %c0_3] : memref<3200x128xbf16, #tpu.memory_space<vmem>>, vector<3200x128xbf16>
    %cst = arith.constant dense<0.000000e+00> : vector<16x128xf32>
    %5 = tpu.matmul %3, %4, %cst {dimension_numbers = #tpu.dot_dimension_numbers<[1], [0], [0], [1], [0, 0, 1, 1], [], []>} : vector<16x3200xbf16>, vector<3200x128xbf16>, vector<16x128xf32> -> vector<16x128xf32>
    %c0_4 = arith.constant 0 : index
    %c0_5 = arith.constant 0 : index
    %6 = vector.load %arg3[%c0_4, %c0_5] : memref<16x128xf32, #tpu.memory_space<vmem>>, vector<16x128xf32>
    tpu.vector_store %arg3[%c0_4, %c0_5], %5 {strides = array<i32>} : memref<16x128xf32, #tpu.memory_space<vmem>>, vector<16x128xf32>,
    %c0_6 = arith.constant 0 : index
    %c0_7 = arith.constant 0 : index
    %7 = vector.load %arg4[%c0_6, %c0_7] : memref<2x128xf32, #tpu.memory_space<vmem>>, vector<1x128xf32>
    %cst_8 = arith.constant dense<0.000000e+00> : vector<128xf32>
    %8 = vector.multi_reduction <add>, %5, %cst_8 [0] : vector<16x128xf32> to vector<128xf32>
    %9 = vector.shape_cast %8 : vector<128xf32> to vector<1x128xf32>
    %10 = arith.addf %7, %9 : vector<1x128xf32>
    %c0_9 = arith.constant 0 : index
    %c0_10 = arith.constant 0 : index
    %11 = vector.load %arg4[%c0_9, %c0_10] : memref<2x128xf32, #tpu.memory_space<vmem>>, vector<1x128xf32>
    tpu.vector_store %arg4[%c0_9, %c0_10], %10 {strides = array<i32>} : memref<2x128xf32, #tpu.memory_space<vmem>>, vector<1x128xf32>,
    %c1 = arith.constant 1 : index
    %c0_11 = arith.constant 0 : index
    %12 = vector.load %arg4[%c1, %c0_11] : memref<2x128xf32, #tpu.memory_space<vmem>>, vector<1x128xf32>
    %13 = arith.mulf %5, %5 : vector<16x128xf32>
    %cst_12 = arith.constant dense<0.000000e+00> : vector<128xf32>
    %14 = vector.multi_reduction <add>, %13, %cst_12 [0] : vector<16x128xf32> to vector<128xf32>
    %15 = vector.shape_cast %14 : vector<128xf32> to vector<1x128xf32>
    %16 = arith.addf %12, %15 : vector<1x128xf32>
    %c1_13 = arith.constant 1 : index
    %c0_14 = arith.constant 0 : index
    %17 = vector.load %arg4[%c1_13, %c0_14] : memref<2x128xf32, #tpu.memory_space<vmem>>, vector<1x128xf32>
    tpu.vector_store %arg4[%c1_13, %c0_14], %16 {strides = array<i32>} : memref<2x128xf32, #tpu.memory_space<vmem>>, vector<1x128xf32>,
    return
  }
  func.func @transform_0(%arg0: i32) -> (i32, i32) {
    %c0_i32 = arith.constant 0 : i32
    %c0_i32_0 = arith.constant 0 : i32
    return %arg0, %c0_i32 : i32, i32
  }
  func.func @transform_1(%arg0: i32) -> (i32, i32) {
    %c0_i32 = arith.constant 0 : i32
    %c0_i32_0 = arith.constant 0 : i32
    %c0_i32_1 = arith.constant 0 : i32
    return %c0_i32, %c0_i32_0 : i32, i32
  }
  func.func @transform_2(%arg0: i32) -> (i32, i32) {
    %c0_i32 = arith.constant 0 : i32
    %c0_i32_0 = arith.constant 0 : i32
    return %arg0, %c0_i32 : i32, i32
  }
  func.func @transform_3(%arg0: i32) -> (i32, i32) {
    %c0_i32 = arith.constant 0 : i32
    %c0_i32_0 = arith.constant 0 : i32
    %c0_i32_1 = arith.constant 0 : i32
    return %c0_i32, %c0_i32_0 : i32, i32
  }
}

module attributes {stable_mosaic.version = 11 : i64} {
  func.func @bn_lrelu_kernel(%arg0: i32, %arg1: memref<16x128xf32, #tpu.memory_space<vmem>>, %arg2: memref<2x128xf32, #tpu.memory_space<vmem>>, %arg3: memref<1x128xf32, #tpu.memory_space<vmem>>, %arg4: memref<1x128xf32, #tpu.memory_space<vmem>>, %arg5: memref<16x128xf32, #tpu.memory_space<vmem>>) attributes {dimension_semantics = [#tpu.dimension_semantics<parallel>], iteration_bounds = array<i64: 1>, scalar_prefetch = 0 : i64, scratch_operands = 0 : i64, tpu.core_type = #tpu.core_type<tc>, window_params = [{transform_indices = @transform_0, window_bounds = array<i64: 16, 128>}, {pipeline_mode = #tpu.pipeline_mode<synchronous>, transform_indices = @transform_1, window_bounds = array<i64: 2, 128>}, {pipeline_mode = #tpu.pipeline_mode<synchronous>, transform_indices = @transform_2, window_bounds = array<i64: 1, 128>}, {pipeline_mode = #tpu.pipeline_mode<synchronous>, transform_indices = @transform_3, window_bounds = array<i64: 1, 128>}, {transform_indices = @transform_4, window_bounds = array<i64: 16, 128>}]} {
    %c0 = arith.constant 0 : index
    %c0_0 = arith.constant 0 : index
    %0 = vector.load %arg2[%c0, %c0_0] : memref<2x128xf32, #tpu.memory_space<vmem>>, vector<1x128xf32>
    %cst = arith.constant 5.000000e-01 : f32
    %1 = vector.broadcast %cst : f32 to vector<1x128xf32>
    %2 = arith.mulf %0, %1 : vector<1x128xf32>
    %c1 = arith.constant 1 : index
    %c0_1 = arith.constant 0 : index
    %3 = vector.load %arg2[%c1, %c0_1] : memref<2x128xf32, #tpu.memory_space<vmem>>, vector<1x128xf32>
    %cst_2 = arith.constant 5.000000e-01 : f32
    %4 = vector.broadcast %cst_2 : f32 to vector<1x128xf32>
    %5 = arith.mulf %3, %4 : vector<1x128xf32>
    %6 = arith.mulf %2, %2 : vector<1x128xf32>
    %7 = arith.subf %5, %6 : vector<1x128xf32>
    %cst_3 = arith.constant 0.000000e+00 : f32
    %8 = vector.broadcast %cst_3 : f32 to vector<1x128xf32>
    %9 = arith.maximumf %7, %8 : vector<1x128xf32>
    %c0_4 = arith.constant 0 : index
    %c0_5 = arith.constant 0 : index
    %10 = vector.load %arg3[%c0_4, %c0_5] : memref<1x128xf32, #tpu.memory_space<vmem>>, vector<1x128xf32>
    %cst_6 = arith.constant 9.99999974E-6 : f32
    %11 = vector.broadcast %cst_6 : f32 to vector<1x128xf32>
    %12 = arith.addf %9, %11 : vector<1x128xf32>
    %13 = math.rsqrt %12 : vector<1x128xf32>
    %14 = arith.mulf %10, %13 : vector<1x128xf32>
    %c0_7 = arith.constant 0 : index
    %c0_8 = arith.constant 0 : index
    %15 = vector.load %arg4[%c0_7, %c0_8] : memref<1x128xf32, #tpu.memory_space<vmem>>, vector<1x128xf32>
    %16 = arith.mulf %2, %14 : vector<1x128xf32>
    %17 = arith.subf %15, %16 : vector<1x128xf32>
    %c0_9 = arith.constant 0 : index
    %c0_10 = arith.constant 0 : index
    %18 = vector.load %arg1[%c0_9, %c0_10] : memref<16x128xf32, #tpu.memory_space<vmem>>, vector<16x128xf32>
    %19 = vector.broadcast %14 : vector<1x128xf32> to vector<16x128xf32>
    %20 = arith.mulf %18, %19 : vector<16x128xf32>
    %21 = vector.broadcast %17 : vector<1x128xf32> to vector<16x128xf32>
    %22 = arith.addf %20, %21 : vector<16x128xf32>
    %cst_11 = arith.constant 0.000000e+00 : f32
    %23 = vector.broadcast %cst_11 : f32 to vector<16x128xf32>
    %24 = arith.cmpf oge, %22, %23 : vector<16x128xf32>
    %cst_12 = arith.constant 2.000000e-01 : f32
    %25 = vector.broadcast %cst_12 : f32 to vector<16x128xf32>
    %26 = arith.mulf %25, %22 : vector<16x128xf32>
    %27 = arith.select %24, %22, %26 : vector<16x128xi1>, vector<16x128xf32>
    %c0_13 = arith.constant 0 : index
    %c0_14 = arith.constant 0 : index
    %28 = vector.load %arg5[%c0_13, %c0_14] : memref<16x128xf32, #tpu.memory_space<vmem>>, vector<16x128xf32>
    tpu.vector_store %arg5[%c0_13, %c0_14], %27 {strides = array<i32>} : memref<16x128xf32, #tpu.memory_space<vmem>>, vector<16x128xf32>,
    return
  }
  func.func @transform_0(%arg0: i32) -> (i32, i32) {
    %c0_i32 = arith.constant 0 : i32
    %c0_i32_0 = arith.constant 0 : i32
    return %arg0, %c0_i32 : i32, i32
  }
  func.func @transform_1(%arg0: i32) -> (i32, i32) {
    %c0_i32 = arith.constant 0 : i32
    %c0_i32_0 = arith.constant 0 : i32
    %c0_i32_1 = arith.constant 0 : i32
    return %c0_i32, %c0_i32_0 : i32, i32
  }
  func.func @transform_2(%arg0: i32) -> (i32, i32) {
    %c0_i32 = arith.constant 0 : i32
    %c0_i32_0 = arith.constant 0 : i32
    %c0_i32_1 = arith.constant 0 : i32
    return %c0_i32, %c0_i32_0 : i32, i32
  }
  func.func @transform_3(%arg0: i32) -> (i32, i32) {
    %c0_i32 = arith.constant 0 : i32
    %c0_i32_0 = arith.constant 0 : i32
    %c0_i32_1 = arith.constant 0 : i32
    return %c0_i32, %c0_i32_0 : i32, i32
  }
  func.func @transform_4(%arg0: i32) -> (i32, i32) {
    %c0_i32 = arith.constant 0 : i32
    %c0_i32_0 = arith.constant 0 : i32
    return %arg0, %c0_i32 : i32, i32
  }
}

module attributes {stable_mosaic.version = 11 : i64} {
  func.func @linear_kernel(%arg0: memref<2x128xf32, #tpu.memory_space<vmem>>, %arg1: memref<1x128xf32, #tpu.memory_space<vmem>>, %arg2: memref<1x1xf32, #tpu.memory_space<vmem>>, %arg3: memref<2x1xf32, #tpu.memory_space<vmem>>) attributes {dimension_semantics = [], scalar_prefetch = 0 : i64, scratch_operands = 0 : i64, tpu.core_type = #tpu.core_type<tc>} {
    %c0 = arith.constant 0 : index
    %c0_0 = arith.constant 0 : index
    %0 = vector.load %arg0[%c0, %c0_0] : memref<2x128xf32, #tpu.memory_space<vmem>>, vector<2x128xf32>
    %c0_1 = arith.constant 0 : index
    %c0_2 = arith.constant 0 : index
    %1 = vector.load %arg1[%c0_1, %c0_2] : memref<1x128xf32, #tpu.memory_space<vmem>>, vector<1x128xf32>
    %2 = vector.broadcast %1 : vector<1x128xf32> to vector<2x128xf32>
    %3 = arith.mulf %0, %2 : vector<2x128xf32>
    %cst = arith.constant dense<0.000000e+00> : vector<2xf32>
    %4 = vector.multi_reduction <add>, %3, %cst [1] : vector<2x128xf32> to vector<2xf32>
    %5 = vector.shape_cast %4 : vector<2xf32> to vector<2x1xf32>
    %c0_3 = arith.constant 0 : index
    %c0_4 = arith.constant 0 : index
    %6 = vector.load %arg2[%c0_3, %c0_4] : memref<1x1xf32, #tpu.memory_space<vmem>>, vector<1x1xf32>
    %7 = vector.broadcast %6 : vector<1x1xf32> to vector<2x1xf32>
    %8 = arith.addf %5, %7 : vector<2x1xf32>
    %c0_5 = arith.constant 0 : index
    %c0_6 = arith.constant 0 : index
    %9 = vector.load %arg3[%c0_5, %c0_6] : memref<2x1xf32, #tpu.memory_space<vmem>>, vector<2x1xf32>
    tpu.vector_store %arg3[%c0_5, %c0_6], %8 {strides = array<i32>} : memref<2x1xf32, #tpu.memory_space<vmem>>, vector<2x1xf32>,
    return
  }
}

</mosaic_0001>

<bundles_post_ra>
// kernel: simple_discriminator_forward.10
= control target key start
LH: loop header
LB: loop body
LE: loop exit
PB: predicated region body
PF: predicated region fallthrough
CT: control target
= control target key end

     0   :  { %s1393_s1 = inlined_call_operand.vmem [shape: bf16[128,128], index: 1, kind: input, shape index: {}]   ;;  %s1394_s2 = inlined_call_operand.vmem [shape: f32[1,128], index: 2, kind: input, shape index: {}]   ;;  %s1395_s0 = inlined_call_operand.vmem [shape: bf16[512,128], index: 0, kind: input, shape index: {}]   ;;  %s1396_s3 = inlined_call_operand.vmem [shape: f32[512,128], index: 3, kind: output, shape index: {}]  }
   0x1   :  { %v966_v0 = vld [vmem:[%s1393_s1 + $0x38] sm:$0xff]  ;;  %v965_v1 = vld [vmem:[%s1393_s1 + $0x30] sm:$0xff]  ;;  %v964_v2 = vld [vmem:[%s1393_s1 + $0x28] sm:$0xff] }
   0x2   :  { %338 = vmatpush.bf16.msra.mxu0 %v966_v0  ;;  %967 = vmatpush.bf16.msra.mxu1 %v966_v0  ;;  %v963_v3 = vld [vmem:[%s1393_s1 + $0x20] sm:$0xff]  ;;  %v962_v4 = vld [vmem:[%s1393_s1 + $0x18] sm:$0xff]  ;;  %v961_v5 = vld [vmem:[%s1393_s1 + $0x10] sm:$0xff] }
   0x3   :  { %968 = vmatpush.bf16.msra.mxu2 %v966_v0  ;;  %969 = vmatpush.bf16.msra.mxu3 %v966_v0  ;;  %v960_v6 = vld [vmem:[%s1393_s1 + $0x8] sm:$0xff]  ;;  %v959_v7 = vld [vmem:[%s1393_s1] sm:$0xff]  ;;  %v929_v16 = vld [vmem:[%s1395_s0 + $0x10] sm:$0xff] }
   0x4   :  { %v927_v8 = vld [vmem:[%s1395_s0] sm:$0xff]  ;;  %v928_v12 = vld [vmem:[%s1395_s0 + $0x8] sm:$0xff]  ;;  %v937_v17 = vld [vmem:[%s1395_s0 + $0x50] sm:$0xff] }
   0x5   :  { %v935_v9 = vld [vmem:[%s1395_s0 + $0x40] sm:$0xff]  ;;  %v936_v13 = vld [vmem:[%s1395_s0 + $0x48] sm:$0xff]  ;;  %v945_v18 = vld [vmem:[%s1395_s0 + $0x90] sm:$0xff] }
   0x6   :  { %339 = vmatpush.bf16.msra.mxu0 %v965_v1  ;;  %970 = vmatpush.bf16.msra.mxu1 %v965_v1  ;;  %v943_v10 = vld [vmem:[%s1395_s0 + $0x80] sm:$0xff]  ;;  %v944_v14 = vld [vmem:[%s1395_s0 + $0x88] sm:$0xff]  ;;  %v953_v19 = vld [vmem:[%s1395_s0 + $0xd0] sm:$0xff] }
   0x7   :  { %971 = vmatpush.bf16.msra.mxu2 %v965_v1  ;;  %972 = vmatpush.bf16.msra.mxu3 %v965_v1  ;;  %v951_v11 = vld [vmem:[%s1395_s0 + $0xc0] sm:$0xff]  ;;  %v952_v15 = vld [vmem:[%s1395_s0 + $0xc8] sm:$0xff]  ;;  %v930_v20 = vld [vmem:[%s1395_s0 + $0x18] sm:$0xff] }
   0x8   :  { %v938_v21 = vld [vmem:[%s1395_s0 + $0x58] sm:$0xff]  ;;  %v931_v24 = vld [vmem:[%s1395_s0 + $0x20] sm:$0xff]  ;;  %v932_v28 = vld [vmem:[%s1395_s0 + $0x28] sm:$0xff] }
   0x9   :  { %v946_v22 = vld [vmem:[%s1395_s0 + $0x98] sm:$0xff]  ;;  %v939_v25 = vld [vmem:[%s1395_s0 + $0x60] sm:$0xff]  ;;  %v940_v29 = vld [vmem:[%s1395_s0 + $0x68] sm:$0xff] }
   0xa   :  { %340 = vmatpush.bf16.msra.mxu0 %v964_v2  ;;  %973 = vmatpush.bf16.msra.mxu1 %v964_v2  ;;  %v954_v23 = vld [vmem:[%s1395_s0 + $0xd8] sm:$0xff]  ;;  %v947_v26 = vld [vmem:[%s1395_s0 + $0xa0] sm:$0xff]  ;;  %v948_v30 = vld [vmem:[%s1395_s0 + $0xa8] sm:$0xff] }
   0xb   :  { %974 = vmatpush.bf16.msra.mxu2 %v964_v2  ;;  %975 = vmatpush.bf16.msra.mxu3 %v964_v2  ;;  %v955_v27 = vld [vmem:[%s1395_s0 + $0xe0] sm:$0xff]  ;;  %v956_v31 = vld [vmem:[%s1395_s0 + $0xe8] sm:$0xff]  ;;  %v933_v32 = vld [vmem:[%s1395_s0 + $0x30] sm:$0xff] }
   0xc   :  { %v941_v33 = vld [vmem:[%s1395_s0 + $0x70] sm:$0xff]  ;;  %v934_v36 = vld [vmem:[%s1395_s0 + $0x38] sm:$0xff]  ;;  %v1135_v40 = vld [vmem:[%s1394_s2] ss:$0 sm:$0xff] }
   0xd   :  { %v949_v34 = vld [vmem:[%s1395_s0 + $0xb0] sm:$0xff]  ;;  %v942_v37 = vld [vmem:[%s1395_s0 + $0x78] sm:$0xff] }
   0xe   :  { %341 = vmatpush.bf16.msra.mxu0 %v963_v3  ;;  %976 = vmatpush.bf16.msra.mxu1 %v963_v3  ;;  %v957_v35 = vld [vmem:[%s1395_s0 + $0xf0] sm:$0xff]  ;;  %v950_v38 = vld [vmem:[%s1395_s0 + $0xb8] sm:$0xff] }
   0xf   :  { %977 = vmatpush.bf16.msra.mxu2 %v963_v3  ;;  %978 = vmatpush.bf16.msra.mxu3 %v963_v3  ;;  %v958_v39 = vld [vmem:[%s1395_s0 + $0xf8] sm:$0xff] }
  0x12   :  { %342 = vmatpush.bf16.msra.mxu0 %v962_v4  ;;  %979 = vmatpush.bf16.msra.mxu1 %v962_v4 }
  0x13   :  { %980 = vmatpush.bf16.msra.mxu2 %v962_v4  ;;  %981 = vmatpush.bf16.msra.mxu3 %v962_v4 }
  0x16   :  { %343 = vmatpush.bf16.msra.mxu0 %v961_v5  ;;  %982 = vmatpush.bf16.msra.mxu1 %v961_v5 }
  0x17   :  { %983 = vmatpush.bf16.msra.mxu2 %v961_v5  ;;  %984 = vmatpush.bf16.msra.mxu3 %v961_v5 }
  0x1a   :  { %344 = vmatpush.bf16.msra.mxu0 %v960_v6  ;;  %985 = vmatpush.bf16.msra.mxu1 %v960_v6 }
  0x1b   :  { %986 = vmatpush.bf16.msra.mxu2 %v960_v6  ;;  %987 = vmatpush.bf16.msra.mxu3 %v960_v6 }
  0x1e   :  { %345 = vmatpush.bf16.msra.mxu0 %v959_v7  ;;  %988 = vmatpush.bf16.msra.mxu1 %v959_v7 }
  0x1f   :  { %989 = vmatpush.bf16.msra.mxu2 %v959_v7  ;;  %990 = vmatpush.bf16.msra.mxu3 %v959_v7 }
  0x21   :  { %346 = vmatmul.bf16.vlgmr.msra.gmra.mxu0 %v927_v8  ;;  %386 = vmatmul.bf16.vlgmr.msra.gmra.mxu1 %v935_v9 }
  0x22   :  { %426 = vmatmul.bf16.vlgmr.msra.gmra.mxu2 %v943_v10  ;;  %466 = vmatmul.bf16.vlgmr.msra.gmra.mxu3 %v951_v11 }
  0x31   :  { %351 = vmatmul.bf16.gmra.mxu0 %v928_v12  ;;  %391 = vmatmul.bf16.gmra.mxu1 %v936_v13 }
  0x32   :  { %431 = vmatmul.bf16.gmra.mxu2 %v944_v14  ;;  %471 = vmatmul.bf16.gmra.mxu3 %v952_v15 }
  0x41   :  { %356 = vmatmul.bf16.gmra.mxu0 %v929_v16  ;;  %396 = vmatmul.bf16.gmra.mxu1 %v937_v17 }
  0x42   :  { %436 = vmatmul.bf16.gmra.mxu2 %v945_v18  ;;  %476 = vmatmul.bf16.gmra.mxu3 %v953_v19 }
  0x51   :  { %361 = vmatmul.bf16.gmra.mxu0 %v930_v20  ;;  %401 = vmatmul.bf16.gmra.mxu1 %v938_v21 }
  0x52   :  { %441 = vmatmul.bf16.gmra.mxu2 %v946_v22  ;;  %481 = vmatmul.bf16.gmra.mxu3 %v954_v23 }
  0x61   :  { %366 = vmatmul.bf16.gmra.mxu0 %v931_v24  ;;  %406 = vmatmul.bf16.gmra.mxu1 %v939_v25 }
  0x62   :  { %446 = vmatmul.bf16.gmra.mxu2 %v947_v26  ;;  %486 = vmatmul.bf16.gmra.mxu3 %v955_v27 }
  0x71   :  { %371 = vmatmul.bf16.gmra.mxu0 %v932_v28  ;;  %411 = vmatmul.bf16.gmra.mxu1 %v940_v29 }
  0x72   :  { %451 = vmatmul.bf16.gmra.mxu2 %v948_v30  ;;  %491 = vmatmul.bf16.gmra.mxu3 %v956_v31 }
  0x81   :  { %376 = vmatmul.bf16.gmra.mxu0 %v933_v32  ;;  %416 = vmatmul.bf16.gmra.mxu1 %v941_v33 }
  0x82   :  { %456 = vmatmul.bf16.gmra.mxu2 %v949_v34  ;;  %496 = vmatmul.bf16.gmra.mxu3 %v957_v35 }
  0x91   :  { %381 = vmatmul.bf16.gmra.mxu0 %v934_v36  ;;  %421 = vmatmul.bf16.gmra.mxu1 %v942_v37 }
  0x92   :  { %461 = vmatmul.bf16.gmra.mxu2 %v950_v38  ;;  %501 = vmatmul.bf16.gmra.mxu3 %v958_v39 }
  0x9e   :  { %v347_v41 = vpop.f32.mrf.mxu0  ;;  %v387_v42 = vpop.f32.mrf.mxu1 }
  0x9f   :  { %v348_v43 = vadd.f32 %v1135_v40, %v347_v41  ;;  %v388_v44 = vadd.f32 %v1135_v40, %v387_v42 }
  0xa1   :  { %vm507_vm0 = vcmp.ge.f32.partialorder %v348_v43, 0.0  ;;  %v571_v45 = vmul.f32 0.2, %v348_v43  ;;  %vm523_vm1 = vcmp.ge.f32.partialorder %v388_v44, 0.0  ;;  %v587_v46 = vmul.f32 0.2, %v388_v44 }
  0xa3   :  { %v635_v47 = vsel %vm507_vm0, %v348_v43, %v571_v45  ;;  %v651_v48 = vsel %vm523_vm1, %v388_v44, %v587_v46 }
  0xa4   :  { %699 = vst [vmem:[%s1396_s3] sm:$0xff] %v635_v47 }
  0xa5   :  { %715 = vst [vmem:[%s1396_s3 + $0x80] sm:$0xff] %v651_v48  ;;  %v427_v49 = vpop.f32.mrf.mxu2  ;;  %v467_v50 = vpop.f32.mrf.mxu3 }
  0xa6   :  { %v428_v51 = vadd.f32 %v1135_v40, %v427_v49  ;;  %v468_v52 = vadd.f32 %v1135_v40, %v467_v50  ;;  %v349_v53 = vpop.f32.mrf.mxu0  ;;  %v389_v54 = vpop.f32.mrf.mxu1 }
  0xa7   :  { %v350_v55 = vadd.f32 %v1135_v40, %v349_v53  ;;  %v390_v56 = vadd.f32 %v1135_v40, %v389_v54 }
  0xa8   :  { %vm539_vm2 = vcmp.ge.f32.partialorder %v428_v51, 0.0  ;;  %v603_v57 = vmul.f32 0.2, %v428_v51  ;;  %vm555_vm3 = vcmp.ge.f32.partialorder %v468_v52, 0.0  ;;  %v619_v58 = vmul.f32 0.2, %v468_v52 }
  0xa9   :  { %vm508_vm4 = vcmp.ge.f32.partialorder %v350_v55, 0.0  ;;  %v572_v59 = vmul.f32 0.2, %v350_v55  ;;  %vm524_vm5 = vcmp.ge.f32.partialorder %v390_v56, 0.0  ;;  %v588_v60 = vmul.f32 0.2, %v390_v56 }
  0xaa   :  { %v667_v61 = vsel %vm539_vm2, %v428_v51, %v603_v57  ;;  %v683_v62 = vsel %vm555_vm3, %v468_v52, %v619_v58 }
  0xab   :  { %731 = vst [vmem:[%s1396_s3 + $0x100] sm:$0xff] %v667_v61  ;;  %v636_v63 = vsel %vm508_vm4, %v350_v55, %v572_v59  ;;  %v652_v0 = vsel %vm524_vm5, %v390_v56, %v588_v60 }
  0xac   :  { %747 = vst [vmem:[%s1396_s3 + $0x180] sm:$0xff] %v683_v62 }
  0xad   :  { %700 = vst [vmem:[%s1396_s3 + $0x8] sm:$0xff] %v636_v63  ;;  %v429_v1 = vpop.f32.mrf.mxu2  ;;  %v469_v2 = vpop.f32.mrf.mxu3 }
  0xae   :  { %716 = vst [vmem:[%s1396_s3 + $0x88] sm:$0xff] %v652_v0  ;;  %v430_v3 = vadd.f32 %v1135_v40, %v429_v1  ;;  %v470_v4 = vadd.f32 %v1135_v40, %v469_v2  ;;  %v352_v5 = vpop.f32.mrf.mxu0  ;;  %v392_v6 = vpop.f32.mrf.mxu1 }
  0xaf   :  { %v353_v7 = vadd.f32 %v1135_v40, %v352_v5  ;;  %v393_v8 = vadd.f32 %v1135_v40, %v392_v6 }
  0xb0   :  { %vm540_vm6 = vcmp.ge.f32.partialorder %v430_v3, 0.0  ;;  %v604_v9 = vmul.f32 0.2, %v430_v3  ;;  %vm556_vm7 = vcmp.ge.f32.partialorder %v470_v4, 0.0  ;;  %v620_v10 = vmul.f32 0.2, %v470_v4 }
  0xb1   :  { %vm509_vm8 = vcmp.ge.f32.partialorder %v353_v7, 0.0  ;;  %v573_v11 = vmul.f32 0.2, %v353_v7  ;;  %vm525_vm9 = vcmp.ge.f32.partialorder %v393_v8, 0.0  ;;  %v589_v12 = vmul.f32 0.2, %v393_v8 }
  0xb2   :  { %v668_v13 = vsel %vm540_vm6, %v430_v3, %v604_v9  ;;  %v684_v14 = vsel %vm556_vm7, %v470_v4, %v620_v10 }
  0xb3   :  { %732 = vst [vmem:[%s1396_s3 + $0x108] sm:$0xff] %v668_v13  ;;  %v637_v15 = vsel %vm509_vm8, %v353_v7, %v573_v11  ;;  %v653_v16 = vsel %vm525_vm9, %v393_v8, %v589_v12 }
  0xb4   :  { %748 = vst [vmem:[%s1396_s3 + $0x188] sm:$0xff] %v684_v14 }
  0xb5   :  { %701 = vst [vmem:[%s1396_s3 + $0x10] sm:$0xff] %v637_v15  ;;  %v432_v17 = vpop.f32.mrf.mxu2  ;;  %v472_v18 = vpop.f32.mrf.mxu3 }
  0xb6   :  { %717 = vst [vmem:[%s1396_s3 + $0x90] sm:$0xff] %v653_v16  ;;  %v433_v19 = vadd.f32 %v1135_v40, %v432_v17  ;;  %v473_v20 = vadd.f32 %v1135_v40, %v472_v18  ;;  %v354_v21 = vpop.f32.mrf.mxu0  ;;  %v394_v22 = vpop.f32.mrf.mxu1 }
  0xb7   :  { %v355_v23 = vadd.f32 %v1135_v40, %v354_v21  ;;  %v395_v24 = vadd.f32 %v1135_v40, %v394_v22 }
  0xb8   :  { %vm541_vm10 = vcmp.ge.f32.partialorder %v433_v19, 0.0  ;;  %v605_v25 = vmul.f32 0.2, %v433_v19  ;;  %vm557_vm11 = vcmp.ge.f32.partialorder %v473_v20, 0.0  ;;  %v621_v26 = vmul.f32 0.2, %v473_v20 }
  0xb9   :  { %vm510_vm12 = vcmp.ge.f32.partialorder %v355_v23, 0.0  ;;  %v574_v27 = vmul.f32 0.2, %v355_v23  ;;  %vm526_vm13 = vcmp.ge.f32.partialorder %v395_v24, 0.0  ;;  %v590_v28 = vmul.f32 0.2, %v395_v24 }
  0xba   :  { %v669_v29 = vsel %vm541_vm10, %v433_v19, %v605_v25  ;;  %v685_v30 = vsel %vm557_vm11, %v473_v20, %v621_v26 }
  0xbb   :  { %733 = vst [vmem:[%s1396_s3 + $0x110] sm:$0xff] %v669_v29  ;;  %v638_v31 = vsel %vm510_vm12, %v355_v23, %v574_v27  ;;  %v654_v32 = vsel %vm526_vm13, %v395_v24, %v590_v28 }
  0xbc   :  { %749 = vst [vmem:[%s1396_s3 + $0x190] sm:$0xff] %v685_v30 }
  0xbd   :  { %702 = vst [vmem:[%s1396_s3 + $0x18] sm:$0xff] %v638_v31  ;;  %v434_v33 = vpop.f32.mrf.mxu2  ;;  %v474_v34 = vpop.f32.mrf.mxu3 }
  0xbe   :  { %718 = vst [vmem:[%s1396_s3 + $0x98] sm:$0xff] %v654_v32  ;;  %v435_v35 = vadd.f32 %v1135_v40, %v434_v33  ;;  %v475_v36 = vadd.f32 %v1135_v40, %v474_v34  ;;  %v357_v37 = vpop.f32.mrf.mxu0  ;;  %v397_v38 = vpop.f32.mrf.mxu1 }
  0xbf   :  { %v358_v39 = vadd.f32 %v1135_v40, %v357_v37  ;;  %v398_v41 = vadd.f32 %v1135_v40, %v397_v38 }
  0xc0   :  { %vm542_vm14 = vcmp.ge.f32.partialorder %v435_v35, 0.0  ;;  %v606_v42 = vmul.f32 0.2, %v435_v35  ;;  %vm558_vm15 = vcmp.ge.f32.partialorder %v475_v36, 0.0  ;;  %v622_v43 = vmul.f32 0.2, %v475_v36 }
  0xc1   :  { %vm511_vm0 = vcmp.ge.f32.partialorder %v358_v39, 0.0  ;;  %v575_v44 = vmul.f32 0.2, %v358_v39  ;;  %vm527_vm1 = vcmp.ge.f32.partialorder %v398_v41, 0.0  ;;  %v591_v45 = vmul.f32 0.2, %v398_v41 }
  0xc2   :  { %v670_v46 = vsel %vm542_vm14, %v435_v35, %v606_v42  ;;  %v686_v47 = vsel %vm558_vm15, %v475_v36, %v622_v43 }
  0xc3   :  { %734 = vst [vmem:[%s1396_s3 + $0x118] sm:$0xff] %v670_v46  ;;  %v639_v48 = vsel %vm511_vm0, %v358_v39, %v575_v44  ;;  %v655_v49 = vsel %vm527_vm1, %v398_v41, %v591_v45 }
  0xc4   :  { %750 = vst [vmem:[%s1396_s3 + $0x198] sm:$0xff] %v686_v47 }
  0xc5   :  { %703 = vst [vmem:[%s1396_s3 + $0x20] sm:$0xff] %v639_v48  ;;  %v437_v50 = vpop.f32.mrf.mxu2  ;;  %v477_v51 = vpop.f32.mrf.mxu3 }
  0xc6   :  { %719 = vst [vmem:[%s1396_s3 + $0xa0] sm:$0xff] %v655_v49  ;;  %v438_v52 = vadd.f32 %v1135_v40, %v437_v50  ;;  %v478_v53 = vadd.f32 %v1135_v40, %v477_v51  ;;  %v359_v54 = vpop.f32.mrf.mxu0  ;;  %v399_v55 = vpop.f32.mrf.mxu1 }
  0xc7   :  { %v360_v56 = vadd.f32 %v1135_v40, %v359_v54  ;;  %v400_v57 = vadd.f32 %v1135_v40, %v399_v55 }
  0xc8   :  { %vm543_vm2 = vcmp.ge.f32.partialorder %v438_v52, 0.0  ;;  %v607_v58 = vmul.f32 0.2, %v438_v52  ;;  %vm559_vm3 = vcmp.ge.f32.partialorder %v478_v53, 0.0  ;;  %v623_v59 = vmul.f32 0.2, %v478_v53 }
  0xc9   :  { %vm512_vm4 = vcmp.ge.f32.partialorder %v360_v56, 0.0  ;;  %v576_v60 = vmul.f32 0.2, %v360_v56  ;;  %vm528_vm5 = vcmp.ge.f32.partialorder %v400_v57, 0.0  ;;  %v592_v61 = vmul.f32 0.2, %v400_v57 }
  0xca   :  { %v671_v62 = vsel %vm543_vm2, %v438_v52, %v607_v58  ;;  %v687_v63 = vsel %vm559_vm3, %v478_v53, %v623_v59 }
  0xcb   :  { %735 = vst [vmem:[%s1396_s3 + $0x120] sm:$0xff] %v671_v62  ;;  %v640_v0 = vsel %vm512_vm4, %v360_v56, %v576_v60  ;;  %v656_v1 = vsel %vm528_vm5, %v400_v57, %v592_v61 }
  0xcc   :  { %751 = vst [vmem:[%s1396_s3 + $0x1a0] sm:$0xff] %v687_v63 }
  0xcd   :  { %704 = vst [vmem:[%s1396_s3 + $0x28] sm:$0xff] %v640_v0  ;;  %v439_v2 = vpop.f32.mrf.mxu2  ;;  %v479_v3 = vpop.f32.mrf.mxu3 }
  0xce   :  { %720 = vst [vmem:[%s1396_s3 + $0xa8] sm:$0xff] %v656_v1  ;;  %v440_v4 = vadd.f32 %v1135_v40, %v439_v2  ;;  %v480_v5 = vadd.f32 %v1135_v40, %v479_v3  ;;  %v362_v6 = vpop.f32.mrf.mxu0  ;;  %v402_v7 = vpop.f32.mrf.mxu1 }
  0xcf   :  { %v363_v8 = vadd.f32 %v1135_v40, %v362_v6  ;;  %v403_v9 = vadd.f32 %v1135_v40, %v402_v7 }
  0xd0   :  { %vm544_vm6 = vcmp.ge.f32.partialorder %v440_v4, 0.0  ;;  %v608_v10 = vmul.f32 0.2, %v440_v4  ;;  %vm560_vm7 = vcmp.ge.f32.partialorder %v480_v5, 0.0  ;;  %v624_v11 = vmul.f32 0.2, %v480_v5 }
  0xd1   :  { %vm513_vm8 = vcmp.ge.f32.partialorder %v363_v8, 0.0  ;;  %v577_v12 = vmul.f32 0.2, %v363_v8  ;;  %vm529_vm9 = vcmp.ge.f32.partialorder %v403_v9, 0.0  ;;  %v593_v13 = vmul.f32 0.2, %v403_v9 }
  0xd2   :  { %v672_v14 = vsel %vm544_vm6, %v440_v4, %v608_v10  ;;  %v688_v15 = vsel %vm560_vm7, %v480_v5, %v624_v11 }
  0xd3   :  { %736 = vst [vmem:[%s1396_s3 + $0x128] sm:$0xff] %v672_v14  ;;  %v641_v16 = vsel %vm513_vm8, %v363_v8, %v577_v12  ;;  %v657_v17 = vsel %vm529_vm9, %v403_v9, %v593_v13 }
  0xd4   :  { %752 = vst [vmem:[%s1396_s3 + $0x1a8] sm:$0xff] %v688_v15 }
  0xd5   :  { %705 = vst [vmem:[%s1396_s3 + $0x30] sm:$0xff] %v641_v16  ;;  %v442_v18 = vpop.f32.mrf.mxu2  ;;  %v482_v19 = vpop.f32.mrf.mxu3 }
  0xd6   :  { %721 = vst [vmem:[%s1396_s3 + $0xb0] sm:$0xff] %v657_v17  ;;  %v443_v20 = vadd.f32 %v1135_v40, %v442_v18  ;;  %v483_v21 = vadd.f32 %v1135_v40, %v482_v19  ;;  %v364_v22 = vpop.f32.mrf.mxu0  ;;  %v404_v23 = vpop.f32.mrf.mxu1 }
  0xd7   :  { %v365_v24 = vadd.f32 %v1135_v40, %v364_v22  ;;  %v405_v25 = vadd.f32 %v1135_v40, %v404_v23 }
  0xd8   :  { %vm545_vm10 = vcmp.ge.f32.partialorder %v443_v20, 0.0  ;;  %v609_v26 = vmul.f32 0.2, %v443_v20  ;;  %vm561_vm11 = vcmp.ge.f32.partialorder %v483_v21, 0.0  ;;  %v625_v27 = vmul.f32 0.2, %v483_v21 }
  0xd9   :  { %vm514_vm12 = vcmp.ge.f32.partialorder %v365_v24, 0.0  ;;  %v578_v28 = vmul.f32 0.2, %v365_v24  ;;  %vm530_vm13 = vcmp.ge.f32.partialorder %v405_v25, 0.0  ;;  %v594_v29 = vmul.f32 0.2, %v405_v25 }
  0xda   :  { %v673_v30 = vsel %vm545_vm10, %v443_v20, %v609_v26  ;;  %v689_v31 = vsel %vm561_vm11, %v483_v21, %v625_v27 }
  0xdb   :  { %737 = vst [vmem:[%s1396_s3 + $0x130] sm:$0xff] %v673_v30  ;;  %v642_v32 = vsel %vm514_vm12, %v365_v24, %v578_v28  ;;  %v658_v33 = vsel %vm530_vm13, %v405_v25, %v594_v29 }
  0xdc   :  { %753 = vst [vmem:[%s1396_s3 + $0x1b0] sm:$0xff] %v689_v31 }
  0xdd   :  { %706 = vst [vmem:[%s1396_s3 + $0x38] sm:$0xff] %v642_v32  ;;  %v444_v34 = vpop.f32.mrf.mxu2  ;;  %v484_v35 = vpop.f32.mrf.mxu3 }
  0xde   :  { %722 = vst [vmem:[%s1396_s3 + $0xb8] sm:$0xff] %v658_v33  ;;  %v445_v36 = vadd.f32 %v1135_v40, %v444_v34  ;;  %v485_v37 = vadd.f32 %v1135_v40, %v484_v35  ;;  %v367_v38 = vpop.f32.mrf.mxu0  ;;  %v407_v39 = vpop.f32.mrf.mxu1 }
  0xdf   :  { %v368_v41 = vadd.f32 %v1135_v40, %v367_v38  ;;  %v408_v42 = vadd.f32 %v1135_v40, %v407_v39 }
  0xe0   :  { %vm546_vm14 = vcmp.ge.f32.partialorder %v445_v36, 0.0  ;;  %v610_v43 = vmul.f32 0.2, %v445_v36  ;;  %vm562_vm15 = vcmp.ge.f32.partialorder %v485_v37, 0.0  ;;  %v626_v44 = vmul.f32 0.2, %v485_v37 }
  0xe1   :  { %vm515_vm0 = vcmp.ge.f32.partialorder %v368_v41, 0.0  ;;  %v579_v45 = vmul.f32 0.2, %v368_v41  ;;  %vm531_vm1 = vcmp.ge.f32.partialorder %v408_v42, 0.0  ;;  %v595_v46 = vmul.f32 0.2, %v408_v42 }
  0xe2   :  { %v674_v47 = vsel %vm546_vm14, %v445_v36, %v610_v43  ;;  %v690_v48 = vsel %vm562_vm15, %v485_v37, %v626_v44 }
  0xe3   :  { %738 = vst [vmem:[%s1396_s3 + $0x138] sm:$0xff] %v674_v47  ;;  %v643_v49 = vsel %vm515_vm0, %v368_v41, %v579_v45  ;;  %v659_v50 = vsel %vm531_vm1, %v408_v42, %v595_v46 }
  0xe4   :  { %754 = vst [vmem:[%s1396_s3 + $0x1b8] sm:$0xff] %v690_v48 }
  0xe5   :  { %707 = vst [vmem:[%s1396_s3 + $0x40] sm:$0xff] %v643_v49  ;;  %v447_v51 = vpop.f32.mrf.mxu2  ;;  %v487_v52 = vpop.f32.mrf.mxu3 }
  0xe6   :  { %723 = vst [vmem:[%s1396_s3 + $0xc0] sm:$0xff] %v659_v50  ;;  %v448_v53 = vadd.f32 %v1135_v40, %v447_v51  ;;  %v488_v54 = vadd.f32 %v1135_v40, %v487_v52  ;;  %v369_v55 = vpop.f32.mrf.mxu0  ;;  %v409_v56 = vpop.f32.mrf.mxu1 }
  0xe7   :  { %v370_v57 = vadd.f32 %v1135_v40, %v369_v55  ;;  %v410_v58 = vadd.f32 %v1135_v40, %v409_v56 }
  0xe8   :  { %vm547_vm2 = vcmp.ge.f32.partialorder %v448_v53, 0.0  ;;  %v611_v59 = vmul.f32 0.2, %v448_v53  ;;  %vm563_vm3 = vcmp.ge.f32.partialorder %v488_v54, 0.0  ;;  %v627_v60 = vmul.f32 0.2, %v488_v54 }
  0xe9   :  { %vm516_vm4 = vcmp.ge.f32.partialorder %v370_v57, 0.0  ;;  %v580_v61 = vmul.f32 0.2, %v370_v57  ;;  %vm532_vm5 = vcmp.ge.f32.partialorder %v410_v58, 0.0  ;;  %v596_v62 = vmul.f32 0.2, %v410_v58 }
  0xea   :  { %v675_v63 = vsel %vm547_vm2, %v448_v53, %v611_v59  ;;  %v691_v0 = vsel %vm563_vm3, %v488_v54, %v627_v60 }
  0xeb   :  { %739 = vst [vmem:[%s1396_s3 + $0x140] sm:$0xff] %v675_v63  ;;  %v644_v1 = vsel %vm516_vm4, %v370_v57, %v580_v61  ;;  %v660_v2 = vsel %vm532_vm5, %v410_v58, %v596_v62 }
  0xec   :  { %755 = vst [vmem:[%s1396_s3 + $0x1c0] sm:$0xff] %v691_v0 }
  0xed   :  { %708 = vst [vmem:[%s1396_s3 + $0x48] sm:$0xff] %v644_v1  ;;  %v449_v3 = vpop.f32.mrf.mxu2  ;;  %v489_v4 = vpop.f32.mrf.mxu3 }
  0xee   :  { %724 = vst [vmem:[%s1396_s3 + $0xc8] sm:$0xff] %v660_v2  ;;  %v450_v5 = vadd.f32 %v1135_v40, %v449_v3  ;;  %v490_v6 = vadd.f32 %v1135_v40, %v489_v4  ;;  %v372_v7 = vpop.f32.mrf.mxu0  ;;  %v412_v8 = vpop.f32.mrf.mxu1 }
  0xef   :  { %v373_v9 = vadd.f32 %v1135_v40, %v372_v7  ;;  %v413_v10 = vadd.f32 %v1135_v40, %v412_v8 }
  0xf0   :  { %vm548_vm6 = vcmp.ge.f32.partialorder %v450_v5, 0.0  ;;  %v612_v11 = vmul.f32 0.2, %v450_v5  ;;  %vm564_vm7 = vcmp.ge.f32.partialorder %v490_v6, 0.0  ;;  %v628_v12 = vmul.f32 0.2, %v490_v6 }
  0xf1   :  { %vm517_vm8 = vcmp.ge.f32.partialorder %v373_v9, 0.0  ;;  %v581_v13 = vmul.f32 0.2, %v373_v9  ;;  %vm533_vm9 = vcmp.ge.f32.partialorder %v413_v10, 0.0  ;;  %v597_v14 = vmul.f32 0.2, %v413_v10 }
  0xf2   :  { %v676_v15 = vsel %vm548_vm6, %v450_v5, %v612_v11  ;;  %v692_v16 = vsel %vm564_vm7, %v490_v6, %v628_v12 }
  0xf3   :  { %740 = vst [vmem:[%s1396_s3 + $0x148] sm:$0xff] %v676_v15  ;;  %v645_v17 = vsel %vm517_vm8, %v373_v9, %v581_v13  ;;  %v661_v18 = vsel %vm533_vm9, %v413_v10, %v597_v14 }
  0xf4   :  { %756 = vst [vmem:[%s1396_s3 + $0x1c8] sm:$0xff] %v692_v16 }
  0xf5   :  { %709 = vst [vmem:[%s1396_s3 + $0x50] sm:$0xff] %v645_v17  ;;  %v452_v19 = vpop.f32.mrf.mxu2  ;;  %v492_v20 = vpop.f32.mrf.mxu3 }
  0xf6   :  { %725 = vst [vmem:[%s1396_s3 + $0xd0] sm:$0xff] %v661_v18  ;;  %v453_v21 = vadd.f32 %v1135_v40, %v452_v19  ;;  %v493_v22 = vadd.f32 %v1135_v40, %v492_v20  ;;  %v374_v23 = vpop.f32.mrf.mxu0  ;;  %v414_v24 = vpop.f32.mrf.mxu1 }
  0xf7   :  { %v375_v25 = vadd.f32 %v1135_v40, %v374_v23  ;;  %v415_v26 = vadd.f32 %v1135_v40, %v414_v24 }
  0xf8   :  { %vm549_vm10 = vcmp.ge.f32.partialorder %v453_v21, 0.0  ;;  %v613_v27 = vmul.f32 0.2, %v453_v21  ;;  %vm565_vm11 = vcmp.ge.f32.partialorder %v493_v22, 0.0  ;;  %v629_v28 = vmul.f32 0.2, %v493_v22 }
  0xf9   :  { %vm518_vm12 = vcmp.ge.f32.partialorder %v375_v25, 0.0  ;;  %v582_v29 = vmul.f32 0.2, %v375_v25  ;;  %vm534_vm13 = vcmp.ge.f32.partialorder %v415_v26, 0.0  ;;  %v598_v30 = vmul.f32 0.2, %v415_v26 }
  0xfa   :  { %v677_v31 = vsel %vm549_vm10, %v453_v21, %v613_v27  ;;  %v693_v32 = vsel %vm565_vm11, %v493_v22, %v629_v28 }
  0xfb   :  { %741 = vst [vmem:[%s1396_s3 + $0x150] sm:$0xff] %v677_v31  ;;  %v646_v33 = vsel %vm518_vm12, %v375_v25, %v582_v29  ;;  %v662_v34 = vsel %vm534_vm13, %v415_v26, %v598_v30 }
  0xfc   :  { %757 = vst [vmem:[%s1396_s3 + $0x1d0] sm:$0xff] %v693_v32 }
  0xfd   :  { %710 = vst [vmem:[%s1396_s3 + $0x58] sm:$0xff] %v646_v33  ;;  %v454_v35 = vpop.f32.mrf.mxu2  ;;  %v494_v36 = vpop.f32.mrf.mxu3 }
  0xfe   :  { %726 = vst [vmem:[%s1396_s3 + $0xd8] sm:$0xff] %v662_v34  ;;  %v455_v37 = vadd.f32 %v1135_v40, %v454_v35  ;;  %v495_v38 = vadd.f32 %v1135_v40, %v494_v36  ;;  %v377_v39 = vpop.f32.mrf.mxu0  ;;  %v417_v41 = vpop.f32.mrf.mxu1 }
  0xff   :  { %v378_v42 = vadd.f32 %v1135_v40, %v377_v39  ;;  %v418_v43 = vadd.f32 %v1135_v40, %v417_v41 }
 0x100   :  { %vm550_vm14 = vcmp.ge.f32.partialorder %v455_v37, 0.0  ;;  %v614_v44 = vmul.f32 0.2, %v455_v37  ;;  %vm566_vm15 = vcmp.ge.f32.partialorder %v495_v38, 0.0  ;;  %v630_v45 = vmul.f32 0.2, %v495_v38 }
 0x101   :  { %vm519_vm0 = vcmp.ge.f32.partialorder %v378_v42, 0.0  ;;  %v583_v46 = vmul.f32 0.2, %v378_v42  ;;  %vm535_vm1 = vcmp.ge.f32.partialorder %v418_v43, 0.0  ;;  %v599_v47 = vmul.f32 0.2, %v418_v43 }
 0x102   :  { %v678_v48 = vsel %vm550_vm14, %v455_v37, %v614_v44  ;;  %v694_v49 = vsel %vm566_vm15, %v495_v38, %v630_v45 }
 0x103   :  { %742 = vst [vmem:[%s1396_s3 + $0x158] sm:$0xff] %v678_v48  ;;  %v647_v50 = vsel %vm519_vm0, %v378_v42, %v583_v46  ;;  %v663_v51 = vsel %vm535_vm1, %v418_v43, %v599_v47 }
 0x104   :  { %758 = vst [vmem:[%s1396_s3 + $0x1d8] sm:$0xff] %v694_v49 }
 0x105   :  { %711 = vst [vmem:[%s1396_s3 + $0x60] sm:$0xff] %v647_v50  ;;  %v457_v52 = vpop.f32.mrf.mxu2  ;;  %v497_v53 = vpop.f32.mrf.mxu3 }
 0x106   :  { %727 = vst [vmem:[%s1396_s3 + $0xe0] sm:$0xff] %v663_v51  ;;  %v458_v54 = vadd.f32 %v1135_v40, %v457_v52  ;;  %v498_v55 = vadd.f32 %v1135_v40, %v497_v53  ;;  %v379_v56 = vpop.f32.mrf.mxu0  ;;  %v419_v57 = vpop.f32.mrf.mxu1 }
 0x107   :  { %v380_v58 = vadd.f32 %v1135_v40, %v379_v56  ;;  %v420_v59 = vadd.f32 %v1135_v40, %v419_v57 }
 0x108   :  { %vm551_vm2 = vcmp.ge.f32.partialorder %v458_v54, 0.0  ;;  %v615_v60 = vmul.f32 0.2, %v458_v54  ;;  %vm567_vm3 = vcmp.ge.f32.partialorder %v498_v55, 0.0  ;;  %v631_v61 = vmul.f32 0.2, %v498_v55 }
 0x109   :  { %vm520_vm4 = vcmp.ge.f32.partialorder %v380_v58, 0.0  ;;  %v584_v62 = vmul.f32 0.2, %v380_v58  ;;  %vm536_vm5 = vcmp.ge.f32.partialorder %v420_v59, 0.0  ;;  %v600_v63 = vmul.f32 0.2, %v420_v59 }
 0x10a   :  { %v679_v0 = vsel %vm551_vm2, %v458_v54, %v615_v60  ;;  %v695_v1 = vsel %vm567_vm3, %v498_v55, %v631_v61 }
 0x10b   :  { %743 = vst [vmem:[%s1396_s3 + $0x160] sm:$0xff] %v679_v0  ;;  %v648_v2 = vsel %vm520_vm4, %v380_v58, %v584_v62  ;;  %v664_v3 = vsel %vm536_vm5, %v420_v59, %v600_v63 }
 0x10c   :  { %759 = vst [vmem:[%s1396_s3 + $0x1e0] sm:$0xff] %v695_v1 }
 0x10d   :  { %712 = vst [vmem:[%s1396_s3 + $0x68] sm:$0xff] %v648_v2  ;;  %v459_v4 = vpop.f32.mrf.mxu2  ;;  %v499_v5 = vpop.f32.mrf.mxu3 }
 0x10e   :  { %728 = vst [vmem:[%s1396_s3 + $0xe8] sm:$0xff] %v664_v3  ;;  %v460_v6 = vadd.f32 %v1135_v40, %v459_v4  ;;  %v500_v7 = vadd.f32 %v1135_v40, %v499_v5  ;;  %v382_v8 = vpop.f32.mrf.mxu0  ;;  %v422_v9 = vpop.f32.mrf.mxu1 }
 0x10f   :  { %v383_v10 = vadd.f32 %v1135_v40, %v382_v8  ;;  %v423_v11 = vadd.f32 %v1135_v40, %v422_v9 }
 0x110   :  { %vm552_vm6 = vcmp.ge.f32.partialorder %v460_v6, 0.0  ;;  %v616_v12 = vmul.f32 0.2, %v460_v6  ;;  %vm568_vm7 = vcmp.ge.f32.partialorder %v500_v7, 0.0  ;;  %v632_v13 = vmul.f32 0.2, %v500_v7 }
 0x111   :  { %vm521_vm8 = vcmp.ge.f32.partialorder %v383_v10, 0.0  ;;  %v585_v14 = vmul.f32 0.2, %v383_v10  ;;  %vm537_vm9 = vcmp.ge.f32.partialorder %v423_v11, 0.0  ;;  %v601_v15 = vmul.f32 0.2, %v423_v11 }
 0x112   :  { %v680_v16 = vsel %vm552_vm6, %v460_v6, %v616_v12  ;;  %v696_v17 = vsel %vm568_vm7, %v500_v7, %v632_v13 }
 0x113   :  { %744 = vst [vmem:[%s1396_s3 + $0x168] sm:$0xff] %v680_v16  ;;  %v649_v18 = vsel %vm521_vm8, %v383_v10, %v585_v14  ;;  %v665_v19 = vsel %vm537_vm9, %v423_v11, %v601_v15 }
 0x114   :  { %760 = vst [vmem:[%s1396_s3 + $0x1e8] sm:$0xff] %v696_v17 }
 0x115   :  { %713 = vst [vmem:[%s1396_s3 + $0x70] sm:$0xff] %v649_v18  ;;  %v462_v20 = vpop.f32.mrf.mxu2  ;;  %v502_v21 = vpop.f32.mrf.mxu3 }
 0x116   :  { %729 = vst [vmem:[%s1396_s3 + $0xf0] sm:$0xff] %v665_v19  ;;  %v463_v22 = vadd.f32 %v1135_v40, %v462_v20  ;;  %v503_v23 = vadd.f32 %v1135_v40, %v502_v21  ;;  %v384_v24 = vpop.f32.mrf.mxu0  ;;  %v424_v25 = vpop.f32.mrf.mxu1 }
 0x117   :  { %v385_v26 = vadd.f32 %v1135_v40, %v384_v24  ;;  %v425_v27 = vadd.f32 %v1135_v40, %v424_v25 }
 0x118   :  { %vm553_vm10 = vcmp.ge.f32.partialorder %v463_v22, 0.0  ;;  %v617_v28 = vmul.f32 0.2, %v463_v22  ;;  %vm569_vm11 = vcmp.ge.f32.partialorder %v503_v23, 0.0  ;;  %v633_v29 = vmul.f32 0.2, %v503_v23 }
 0x119   :  { %vm522_vm12 = vcmp.ge.f32.partialorder %v385_v26, 0.0  ;;  %v586_v30 = vmul.f32 0.2, %v385_v26  ;;  %vm538_vm13 = vcmp.ge.f32.partialorder %v425_v27, 0.0  ;;  %v602_v31 = vmul.f32 0.2, %v425_v27 }
 0x11a   :  { %v681_v32 = vsel %vm553_vm10, %v463_v22, %v617_v28  ;;  %v697_v33 = vsel %vm569_vm11, %v503_v23, %v633_v29 }
 0x11b   :  { %745 = vst [vmem:[%s1396_s3 + $0x170] sm:$0xff] %v681_v32  ;;  %v650_v34 = vsel %vm522_vm12, %v385_v26, %v586_v30  ;;  %v666_v35 = vsel %vm538_vm13, %v425_v27, %v602_v31 }
 0x11c   :  { %761 = vst [vmem:[%s1396_s3 + $0x1f0] sm:$0xff] %v697_v33 }
 0x11d   :  { %714 = vst [vmem:[%s1396_s3 + $0x78] sm:$0xff] %v650_v34  ;;  %v464_v36 = vpop.f32.mrf.mxu2  ;;  %v504_v37 = vpop.f32.mrf.mxu3 }
 0x11e   :  { %730 = vst [vmem:[%s1396_s3 + $0xf8] sm:$0xff] %v666_v35  ;;  %v465_v38 = vadd.f32 %v1135_v40, %v464_v36  ;;  %v505_v39 = vadd.f32 %v1135_v40, %v504_v37 }
 0x120   :  { %vm554_vm14 = vcmp.ge.f32.partialorder %v465_v38, 0.0  ;;  %v618_v41 = vmul.f32 0.2, %v465_v38  ;;  %vm570_vm15 = vcmp.ge.f32.partialorder %v505_v39, 0.0  ;;  %v634_v42 = vmul.f32 0.2, %v505_v39 }
 0x122   :  { %v682_v43 = vsel %vm554_vm14, %v465_v38, %v618_v41  ;;  %v698_v44 = vsel %vm570_vm15, %v505_v39, %v634_v42 }
 0x123   :  { %746 = vst [vmem:[%s1396_s3 + $0x178] sm:$0xff] %v682_v43 }
 0x124   :  { %762 = vst [vmem:[%s1396_s3 + $0x1f8] sm:$0xff] %v698_v44 }

// kernel: simple_discriminator_forward.11
= control target key start
LH: loop header
LB: loop body
LE: loop exit
PB: predicated region body
PF: predicated region fallthrough
CT: control target
= control target key end

     0   :  { %s1461_s1 = inlined_call_operand.vmem [shape: bf16[512,128], index: 1, kind: input, shape index: {}]   ;;  %s1462_s0 = inlined_call_operand.vmem [shape: bf16[128,512], index: 0, kind: input, shape index: {}]   ;;  %s1463_s2 = inlined_call_operand.vmem [shape: f32[128,128], index: 2, kind: output, shape index: {0}]   ;;  %s1464_s3 = inlined_call_operand.vmem [shape: f32[2,128], index: 3, kind: output, shape index: {1}]  }
   0x1   :  { %v1045_v0 = vld [vmem:[%s1461_s1 + $0x38] sm:$0xff]  ;;  %v1044_v4 = vld [vmem:[%s1461_s1 + $0x30] sm:$0xff]  ;;  %v1043_v8 = vld [vmem:[%s1461_s1 + $0x28] sm:$0xff] }
   0x2   :  { %v1053_v1 = vld [vmem:[%s1461_s1 + $0x78] sm:$0xff]  ;;  %466 = vmatpush.bf16.msra.mxu0 %v1045_v0  ;;  %v1052_v5 = vld [vmem:[%s1461_s1 + $0x70] sm:$0xff]  ;;  %v1051_v9 = vld [vmem:[%s1461_s1 + $0x68] sm:$0xff] }
   0x3   :  { %v1061_v2 = vld [vmem:[%s1461_s1 + $0xb8] sm:$0xff]  ;;  %515 = vmatpush.bf16.msra.mxu1 %v1053_v1  ;;  %v1060_v6 = vld [vmem:[%s1461_s1 + $0xb0] sm:$0xff]  ;;  %v1059_v10 = vld [vmem:[%s1461_s1 + $0xa8] sm:$0xff] }
   0x4   :  { %v1069_v3 = vld [vmem:[%s1461_s1 + $0xf8] sm:$0xff]  ;;  %564 = vmatpush.bf16.msra.mxu2 %v1061_v2  ;;  %v1068_v7 = vld [vmem:[%s1461_s1 + $0xf0] sm:$0xff]  ;;  %v1067_v11 = vld [vmem:[%s1461_s1 + $0xe8] sm:$0xff] }
   0x5   :  { %613 = vmatpush.bf16.msra.mxu3 %v1069_v3  ;;  %v1042_v12 = vld [vmem:[%s1461_s1 + $0x20] sm:$0xff]  ;;  %v1041_v16 = vld [vmem:[%s1461_s1 + $0x18] sm:$0xff]  ;;  %v1040_v20 = vld [vmem:[%s1461_s1 + $0x10] sm:$0xff] }
   0x6   :  { %467 = vmatpush.bf16.msra.mxu0 %v1044_v4  ;;  %v1050_v13 = vld [vmem:[%s1461_s1 + $0x60] sm:$0xff]  ;;  %v1049_v17 = vld [vmem:[%s1461_s1 + $0x58] sm:$0xff]  ;;  %v1048_v21 = vld [vmem:[%s1461_s1 + $0x50] sm:$0xff] }
   0x7   :  { %516 = vmatpush.bf16.msra.mxu1 %v1052_v5  ;;  %v1058_v14 = vld [vmem:[%s1461_s1 + $0xa0] sm:$0xff]  ;;  %v1057_v18 = vld [vmem:[%s1461_s1 + $0x98] sm:$0xff]  ;;  %v1056_v22 = vld [vmem:[%s1461_s1 + $0x90] sm:$0xff] }
   0x8   :  { %565 = vmatpush.bf16.msra.mxu2 %v1060_v6  ;;  %v1066_v15 = vld [vmem:[%s1461_s1 + $0xe0] sm:$0xff]  ;;  %v1065_v19 = vld [vmem:[%s1461_s1 + $0xd8] sm:$0xff]  ;;  %v1064_v23 = vld [vmem:[%s1461_s1 + $0xd0] sm:$0xff] }
   0x9   :  { %614 = vmatpush.bf16.msra.mxu3 %v1068_v7  ;;  %v1039_v24 = vld [vmem:[%s1461_s1 + $0x8] sm:$0xff]  ;;  %v1038_v28 = vld [vmem:[%s1461_s1] sm:$0xff]  ;;  %v1008_v33 = vld [vmem:[%s1462_s0 + $0xc] sm:$0xf0] }
   0xa   :  { %468 = vmatpush.bf16.msra.mxu0 %v1043_v8  ;;  %v1047_v25 = vld [vmem:[%s1461_s1 + $0x48] sm:$0xff]  ;;  %v1046_v29 = vld [vmem:[%s1461_s1 + $0x40] sm:$0xff]  ;;  %v754_v35 = vld [vmem:[%s1462_s0 + $0x10] sm:$0xf0] }
   0xb   :  { %517 = vmatpush.bf16.msra.mxu1 %v1051_v9  ;;  %v1055_v26 = vld [vmem:[%s1461_s1 + $0x88] sm:$0xff]  ;;  %v1054_v30 = vld [vmem:[%s1461_s1 + $0x80] sm:$0xff]  ;;  %v1009_v37 = vld [vmem:[%s1462_s0 + $0x14] sm:$0xf0] }
   0xc   :  { %566 = vmatpush.bf16.msra.mxu2 %v1059_v10  ;;  %v1063_v27 = vld [vmem:[%s1461_s1 + $0xc8] sm:$0xff]  ;;  %v1062_v31 = vld [vmem:[%s1461_s1 + $0xc0] sm:$0xff]  ;;  %v762_v39 = vld [vmem:[%s1462_s0 + $0x18] sm:$0xf0] }
   0xd   :  { %615 = vmatpush.bf16.msra.mxu3 %v1067_v11  ;;  %v752_v32 = vld [vmem:[%s1462_s0] sm:$0xf]  ;;  %v1006_v34 = vld [vmem:[%s1462_s0 + $0x4] sm:$0xf]  ;;  %v760_v36 = vld [vmem:[%s1462_s0 + $0x8] sm:$0xf] }
   0xe   :  { %469 = vmatpush.bf16.msra.mxu0 %v1042_v12  ;;  %v1007_v38 = vld [vmem:[%s1462_s0 + $0xc] sm:$0xf]  ;;  %v753_v40 = vor.u32 %v1008_v33, %v752_v32  ;;  %v757_v41 = vor.u32 %v1006_v34, %v754_v35  ;;  %v761_v42 = vor.u32 %v1009_v37, %v760_v36  ;;  %v768_v44 = vld [vmem:[%s1462_s0 + $0x20] sm:$0xf]  ;;  %v1012_v45 = vld [vmem:[%s1462_s0 + $0x2c] sm:$0xf0] }
   0xf   :  { %518 = vmatpush.bf16.msra.mxu1 %v1050_v13  ;;  %v765_v43 = vor.u32 %v1007_v38, %v762_v39  ;;  %v1010_v46 = vld [vmem:[%s1462_s0 + $0x24] sm:$0xf]  ;;  %v770_v47 = vld [vmem:[%s1462_s0 + $0x30] sm:$0xf0]  ;;  %v776_v48 = vld [vmem:[%s1462_s0 + $0x28] sm:$0xf]  ;;  %v769_v52 = vor.u32 %v1012_v45, %v768_v44 }
  0x10   :  { %567 = vmatpush.bf16.msra.mxu2 %v1058_v14  ;;  %v1013_v49 = vld [vmem:[%s1462_s0 + $0x34] sm:$0xf0]  ;;  %v1011_v50 = vld [vmem:[%s1462_s0 + $0x2c] sm:$0xf]  ;;  %v778_v51 = vld [vmem:[%s1462_s0 + $0x38] sm:$0xf0]  ;;  %v773_v53 = vor.u32 %v1010_v46, %v770_v47 }
  0x11   :  { %616 = vmatpush.bf16.msra.mxu3 %v1066_v15  ;;  %v777_v54 = vor.u32 %v1013_v49, %v776_v48  ;;  %v781_v55 = vor.u32 %v1011_v50, %v778_v51  ;;  %v784_v56 = vld [vmem:[%s1462_s0 + $0x40] sm:$0xf]  ;;  %v1016_v57 = vld [vmem:[%s1462_s0 + $0x4c] sm:$0xf0]  ;;  %v1014_v58 = vld [vmem:[%s1462_s0 + $0x44] sm:$0xf] }
  0x12   :  { %470 = vmatpush.bf16.msra.mxu0 %v1041_v16  ;;  %v786_v59 = vld [vmem:[%s1462_s0 + $0x50] sm:$0xf0]  ;;  %v792_v60 = vld [vmem:[%s1462_s0 + $0x48] sm:$0xf]  ;;  %v1017_v61 = vld [vmem:[%s1462_s0 + $0x54] sm:$0xf0]  ;;  %v785_v0 = vor.u32 %v1016_v57, %v784_v56 }
  0x13   :  { %519 = vmatpush.bf16.msra.mxu1 %v1049_v17  ;;  %v1015_v62 = vld [vmem:[%s1462_s0 + $0x4c] sm:$0xf]  ;;  %v794_v63 = vld [vmem:[%s1462_s0 + $0x58] sm:$0xf0]  ;;  %v789_v1 = vor.u32 %v1014_v58, %v786_v59  ;;  %v793_v2 = vor.u32 %v1017_v61, %v792_v60  ;;  %v800_v4 = vld [vmem:[%s1462_s0 + $0x60] sm:$0xf] }
  0x14   :  { %568 = vmatpush.bf16.msra.mxu2 %v1057_v18  ;;  %v797_v3 = vor.u32 %v1015_v62, %v794_v63  ;;  %v1020_v5 = vld [vmem:[%s1462_s0 + $0x6c] sm:$0xf0]  ;;  %v1018_v6 = vld [vmem:[%s1462_s0 + $0x64] sm:$0xf]  ;;  %v802_v7 = vld [vmem:[%s1462_s0 + $0x70] sm:$0xf0] }
  0x15   :  { %617 = vmatpush.bf16.msra.mxu3 %v1065_v19  ;;  %v808_v8 = vld [vmem:[%s1462_s0 + $0x68] sm:$0xf]  ;;  %v1021_v9 = vld [vmem:[%s1462_s0 + $0x74] sm:$0xf0]  ;;  %v1019_v10 = vld [vmem:[%s1462_s0 + $0x6c] sm:$0xf]  ;;  %v801_v12 = vor.u32 %v1020_v5, %v800_v4  ;;  %v805_v13 = vor.u32 %v1018_v6, %v802_v7 }
  0x16   :  { %471 = vmatpush.bf16.msra.mxu0 %v1040_v20  ;;  %v810_v11 = vld [vmem:[%s1462_s0 + $0x78] sm:$0xf0]  ;;  %v809_v14 = vor.u32 %v1021_v9, %v808_v8  ;;  %v816_v16 = vld [vmem:[%s1462_s0 + $0x80] sm:$0xf]  ;;  %v1024_v17 = vld [vmem:[%s1462_s0 + $0x8c] sm:$0xf0] }
  0x17   :  { %520 = vmatpush.bf16.msra.mxu1 %v1048_v21  ;;  %v813_v15 = vor.u32 %v1019_v10, %v810_v11  ;;  %v1022_v18 = vld [vmem:[%s1462_s0 + $0x84] sm:$0xf]  ;;  %v818_v19 = vld [vmem:[%s1462_s0 + $0x90] sm:$0xf0]  ;;  %v824_v20 = vld [vmem:[%s1462_s0 + $0x88] sm:$0xf] }
  0x18   :  { %569 = vmatpush.bf16.msra.mxu2 %v1056_v22  ;;  %v1025_v21 = vld [vmem:[%s1462_s0 + $0x94] sm:$0xf0]  ;;  %v1023_v22 = vld [vmem:[%s1462_s0 + $0x8c] sm:$0xf]  ;;  %v840_v32 = vld [vmem:[%s1462_s0 + $0xa8] sm:$0xf] }
  0x19   :  { %618 = vmatpush.bf16.msra.mxu3 %v1064_v23  ;;  %v826_v23 = vld [vmem:[%s1462_s0 + $0x98] sm:$0xf0]  ;;  %v1029_v33 = vld [vmem:[%s1462_s0 + $0xb4] sm:$0xf0]  ;;  %v1027_v34 = vld [vmem:[%s1462_s0 + $0xac] sm:$0xf] }
  0x1a   :  { %472 = vmatpush.bf16.msra.mxu0 %v1039_v24  ;;  %v817_v24 = vor.u32 %v1024_v17, %v816_v16  ;;  %v842_v35 = vld [vmem:[%s1462_s0 + $0xb8] sm:$0xf0]  ;;  %v841_v38 = vor.u32 %v1029_v33, %v840_v32  ;;  %v856_v44 = vld [vmem:[%s1462_s0 + $0xc8] sm:$0xf]  ;;  %v1033_v45 = vld [vmem:[%s1462_s0 + $0xd4] sm:$0xf0] }
  0x1b   :  { %521 = vmatpush.bf16.msra.mxu1 %v1047_v25  ;;  %v821_v25 = vor.u32 %v1022_v18, %v818_v19  ;;  %v845_v39 = vor.u32 %v1027_v34, %v842_v35  ;;  %v1031_v46 = vld [vmem:[%s1462_s0 + $0xcc] sm:$0xf]  ;;  %v858_v47 = vld [vmem:[%s1462_s0 + $0xd8] sm:$0xf0]  ;;  %v857_v50 = vor.u32 %v1033_v45, %v856_v44  ;;  %v872_v56 = vld [vmem:[%s1462_s0 + $0xe8] sm:$0xf] }
  0x1c   :  { %570 = vmatpush.bf16.msra.mxu2 %v1055_v26  ;;  %v825_v26 = vor.u32 %v1025_v21, %v824_v20  ;;  %v861_v51 = vor.u32 %v1031_v46, %v858_v47  ;;  %v1037_v57 = vld [vmem:[%s1462_s0 + $0xf4] sm:$0xf0]  ;;  %v1035_v58 = vld [vmem:[%s1462_s0 + $0xec] sm:$0xf]  ;;  %v874_v59 = vld [vmem:[%s1462_s0 + $0xf8] sm:$0xf0] }
  0x1d   :  { %619 = vmatpush.bf16.msra.mxu3 %v1063_v27  ;;  %v829_v27 = vor.u32 %v1023_v22, %v826_v23  ;;  %v873_v62 = vor.u32 %v1037_v57, %v872_v56  ;;  %v877_v63 = vor.u32 %v1035_v58, %v874_v59 }
  0x1e   :  { %473 = vmatpush.bf16.msra.mxu0 %v1038_v28  ;;  %v832_v28 = vld [vmem:[%s1462_s0 + $0xa0] sm:$0xf] }
  0x1f   :  { %522 = vmatpush.bf16.msra.mxu1 %v1046_v29  ;;  %v1028_v29 = vld [vmem:[%s1462_s0 + $0xac] sm:$0xf0] }
  0x20   :  { %571 = vmatpush.bf16.msra.mxu2 %v1054_v30  ;;  %v1026_v30 = vld [vmem:[%s1462_s0 + $0xa4] sm:$0xf]  ;;  %v833_v36 = vor.u32 %v1028_v29, %v832_v28 }
  0x21   :  { %620 = vmatpush.bf16.msra.mxu3 %v1062_v31  ;;  %474 = vmatmul.bf16.vlgmr.msra.gmra.mxu0 %v753_v40  ;;  %v834_v31 = vld [vmem:[%s1462_s0 + $0xb0] sm:$0xf0]  ;;  %v848_v40 = vld [vmem:[%s1462_s0 + $0xc0] sm:$0xf] }
  0x22   :  { %523 = vmatmul.bf16.vlgmr.msra.gmra.mxu1 %v757_v41  ;;  %v837_v37 = vor.u32 %v1026_v30, %v834_v31  ;;  %v1032_v41 = vld [vmem:[%s1462_s0 + $0xcc] sm:$0xf0] }
  0x23   :  { %572 = vmatmul.bf16.vlgmr.msra.gmra.mxu2 %v761_v42  ;;  %v1030_v42 = vld [vmem:[%s1462_s0 + $0xc4] sm:$0xf]  ;;  %v849_v48 = vor.u32 %v1032_v41, %v848_v40 }
  0x24   :  { %621 = vmatmul.bf16.vlgmr.msra.gmra.mxu3 %v765_v43  ;;  %v850_v43 = vld [vmem:[%s1462_s0 + $0xd0] sm:$0xf0] }
  0x25   :  { %v853_v49 = vor.u32 %v1030_v42, %v850_v43 }
  0x31   :  { %479 = vmatmul.bf16.gmra.mxu0 %v769_v52  ;;  %v864_v52 = vld [vmem:[%s1462_s0 + $0xe0] sm:$0xf] }
  0x32   :  { %528 = vmatmul.bf16.gmra.mxu1 %v773_v53  ;;  %v1036_v53 = vld [vmem:[%s1462_s0 + $0xec] sm:$0xf0] }
  0x33   :  { %577 = vmatmul.bf16.gmra.mxu2 %v777_v54  ;;  %v1034_v54 = vld [vmem:[%s1462_s0 + $0xe4] sm:$0xf]  ;;  %v865_v60 = vor.u32 %v1036_v53, %v864_v52 }
  0x34   :  { %626 = vmatmul.bf16.gmra.mxu3 %v781_v55  ;;  %v866_v55 = vld [vmem:[%s1462_s0 + $0xf0] sm:$0xf0] }
  0x35   :  { %v869_v61 = vor.u32 %v1034_v54, %v866_v55 }
  0x41   :  { %484 = vmatmul.bf16.gmra.mxu0 %v785_v0 }
  0x42   :  { %533 = vmatmul.bf16.gmra.mxu1 %v789_v1 }
  0x43   :  { %582 = vmatmul.bf16.gmra.mxu2 %v793_v2 }
  0x44   :  { %631 = vmatmul.bf16.gmra.mxu3 %v797_v3 }
  0x51   :  { %489 = vmatmul.bf16.gmra.mxu0 %v801_v12 }
  0x52   :  { %538 = vmatmul.bf16.gmra.mxu1 %v805_v13 }
  0x53   :  { %587 = vmatmul.bf16.gmra.mxu2 %v809_v14 }
  0x54   :  { %636 = vmatmul.bf16.gmra.mxu3 %v813_v15 }
  0x61   :  { %494 = vmatmul.bf16.gmra.mxu0 %v817_v24 }
  0x62   :  { %543 = vmatmul.bf16.gmra.mxu1 %v821_v25 }
  0x63   :  { %592 = vmatmul.bf16.gmra.mxu2 %v825_v26 }
  0x64   :  { %641 = vmatmul.bf16.gmra.mxu3 %v829_v27 }
  0x71   :  { %499 = vmatmul.bf16.gmra.mxu0 %v833_v36 }
  0x72   :  { %548 = vmatmul.bf16.gmra.mxu1 %v837_v37 }
  0x73   :  { %597 = vmatmul.bf16.gmra.mxu2 %v841_v38 }
  0x74   :  { %646 = vmatmul.bf16.gmra.mxu3 %v845_v39 }
  0x81   :  { %504 = vmatmul.bf16.gmra.mxu0 %v849_v48 }
  0x82   :  { %553 = vmatmul.bf16.gmra.mxu1 %v853_v49 }
  0x83   :  { %602 = vmatmul.bf16.gmra.mxu2 %v857_v50 }
  0x84   :  { %651 = vmatmul.bf16.gmra.mxu3 %v861_v51 }
  0x91   :  { %509 = vmatmul.bf16.gmra.mxu0 %v865_v60 }
  0x92   :  { %558 = vmatmul.bf16.gmra.mxu1 %v869_v61 }
  0x93   :  { %607 = vmatmul.bf16.gmra.mxu2 %v873_v62 }
  0x94   :  { %656 = vmatmul.bf16.gmra.mxu3 %v877_v63 }
  0x9e   :  { %v475_v0 = vpop.f32.mrf.mxu0 }
  0x9f   :  { %v524_v1 = vpop.f32.mrf.mxu1 }
  0xa0   :  { %v525_v2 = vadd.f32 %v524_v1, %v475_v0 }
  0xa6   :  { %v573_v3 = vpop.f32.mrf.mxu2  ;;  %v477_v6 = vpop.f32.mrf.mxu0 }
  0xa7   :  { %v622_v4 = vpop.f32.mrf.mxu3  ;;  %v574_v5 = vadd.f32 %v573_v3, %v525_v2  ;;  %v526_v7 = vpop.f32.mrf.mxu1 }
  0xa8   :  { %v527_v9 = vadd.f32 %v526_v7, %v477_v6 }
  0xa9   :  { %v623_v8 = vadd.f32 %v622_v4, %v574_v5 }
  0xab   :  { %662 = vst [vmem:[%s1463_s2] sm:$0xff] %v623_v8  ;;  %v703_v16 = vmul.f32 %v623_v8, %v623_v8 }
  0xae   :  { %v575_v10 = vpop.f32.mrf.mxu2  ;;  %v480_v13 = vpop.f32.mrf.mxu0 }
  0xaf   :  { %v624_v11 = vpop.f32.mrf.mxu3  ;;  %v576_v12 = vadd.f32 %v575_v10, %v527_v9  ;;  %v529_v14 = vpop.f32.mrf.mxu1 }
  0xb0   :  { %v530_v19 = vadd.f32 %v529_v14, %v480_v13 }
  0xb1   :  { %v625_v15 = vadd.f32 %v624_v11, %v576_v12 }
  0xb3   :  { %663 = vst [vmem:[%s1463_s2 + $0x8] sm:$0xff] %v625_v15  ;;  %v679_v17 = vadd.f32 %v625_v15, %v623_v8  ;;  %v704_v18 = vmul.f32 %v625_v15, %v625_v15 }
  0xb5   :  { %v719_v20 = vadd.f32 %v704_v18, %v703_v16 }
  0xb6   :  { %v578_v21 = vpop.f32.mrf.mxu2  ;;  %v482_v24 = vpop.f32.mrf.mxu0 }
  0xb7   :  { %v627_v22 = vpop.f32.mrf.mxu3  ;;  %v579_v23 = vadd.f32 %v578_v21, %v530_v19  ;;  %v531_v25 = vpop.f32.mrf.mxu1 }
  0xb8   :  { %v532_v30 = vadd.f32 %v531_v25, %v482_v24 }
  0xb9   :  { %v628_v26 = vadd.f32 %v627_v22, %v579_v23 }
  0xbb   :  { %664 = vst [vmem:[%s1463_s2 + $0x10] sm:$0xff] %v628_v26  ;;  %v680_v27 = vadd.f32 %v679_v17, %v628_v26  ;;  %v705_v28 = vmul.f32 %v628_v26, %v628_v26 }
  0xbd   :  { %v720_v29 = vadd.f32 %v719_v20, %v705_v28 }
  0xbe   :  { %v580_v31 = vpop.f32.mrf.mxu2  ;;  %v485_v34 = vpop.f32.mrf.mxu0 }
  0xbf   :  { %v629_v32 = vpop.f32.mrf.mxu3  ;;  %v581_v33 = vadd.f32 %v580_v31, %v532_v30  ;;  %v534_v35 = vpop.f32.mrf.mxu1 }
  0xc0   :  { %v535_v39 = vadd.f32 %v534_v35, %v485_v34  ;;  %v1071_v34 = vmov 0.0  }
  0xc1   :  { %v630_v36 = vadd.f32 %v629_v32, %v581_v33  ;;  %17 = vst [vmem:[%s1464_s3] sm:$0x3] %v1071_v34 }
  0xc3   :  { %665 = vst [vmem:[%s1463_s2 + $0x18] sm:$0xff] %v630_v36  ;;  %v681_v37 = vadd.f32 %v680_v27, %v630_v36  ;;  %v706_v38 = vmul.f32 %v630_v36, %v630_v36 }
  0xc5   :  { %v721_v40 = vadd.f32 %v720_v29, %v706_v38 }
  0xc6   :  { %v583_v41 = vpop.f32.mrf.mxu2  ;;  %v487_v44 = vpop.f32.mrf.mxu0 }
  0xc7   :  { %v632_v42 = vpop.f32.mrf.mxu3  ;;  %v584_v43 = vadd.f32 %v583_v41, %v535_v39  ;;  %v536_v45 = vpop.f32.mrf.mxu1 }
  0xc8   :  { %v537_v50 = vadd.f32 %v536_v45, %v487_v44 }
  0xc9   :  { %v633_v46 = vadd.f32 %v632_v42, %v584_v43 }
  0xcb   :  { %666 = vst [vmem:[%s1463_s2 + $0x20] sm:$0xff] %v633_v46  ;;  %v1395_v47 = vadd.f32 %v681_v37, %v633_v46  ;;  %v707_v48 = vmul.f32 %v633_v46, %v633_v46 }
  0xcd   :  { %v1397_v49 = vadd.f32 %v721_v40, %v707_v48 }
  0xce   :  { %v585_v51 = vpop.f32.mrf.mxu2  ;;  %v490_v54 = vpop.f32.mrf.mxu0 }
  0xcf   :  { %v634_v52 = vpop.f32.mrf.mxu3  ;;  %v586_v53 = vadd.f32 %v585_v51, %v537_v50  ;;  %v539_v55 = vpop.f32.mrf.mxu1 }
  0xd0   :  { %v540_v57 = vadd.f32 %v539_v55, %v490_v54 }
  0xd1   :  { %v1399_v56 = vadd.f32 %v634_v52, %v586_v53 }
  0xd3   :  { %667 = vst [vmem:[%s1463_s2 + $0x28] sm:$0xff] %v1399_v56  ;;  %v708_v43 = vmul.f32 %v1399_v56, %v1399_v56  ;;  %v683_v48 = vadd.f32 %v1395_v47, %v1399_v56 }
  0xd5   :  { %v723_v54 = vadd.f32 %v1397_v49, %v708_v43  ;;  %v702_v43 = vld [vmem:[%s1464_s3 + $0x1] sm:$0x1] }
  0xd6   :  { %v588_v58 = vpop.f32.mrf.mxu2  ;;  %v492_v61 = vpop.f32.mrf.mxu0 }
  0xd7   :  { %v637_v59 = vpop.f32.mrf.mxu3  ;;  %v589_v60 = vadd.f32 %v588_v58, %v540_v57  ;;  %v541_v62 = vpop.f32.mrf.mxu1 }
  0xd8   :  { %v542_v0 = vadd.f32 %v541_v62, %v492_v61 }
  0xd9   :  { %v1405_v63 = vadd.f32 %v637_v59, %v589_v60 }
  0xdb   :  { %668 = vst [vmem:[%s1463_s2 + $0x30] sm:$0xff] %v1405_v63  ;;  %v709_v50 = vmul.f32 %v1405_v63, %v1405_v63  ;;  %v684_v55 = vadd.f32 %v683_v48, %v1405_v63 }
  0xdd   :  { %v724_v59 = vadd.f32 %v723_v54, %v709_v50 }
  0xde   :  { %v590_v1 = vpop.f32.mrf.mxu2  ;;  %v495_v4 = vpop.f32.mrf.mxu0 }
  0xdf   :  { %v639_v2 = vpop.f32.mrf.mxu3  ;;  %v591_v3 = vadd.f32 %v590_v1, %v542_v0  ;;  %v544_v5 = vpop.f32.mrf.mxu1 }
  0xe0   :  { %v545_v7 = vadd.f32 %v544_v5, %v495_v4 }
  0xe1   :  { %v640_v6 = vadd.f32 %v639_v2, %v591_v3 }
  0xe3   :  { %669 = vst [vmem:[%s1463_s2 + $0x38] sm:$0xff] %v640_v6  ;;  %v710_v57 = vmul.f32 %v640_v6, %v640_v6  ;;  %v685_v60 = vadd.f32 %v684_v55, %v640_v6 }
  0xe5   :  { %v725_v56 = vadd.f32 %v724_v59, %v710_v57 }
  0xe6   :  { %v593_v8 = vpop.f32.mrf.mxu2  ;;  %v497_v11 = vpop.f32.mrf.mxu0 }
  0xe7   :  { %v642_v9 = vpop.f32.mrf.mxu3  ;;  %v594_v10 = vadd.f32 %v593_v8, %v545_v7  ;;  %v546_v12 = vpop.f32.mrf.mxu1 }
  0xe8   :  { %v547_v14 = vadd.f32 %v546_v12, %v497_v11 }
  0xe9   :  { %v643_v13 = vadd.f32 %v642_v9, %v594_v10 }
  0xeb   :  { %670 = vst [vmem:[%s1463_s2 + $0x40] sm:$0xff] %v643_v13  ;;  %v711_v61 = vmul.f32 %v643_v13, %v643_v13  ;;  %v686_v62 = vadd.f32 %v685_v60, %v643_v13 }
  0xed   :  { %v726_v3 = vadd.f32 %v725_v56, %v711_v61 }
  0xee   :  { %v595_v15 = vpop.f32.mrf.mxu2  ;;  %v500_v18 = vpop.f32.mrf.mxu0 }
  0xef   :  { %v644_v16 = vpop.f32.mrf.mxu3  ;;  %v596_v17 = vadd.f32 %v595_v15, %v547_v14  ;;  %v549_v19 = vpop.f32.mrf.mxu1 }
  0xf0   :  { %v550_v21 = vadd.f32 %v549_v19, %v500_v18 }
  0xf1   :  { %v645_v20 = vadd.f32 %v644_v16, %v596_v17 }
  0xf3   :  { %671 = vst [vmem:[%s1463_s2 + $0x48] sm:$0xff] %v645_v20  ;;  %v712_v0 = vmul.f32 %v645_v20, %v645_v20  ;;  %v687_v4 = vadd.f32 %v686_v62, %v645_v20 }
  0xf5   :  { %v727_v63 = vadd.f32 %v726_v3, %v712_v0 }
  0xf6   :  { %v598_v22 = vpop.f32.mrf.mxu2  ;;  %v502_v25 = vpop.f32.mrf.mxu0 }
  0xf7   :  { %v647_v23 = vpop.f32.mrf.mxu3  ;;  %v599_v24 = vadd.f32 %v598_v22, %v550_v21  ;;  %v551_v26 = vpop.f32.mrf.mxu1 }
  0xf8   :  { %v552_v28 = vadd.f32 %v551_v26, %v502_v25 }
  0xf9   :  { %v648_v27 = vadd.f32 %v647_v23, %v599_v24 }
  0xfb   :  { %672 = vst [vmem:[%s1463_s2 + $0x50] sm:$0xff] %v648_v27  ;;  %v713_v49 = vmul.f32 %v648_v27, %v648_v27  ;;  %v688_v7 = vadd.f32 %v687_v4, %v648_v27 }
  0xfd   :  { %v728_v11 = vadd.f32 %v727_v63, %v713_v49 }
  0xfe   :  { %v600_v29 = vpop.f32.mrf.mxu2  ;;  %v505_v32 = vpop.f32.mrf.mxu0 }
  0xff   :  { %v649_v30 = vpop.f32.mrf.mxu3  ;;  %v601_v31 = vadd.f32 %v600_v29, %v552_v28  ;;  %v554_v33 = vpop.f32.mrf.mxu1 }
 0x100   :  { %v555_v36 = vadd.f32 %v554_v33, %v505_v32 }
 0x101   :  { %v650_v35 = vadd.f32 %v649_v30, %v601_v31 }
 0x103   :  { %673 = vst [vmem:[%s1463_s2 + $0x58] sm:$0xff] %v650_v35  ;;  %v714_v8 = vmul.f32 %v650_v35, %v650_v35  ;;  %v689_v12 = vadd.f32 %v688_v7, %v650_v35 }
 0x105   :  { %v729_v13 = vadd.f32 %v728_v11, %v714_v8 }
 0x106   :  { %v603_v37 = vpop.f32.mrf.mxu2  ;;  %v507_v40 = vpop.f32.mrf.mxu0 }
 0x107   :  { %v652_v38 = vpop.f32.mrf.mxu3  ;;  %v604_v39 = vadd.f32 %v603_v37, %v555_v36  ;;  %v556_v41 = vpop.f32.mrf.mxu1 }
 0x108   :  { %v557_v44 = vadd.f32 %v556_v41, %v507_v40  ;;  %v678_v40 = vld [vmem:[%s1464_s3] sm:$0x1] }
 0x109   :  { %v653_v42 = vadd.f32 %v652_v38, %v604_v39 }
 0x10b   :  { %674 = vst [vmem:[%s1463_s2 + $0x60] sm:$0xff] %v653_v42  ;;  %v715_v14 = vmul.f32 %v653_v42, %v653_v42  ;;  %v690_v15 = vadd.f32 %v689_v12, %v653_v42 }
 0x10d   :  { %v730_v19 = vadd.f32 %v729_v13, %v715_v14 }
 0x10e   :  { %v605_v45 = vpop.f32.mrf.mxu2  ;;  %v510_v52 = vpop.f32.mrf.mxu0 }
 0x10f   :  { %v654_v46 = vpop.f32.mrf.mxu3  ;;  %v606_v51 = vadd.f32 %v605_v45, %v557_v44  ;;  %v559_v53 = vpop.f32.mrf.mxu1 }
 0x110   :  { %v560_v47 = vadd.f32 %v559_v53, %v510_v52 }
 0x111   :  { %v655_v58 = vadd.f32 %v654_v46, %v606_v51 }
 0x113   :  { %675 = vst [vmem:[%s1463_s2 + $0x68] sm:$0xff] %v655_v58  ;;  %v716_v16 = vmul.f32 %v655_v58, %v655_v58  ;;  %v691_v20 = vadd.f32 %v690_v15, %v655_v58 }
 0x115   :  { %v731_v24 = vadd.f32 %v730_v19, %v716_v16 }
 0x116   :  { %v608_v1 = vpop.f32.mrf.mxu2  ;;  %v512_v6 = vpop.f32.mrf.mxu0 }
 0x117   :  { %v657_v2 = vpop.f32.mrf.mxu3  ;;  %v609_v5 = vadd.f32 %v608_v1, %v560_v47  ;;  %v561_v10 = vpop.f32.mrf.mxu1 }
 0x118   :  { %v562_v17 = vadd.f32 %v561_v10, %v512_v6 }
 0x119   :  { %v658_v9 = vadd.f32 %v657_v2, %v609_v5 }
 0x11b   :  { %676 = vst [vmem:[%s1463_s2 + $0x70] sm:$0xff] %v658_v9  ;;  %v717_v21 = vmul.f32 %v658_v9, %v658_v9  ;;  %v692_v25 = vadd.f32 %v691_v20, %v658_v9 }
 0x11d   :  { %v732_v27 = vadd.f32 %v731_v24, %v717_v21 }
 0x11e   :  { %v610_v18 = vpop.f32.mrf.mxu2 }
 0x11f   :  { %v611_v22 = vadd.f32 %v610_v18, %v562_v17  ;;  %v659_v23 = vpop.f32.mrf.mxu3 }
 0x121   :  { %v660_v26 = vadd.f32 %v659_v23, %v611_v22 }
 0x123   :  { %677 = vst [vmem:[%s1463_s2 + $0x78] sm:$0xff] %v660_v26  ;;  %v693_v28 = vadd.f32 %v692_v25, %v660_v26  ;;  %v718_v29 = vmul.f32 %v660_v26, %v660_v26 }
 0x125   :  { %v694_v30 = vrot.slane %v693_v28, 4  ;;  %v733_v31 = vadd.f32 %v732_v27, %v718_v29 }
 0x127   :  { %v695_v32 = vadd.f32 %v694_v30, %v693_v28  ;;  %v734_v33 = vrot.slane %v733_v31, 4 }
 0x129   :  { %v696_v34 = vrot.slane %v695_v32, 2  ;;  %v735_v35 = vadd.f32 %v734_v33, %v733_v31 }
 0x12b   :  { %v697_v36 = vadd.f32 %v696_v34, %v695_v32  ;;  %v736_v37 = vrot.slane %v735_v35, 2 }
 0x12d   :  { %v698_v38 = vrot.slane %v697_v36, 1  ;;  %v737_v39 = vadd.f32 %v736_v37, %v735_v35 }
 0x12f   :  { %v699_v41 = vadd.f32 %v698_v38, %v697_v36  ;;  %v738_v42 = vrot.slane %v737_v39, 1 }
 0x131   :  { %v700_v44 = vadd.f32 %v699_v41, %v678_v40  ;;  %v739_v45 = vadd.f32 %v738_v42, %v737_v39 }
 0x133   :  { %701 = vst [vmem:[%s1464_s3] sm:$0x1] %v700_v44  ;;  %v740_v46 = vadd.f32 %v739_v45, %v702_v43 }
 0x135   :  { %741 = vst [vmem:[%s1464_s3 + $0x1] sm:$0x1] %v740_v46 }

// kernel: simple_discriminator_forward.12
= control target key start
LH: loop header
LB: loop body
LE: loop exit
PB: predicated region body
PF: predicated region fallthrough
CT: control target
= control target key end

     0   :  { %s333_s1 = inlined_call_operand.vmem [shape: f32[2,128], index: 1, kind: input, shape index: {}]   ;;  %s334_s2 = inlined_call_operand.vmem [shape: f32[1,128], index: 2, kind: input, shape index: {}]   ;;  %s335_s0 = inlined_call_operand.vmem [shape: f32[128,128], index: 0, kind: input, shape index: {}]   ;;  %s336_s3 = inlined_call_operand.vmem [shape: f32[1,128], index: 3, kind: input, shape index: {}]   ;;  %s337_s4 = inlined_call_operand.vmem [shape: f32[128,128], index: 4, kind: output, shape index: {}]  }
   0x1   :  { %v17_v0 = vld [vmem:[%s333_s1] sm:$0x1]  ;;  %v19_v1 = vld [vmem:[%s333_s1 + $0x1] sm:$0x1]  ;;  %v41_v19 = vld [vmem:[%s335_s0 + $0x8] sm:$0xff] }
   0x2   :  { %v18_v2 = vmul.f32 0.0078125, %v17_v0  ;;  %v20_v3 = vmul.f32 0.0078125, %v19_v1  ;;  %v24_v13 = vld [vmem:[%s334_s2] sm:$0x1]  ;;  %v42_v20 = vld [vmem:[%s335_s0 + $0x10] sm:$0xff]  ;;  %v43_v21 = vld [vmem:[%s335_s0 + $0x18] sm:$0xff] }
   0x3   :  { %v37_v17 = vld [vmem:[%s336_s3] sm:$0x1]  ;;  %v45_v25 = vld [vmem:[%s335_s0 + $0x28] sm:$0xff]  ;;  %v46_v26 = vld [vmem:[%s335_s0 + $0x30] sm:$0xff] }
   0x4   :  { %v21_v4 = vmul.f32 %v18_v2, %v18_v2  ;;  %v40_v18 = vld [vmem:[%s335_s0] sm:$0xff]  ;;  %v47_v27 = vld [vmem:[%s335_s0 + $0x38] sm:$0xff]  ;;  %v49_v29 = vld [vmem:[%s335_s0 + $0x48] sm:$0xff] }
   0x5   :  { %v44_v22 = vld [vmem:[%s335_s0 + $0x20] sm:$0xff]  ;;  %v50_v30 = vld [vmem:[%s335_s0 + $0x50] sm:$0xff]  ;;  %v51_v35 = vld [vmem:[%s335_s0 + $0x58] sm:$0xff] }
   0x6   :  { %v22_v5 = vsub.f32 %v20_v3, %v21_v4  ;;  %v48_v28 = vld [vmem:[%s335_s0 + $0x40] sm:$0xff]  ;;  %v53_v37 = vld [vmem:[%s335_s0 + $0x68] sm:$0xff] }
   0x7   :  { %v52_v36 = vld [vmem:[%s335_s0 + $0x60] sm:$0xff] }
   0x8   :  { %v23_v6 = vmax.f32 %v22_v5, 0.0 }
   0xa   :  { %v25_v7 = vadd.f32 1e-05, %v23_v6 }
   0xc   :  { %162 = vrsqrt.f32 %v25_v7  ;;  %vm32_vm0 = vweird.f32 %v25_v7 }
  0x12   :  { %v163_v8 = vpop.eup %162 }
  0x13   :  { %v27_v9 = vmul.f32 %v163_v8, %v25_v7  ;;  %vm33_vm1 = vweird.f32 %v163_v8 }
  0x14   :  { %vm34_vm2 = vmor %vm32_vm0, %vm33_vm1 }
  0x15   :  { %v28_v10 = vmul.f32 %v163_v8, %v27_v9 }
  0x17   :  { %v29_v11 = vmul.f32 0.5, %v28_v10 }
  0x19   :  { %v30_v12 = vsub.f32 1.5, %v29_v11 }
  0x1b   :  { %v31_v14 = vmul.f32 %v163_v8, %v30_v12 }
  0x1d   :  { %v35_v15 = vsel %vm34_vm2, %v163_v8, %v31_v14  ;;  %v54_v14 = vld [vmem:[%s335_s0 + $0x70] sm:$0xff] }
  0x1e   :  { %v36_v16 = vmul.f32 %v35_v15, %v24_v13 }
  0x20   :  { %v38_v23 = vmul.f32 %v36_v16, %v18_v2  ;;  %v216_v24 = vperm.slane %v36_v16, 0 }
  0x22   :  { %v39_v31 = vsub.f32 %v37_v17, %v38_v23  ;;  %v59_v32 = vmul.f32 %v216_v24, %v40_v18  ;;  %v60_v33 = vmul.f32 %v216_v24, %v41_v19  ;;  %v61_v34 = vmul.f32 %v216_v24, %v42_v20  ;;  %v55_v17 = vld [vmem:[%s335_s0 + $0x78] sm:$0xff] }
  0x23   :  { %v62_v38 = vmul.f32 %v216_v24, %v43_v21  ;;  %v63_v39 = vmul.f32 %v216_v24, %v44_v22  ;;  %v64_v40 = vmul.f32 %v216_v24, %v45_v25  ;;  %v65_v41 = vmul.f32 %v216_v24, %v46_v26 }
  0x24   :  { %v252_v42 = vperm.slane %v39_v31, 0  ;;  %v66_v43 = vmul.f32 %v216_v24, %v47_v27  ;;  %v67_v44 = vmul.f32 %v216_v24, %v48_v28  ;;  %v68_v45 = vmul.f32 %v216_v24, %v49_v29 }
  0x25   :  { %v69_v46 = vmul.f32 %v216_v24, %v50_v30  ;;  %v70_v47 = vmul.f32 %v216_v24, %v51_v35  ;;  %v71_v48 = vmul.f32 %v216_v24, %v52_v36  ;;  %v72_v49 = vmul.f32 %v216_v24, %v53_v37 }
  0x26   :  { %v78_v50 = vadd.f32 %v252_v42, %v59_v32  ;;  %v79_v51 = vadd.f32 %v252_v42, %v60_v33  ;;  %v80_v52 = vadd.f32 %v252_v42, %v61_v34  ;;  %v81_v53 = vadd.f32 %v252_v42, %v62_v38 }
  0x27   :  { %v82_v54 = vadd.f32 %v252_v42, %v63_v39  ;;  %v83_v55 = vadd.f32 %v252_v42, %v64_v40  ;;  %v84_v56 = vadd.f32 %v252_v42, %v65_v41  ;;  %v85_v57 = vadd.f32 %v252_v42, %v66_v43 }
  0x28   :  { %vm94_vm3 = vcmp.ge.f32.partialorder %v78_v50, 0.0  ;;  %v110_v58 = vmul.f32 0.2, %v78_v50  ;;  %vm95_vm4 = vcmp.ge.f32.partialorder %v79_v51, 0.0  ;;  %v111_v59 = vmul.f32 0.2, %v79_v51 }
  0x29   :  { %vm96_vm5 = vcmp.ge.f32.partialorder %v80_v52, 0.0  ;;  %v112_v60 = vmul.f32 0.2, %v80_v52  ;;  %vm97_vm6 = vcmp.ge.f32.partialorder %v81_v53, 0.0  ;;  %v113_v61 = vmul.f32 0.2, %v81_v53 }
  0x2a   :  { %v126_v62 = vsel %vm94_vm3, %v78_v50, %v110_v58  ;;  %v127_v63 = vsel %vm95_vm4, %v79_v51, %v111_v59  ;;  %vm98_vm7 = vcmp.ge.f32.partialorder %v82_v54, 0.0  ;;  %v114_v0 = vmul.f32 0.2, %v82_v54 }
  0x2b   :  { %142 = vst [vmem:[%s337_s4] sm:$0xff] %v126_v62  ;;  %v128_v1 = vsel %vm96_vm5, %v80_v52, %v112_v60  ;;  %v129_v2 = vsel %vm97_vm6, %v81_v53, %v113_v61  ;;  %vm99_vm8 = vcmp.ge.f32.partialorder %v83_v55, 0.0  ;;  %v115_v3 = vmul.f32 0.2, %v83_v55 }
  0x2c   :  { %143 = vst [vmem:[%s337_s4 + $0x8] sm:$0xff] %v127_v63  ;;  %v130_v4 = vsel %vm98_vm7, %v82_v54, %v114_v0  ;;  %vm100_vm9 = vcmp.ge.f32.partialorder %v84_v56, 0.0  ;;  %v116_v5 = vmul.f32 0.2, %v84_v56  ;;  %vm101_vm10 = vcmp.ge.f32.partialorder %v85_v57, 0.0 }
  0x2d   :  { %144 = vst [vmem:[%s337_s4 + $0x10] sm:$0xff] %v128_v1  ;;  %v131_v6 = vsel %vm99_vm8, %v83_v55, %v115_v3  ;;  %v117_v7 = vmul.f32 0.2, %v85_v57  ;;  %v86_v8 = vadd.f32 %v252_v42, %v67_v44  ;;  %v87_v9 = vadd.f32 %v252_v42, %v68_v45 }
  0x2e   :  { %145 = vst [vmem:[%s337_s4 + $0x18] sm:$0xff] %v129_v2  ;;  %v132_v10 = vsel %vm100_vm9, %v84_v56, %v116_v5  ;;  %v88_v11 = vadd.f32 %v252_v42, %v69_v46  ;;  %v89_v12 = vadd.f32 %v252_v42, %v70_v47  ;;  %v90_v13 = vadd.f32 %v252_v42, %v71_v48 }
  0x2f   :  { %146 = vst [vmem:[%s337_s4 + $0x20] sm:$0xff] %v130_v4  ;;  %v133_v15 = vsel %vm101_vm10, %v85_v57, %v117_v7  ;;  %vm102_vm11 = vcmp.ge.f32.partialorder %v86_v8, 0.0  ;;  %v118_v16 = vmul.f32 0.2, %v86_v8  ;;  %vm103_vm12 = vcmp.ge.f32.partialorder %v87_v9, 0.0 }
  0x30   :  { %147 = vst [vmem:[%s337_s4 + $0x28] sm:$0xff] %v131_v6  ;;  %v119_v18 = vmul.f32 0.2, %v87_v9  ;;  %vm104_vm13 = vcmp.ge.f32.partialorder %v88_v11, 0.0  ;;  %v120_v19 = vmul.f32 0.2, %v88_v11  ;;  %v91_v20 = vadd.f32 %v252_v42, %v72_v49 }
  0x31   :  { %148 = vst [vmem:[%s337_s4 + $0x30] sm:$0xff] %v132_v10  ;;  %v134_v21 = vsel %vm102_vm11, %v86_v8, %v118_v16  ;;  %vm105_vm14 = vcmp.ge.f32.partialorder %v89_v12, 0.0  ;;  %v121_v22 = vmul.f32 0.2, %v89_v12  ;;  %vm106_vm15 = vcmp.ge.f32.partialorder %v90_v13, 0.0 }
  0x32   :  { %149 = vst [vmem:[%s337_s4 + $0x38] sm:$0xff] %v133_v15  ;;  %v135_v23 = vsel %vm103_vm12, %v87_v9, %v119_v18  ;;  %v136_v25 = vsel %vm104_vm13, %v88_v11, %v120_v19  ;;  %v122_v26 = vmul.f32 0.2, %v90_v13  ;;  %vm107_vm0 = vcmp.ge.f32.partialorder %v91_v20, 0.0 }
  0x33   :  { %150 = vst [vmem:[%s337_s4 + $0x40] sm:$0xff] %v134_v21  ;;  %v137_v27 = vsel %vm105_vm14, %v89_v12, %v121_v22  ;;  %v123_v28 = vmul.f32 0.2, %v91_v20  ;;  %v73_v29 = vmul.f32 %v216_v24, %v54_v14  ;;  %v74_v30 = vmul.f32 %v216_v24, %v55_v17 }
  0x34   :  { %151 = vst [vmem:[%s337_s4 + $0x48] sm:$0xff] %v135_v23  ;;  %v138_v31 = vsel %vm106_vm15, %v90_v13, %v122_v26 }
  0x35   :  { %152 = vst [vmem:[%s337_s4 + $0x50] sm:$0xff] %v136_v25  ;;  %v139_v32 = vsel %vm107_vm0, %v91_v20, %v123_v28  ;;  %v92_v33 = vadd.f32 %v252_v42, %v73_v29  ;;  %v93_v34 = vadd.f32 %v252_v42, %v74_v30 }
  0x36   :  { %153 = vst [vmem:[%s337_s4 + $0x58] sm:$0xff] %v137_v27 }
  0x37   :  { %154 = vst [vmem:[%s337_s4 + $0x60] sm:$0xff] %v138_v31  ;;  %vm108_vm1 = vcmp.ge.f32.partialorder %v92_v33, 0.0  ;;  %v124_v24 = vmul.f32 0.2, %v92_v33  ;;  %vm109_vm2 = vcmp.ge.f32.partialorder %v93_v34, 0.0 }
  0x38   :  { %155 = vst [vmem:[%s337_s4 + $0x68] sm:$0xff] %v139_v32  ;;  %v125_v35 = vmul.f32 0.2, %v93_v34 }
  0x39   :  { %v140_v36 = vsel %vm108_vm1, %v92_v33, %v124_v24 }
  0x3a   :  { %156 = vst [vmem:[%s337_s4 + $0x70] sm:$0xff] %v140_v36  ;;  %v141_v37 = vsel %vm109_vm2, %v93_v34, %v125_v35 }
  0x3b   :  { %157 = vst [vmem:[%s337_s4 + $0x78] sm:$0xff] %v141_v37 }

// kernel: simple_discriminator_forward.14
= control target key start
LH: loop header
LB: loop body
LE: loop exit
PB: predicated region body
PF: predicated region fallthrough
CT: control target
= control target key end

     0   :  { %s141_s1 = inlined_call_operand.vmem [shape: f32[2,128], index: 1, kind: input, shape index: {}]   ;;  %s142_s2 = inlined_call_operand.vmem [shape: f32[1,128], index: 2, kind: input, shape index: {}]   ;;  %s143_s3 = inlined_call_operand.vmem [shape: f32[1,128], index: 3, kind: input, shape index: {}]   ;;  %s144_s0 = inlined_call_operand.vmem [shape: f32[32,128], index: 0, kind: input, shape index: {}]   ;;  %s145_s4 = inlined_call_operand.vmem [shape: f32[32,128], index: 4, kind: output, shape index: {}]  }
   0x1   :  { %v17_v0 = vld [vmem:[%s141_s1] sm:$0x1]  ;;  %v19_v1 = vld [vmem:[%s141_s1 + $0x1] sm:$0x1]  ;;  %v41_v19 = vld [vmem:[%s144_s0 + $0x8] sm:$0xff] }
   0x2   :  { %v18_v2 = vmul.f32 0.03125, %v17_v0  ;;  %v20_v3 = vmul.f32 0.03125, %v19_v1  ;;  %v24_v13 = vld [vmem:[%s142_s2] sm:$0x1]  ;;  %v42_v20 = vld [vmem:[%s144_s0 + $0x10] sm:$0xff]  ;;  %v43_v23 = vld [vmem:[%s144_s0 + $0x18] sm:$0xff] }
   0x3   :  { %v37_v17 = vld [vmem:[%s143_s3] sm:$0x1] }
   0x4   :  { %v21_v4 = vmul.f32 %v18_v2, %v18_v2  ;;  %v40_v18 = vld [vmem:[%s144_s0] sm:$0xff] }
   0x6   :  { %v22_v5 = vsub.f32 %v20_v3, %v21_v4 }
   0x8   :  { %v23_v6 = vmax.f32 %v22_v5, 0.0 }
   0xa   :  { %v25_v7 = vadd.f32 1e-05, %v23_v6 }
   0xc   :  { %78 = vrsqrt.f32 %v25_v7  ;;  %vm32_vm0 = vweird.f32 %v25_v7 }
  0x12   :  { %v79_v8 = vpop.eup %78 }
  0x13   :  { %v27_v9 = vmul.f32 %v79_v8, %v25_v7  ;;  %vm33_vm1 = vweird.f32 %v79_v8 }
  0x14   :  { %vm34_vm2 = vmor %vm32_vm0, %vm33_vm1 }
  0x15   :  { %v28_v10 = vmul.f32 %v79_v8, %v27_v9 }
  0x17   :  { %v29_v11 = vmul.f32 0.5, %v28_v10 }
  0x19   :  { %v30_v12 = vsub.f32 1.5, %v29_v11 }
  0x1b   :  { %v31_v14 = vmul.f32 %v79_v8, %v30_v12 }
  0x1d   :  { %v35_v15 = vsel %vm34_vm2, %v79_v8, %v31_v14 }
  0x1e   :  { %v36_v16 = vmul.f32 %v35_v15, %v24_v13 }
  0x20   :  { %v38_v21 = vmul.f32 %v36_v16, %v18_v2  ;;  %v45_v22 = vperm.slane %v36_v16, 0 }
  0x22   :  { %v39_v24 = vsub.f32 %v37_v17, %v38_v21  ;;  %v47_v25 = vmul.f32 %v45_v22, %v40_v18  ;;  %v48_v26 = vmul.f32 %v45_v22, %v41_v19  ;;  %v49_v27 = vmul.f32 %v45_v22, %v42_v20 }
  0x23   :  { %v50_v28 = vmul.f32 %v45_v22, %v43_v23 }
  0x24   :  { %v52_v29 = vperm.slane %v39_v24, 0 }
  0x26   :  { %v54_v30 = vadd.f32 %v52_v29, %v47_v25  ;;  %v55_v31 = vadd.f32 %v52_v29, %v48_v26  ;;  %v56_v32 = vadd.f32 %v52_v29, %v49_v27  ;;  %v57_v33 = vadd.f32 %v52_v29, %v50_v28 }
  0x28   :  { %vm58_vm3 = vcmp.ge.f32.partialorder %v54_v30, 0.0  ;;  %v62_v34 = vmul.f32 0.2, %v54_v30  ;;  %vm59_vm4 = vcmp.ge.f32.partialorder %v55_v31, 0.0  ;;  %v63_v35 = vmul.f32 0.2, %v55_v31 }
  0x29   :  { %vm60_vm5 = vcmp.ge.f32.partialorder %v56_v32, 0.0  ;;  %v64_v36 = vmul.f32 0.2, %v56_v32  ;;  %vm61_vm6 = vcmp.ge.f32.partialorder %v57_v33, 0.0  ;;  %v65_v37 = vmul.f32 0.2, %v57_v33 }
  0x2a   :  { %v66_v38 = vsel %vm58_vm3, %v54_v30, %v62_v34  ;;  %v67_v39 = vsel %vm59_vm4, %v55_v31, %v63_v35 }
  0x2b   :  { %70 = vst [vmem:[%s145_s4] sm:$0xff] %v66_v38  ;;  %v68_v40 = vsel %vm60_vm5, %v56_v32, %v64_v36  ;;  %v69_v41 = vsel %vm61_vm6, %v57_v33, %v65_v37 }
  0x2c   :  { %71 = vst [vmem:[%s145_s4 + $0x8] sm:$0xff] %v67_v39 }
  0x2d   :  { %72 = vst [vmem:[%s145_s4 + $0x10] sm:$0xff] %v68_v40 }
  0x2e   :  { %73 = vst [vmem:[%s145_s4 + $0x18] sm:$0xff] %v69_v41 }

// kernel: simple_discriminator_forward.13
= control target key start
LH: loop header
LB: loop body
LE: loop exit
PB: predicated region body
PF: predicated region fallthrough
CT: control target
= control target key end

     0   :  { %s1386_s1 = inlined_call_operand.vmem [shape: bf16[896,128], index: 1, kind: input, shape index: {}]   ;;  %s1387_s0 = inlined_call_operand.vmem [shape: bf16[32,896], index: 0, kind: input, shape index: {}]   ;;  %s1388_s3 = inlined_call_operand.vmem [shape: f32[2,128], index: 3, kind: output, shape index: {1}]   ;;  %s1389_s2 = inlined_call_operand.vmem [shape: f32[32,128], index: 2, kind: output, shape index: {0}]  }
   0x1   :  { %v1028_v0 = vld [vmem:[%s1386_s1 + $0x38] sm:$0xff]  ;;  %v1027_v4 = vld [vmem:[%s1386_s1 + $0x30] sm:$0xff]  ;;  %v1026_v8 = vld [vmem:[%s1386_s1 + $0x28] sm:$0xff] }
   0x2   :  { %v1036_v1 = vld [vmem:[%s1386_s1 + $0x78] sm:$0xff]  ;;  %554 = vmatpush.bf16.msra.mxu0 %v1028_v0  ;;  %v1035_v5 = vld [vmem:[%s1386_s1 + $0x70] sm:$0xff]  ;;  %v1034_v9 = vld [vmem:[%s1386_s1 + $0x68] sm:$0xff] }
   0x3   :  { %v1044_v2 = vld [vmem:[%s1386_s1 + $0xb8] sm:$0xff]  ;;  %573 = vmatpush.bf16.msra.mxu1 %v1036_v1  ;;  %v1043_v6 = vld [vmem:[%s1386_s1 + $0xb0] sm:$0xff]  ;;  %v1042_v10 = vld [vmem:[%s1386_s1 + $0xa8] sm:$0xff] }
   0x4   :  { %v1052_v3 = vld [vmem:[%s1386_s1 + $0xf8] sm:$0xff]  ;;  %592 = vmatpush.bf16.msra.mxu2 %v1044_v2  ;;  %v1051_v7 = vld [vmem:[%s1386_s1 + $0xf0] sm:$0xff]  ;;  %v1050_v11 = vld [vmem:[%s1386_s1 + $0xe8] sm:$0xff] }
   0x5   :  { %611 = vmatpush.bf16.msra.mxu3 %v1052_v3  ;;  %v1025_v12 = vld [vmem:[%s1386_s1 + $0x20] sm:$0xff]  ;;  %v1024_v16 = vld [vmem:[%s1386_s1 + $0x18] sm:$0xff]  ;;  %v1023_v20 = vld [vmem:[%s1386_s1 + $0x10] sm:$0xff] }
   0x6   :  { %555 = vmatpush.bf16.msra.mxu0 %v1027_v4  ;;  %v1033_v13 = vld [vmem:[%s1386_s1 + $0x60] sm:$0xff]  ;;  %v1032_v17 = vld [vmem:[%s1386_s1 + $0x58] sm:$0xff]  ;;  %v1031_v21 = vld [vmem:[%s1386_s1 + $0x50] sm:$0xff] }
   0x7   :  { %574 = vmatpush.bf16.msra.mxu1 %v1035_v5  ;;  %v1041_v14 = vld [vmem:[%s1386_s1 + $0xa0] sm:$0xff]  ;;  %v1040_v18 = vld [vmem:[%s1386_s1 + $0x98] sm:$0xff]  ;;  %v1039_v22 = vld [vmem:[%s1386_s1 + $0x90] sm:$0xff] }
   0x8   :  { %593 = vmatpush.bf16.msra.mxu2 %v1043_v6  ;;  %v1049_v15 = vld [vmem:[%s1386_s1 + $0xe0] sm:$0xff]  ;;  %v1048_v19 = vld [vmem:[%s1386_s1 + $0xd8] sm:$0xff]  ;;  %v1047_v23 = vld [vmem:[%s1386_s1 + $0xd0] sm:$0xff] }
   0x9   :  { %612 = vmatpush.bf16.msra.mxu3 %v1051_v7  ;;  %v1022_v24 = vld [vmem:[%s1386_s1 + $0x8] sm:$0xff]  ;;  %v1021_v28 = vld [vmem:[%s1386_s1] sm:$0xff]  ;;  %v1010_v33 = vld [vmem:[%s1387_s0 + $0x18] sm:$0xf0] }
   0xa   :  { %556 = vmatpush.bf16.msra.mxu0 %v1026_v8  ;;  %v1030_v25 = vld [vmem:[%s1386_s1 + $0x48] sm:$0xff]  ;;  %v1029_v29 = vld [vmem:[%s1386_s1 + $0x40] sm:$0xff]  ;;  %v1076_v40 = vld [vmem:[%s1386_s1 + $0x1b8] sm:$0xff] }
   0xb   :  { %575 = vmatpush.bf16.msra.mxu1 %v1034_v9  ;;  %v1038_v26 = vld [vmem:[%s1386_s1 + $0x88] sm:$0xff]  ;;  %v1037_v30 = vld [vmem:[%s1386_s1 + $0x80] sm:$0xff]  ;;  %v1060_v41 = vld [vmem:[%s1386_s1 + $0x138] sm:$0xff] }
   0xc   :  { %594 = vmatpush.bf16.msra.mxu2 %v1042_v10  ;;  %v1046_v27 = vld [vmem:[%s1386_s1 + $0xc8] sm:$0xff]  ;;  %v1045_v31 = vld [vmem:[%s1386_s1 + $0xc0] sm:$0xff]  ;;  %v1068_v46 = vld [vmem:[%s1386_s1 + $0x178] sm:$0xff] }
   0xd   :  { %613 = vmatpush.bf16.msra.mxu3 %v1050_v11  ;;  %v729_v32 = vld [vmem:[%s1387_s0] sm:$0xf]  ;;  %v1007_v34 = vld [vmem:[%s1387_s0 + $0x4] sm:$0xf]  ;;  %v737_v36 = vld [vmem:[%s1387_s0 + $0x8] sm:$0xf] }
   0xe   :  { %557 = vmatpush.bf16.msra.mxu0 %v1025_v12  ;;  %v731_v35 = vld [vmem:[%s1387_s0 + $0x1c] sm:$0xf0]  ;;  %v1011_v37 = vld [vmem:[%s1387_s0 + $0x20] sm:$0xf0]  ;;  %v1008_v38 = vld [vmem:[%s1387_s0 + $0xc] sm:$0xf]  ;;  %v730_v42 = vor.u32 %v1010_v33, %v729_v32 }
   0xf   :  { %576 = vmatpush.bf16.msra.mxu1 %v1033_v13  ;;  %v739_v39 = vld [vmem:[%s1387_s0 + $0x24] sm:$0xf0]  ;;  %v734_v43 = vor.u32 %v1007_v34, %v731_v35  ;;  %v738_v44 = vor.u32 %v1011_v37, %v737_v36  ;;  %v1075_v47 = vld [vmem:[%s1386_s1 + $0x1b0] sm:$0xff]  ;;  %v1073_v53 = vld [vmem:[%s1386_s1 + $0x1a0] sm:$0xff] }
  0x10   :  { %595 = vmatpush.bf16.msra.mxu2 %v1041_v14  ;;  %v742_v45 = vor.u32 %v1008_v38, %v739_v39  ;;  %v1059_v48 = vld [vmem:[%s1386_s1 + $0x130] sm:$0xff]  ;;  %v1074_v50 = vld [vmem:[%s1386_s1 + $0x1a8] sm:$0xff]  ;;  %v1057_v54 = vld [vmem:[%s1386_s1 + $0x120] sm:$0xff] }
  0x11   :  { %614 = vmatpush.bf16.msra.mxu3 %v1049_v15  ;;  %v1067_v49 = vld [vmem:[%s1386_s1 + $0x170] sm:$0xff]  ;;  %v1058_v51 = vld [vmem:[%s1386_s1 + $0x128] sm:$0xff]  ;;  %v1065_v55 = vld [vmem:[%s1386_s1 + $0x160] sm:$0xff] }
  0x12   :  { %558 = vmatpush.bf16.msra.mxu0 %v1024_v16  ;;  %v1066_v52 = vld [vmem:[%s1386_s1 + $0x168] sm:$0xff]  ;;  %v757_v56 = vld [vmem:[%s1387_s0 + $0x38] sm:$0xf]  ;;  %v1017_v57 = vld [vmem:[%s1387_s0 + $0x50] sm:$0xf0] }
  0x13   :  { %577 = vmatpush.bf16.msra.mxu1 %v1032_v17  ;;  %v1014_v58 = vld [vmem:[%s1387_s0 + $0x3c] sm:$0xf]  ;;  %v759_v59 = vld [vmem:[%s1387_s0 + $0x54] sm:$0xf0]  ;;  %v765_v60 = vld [vmem:[%s1387_s0 + $0x40] sm:$0xf]  ;;  %v758_v2 = vor.u32 %v1017_v57, %v757_v56 }
  0x14   :  { %596 = vmatpush.bf16.msra.mxu2 %v1040_v18  ;;  %v1018_v61 = vld [vmem:[%s1387_s0 + $0x58] sm:$0xf0]  ;;  %v1015_v62 = vld [vmem:[%s1387_s0 + $0x44] sm:$0xf]  ;;  %v767_v63 = vld [vmem:[%s1387_s0 + $0x5c] sm:$0xf0]  ;;  %v762_v3 = vor.u32 %v1014_v58, %v759_v59 }
  0x15   :  { %615 = vmatpush.bf16.msra.mxu3 %v1048_v19  ;;  %v1072_v0 = vld [vmem:[%s1386_s1 + $0x198] sm:$0xff]  ;;  %v766_v4 = vor.u32 %v1018_v61, %v765_v60  ;;  %v770_v5 = vor.u32 %v1015_v62, %v767_v63  ;;  %v1071_v7 = vld [vmem:[%s1386_s1 + $0x190] sm:$0xff]  ;;  %v1070_v10 = vld [vmem:[%s1386_s1 + $0x188] sm:$0xff] }
  0x16   :  { %559 = vmatpush.bf16.msra.mxu0 %v1023_v20  ;;  %v1056_v1 = vld [vmem:[%s1386_s1 + $0x118] sm:$0xff]  ;;  %v1055_v8 = vld [vmem:[%s1386_s1 + $0x110] sm:$0xff]  ;;  %v1054_v11 = vld [vmem:[%s1386_s1 + $0x108] sm:$0xff] }
  0x17   :  { %578 = vmatpush.bf16.msra.mxu1 %v1031_v21  ;;  %v1064_v6 = vld [vmem:[%s1386_s1 + $0x158] sm:$0xff]  ;;  %v1063_v9 = vld [vmem:[%s1386_s1 + $0x150] sm:$0xff]  ;;  %v1062_v12 = vld [vmem:[%s1386_s1 + $0x148] sm:$0xff] }
  0x18   :  { %597 = vmatpush.bf16.msra.mxu2 %v1039_v22  ;;  %v1069_v13 = vld [vmem:[%s1386_s1 + $0x180] sm:$0xff]  ;;  %v745_v16 = vld [vmem:[%s1387_s0 + $0x10] sm:$0xf]  ;;  %v1012_v17 = vld [vmem:[%s1387_s0 + $0x28] sm:$0xf0] }
  0x19   :  { %616 = vmatpush.bf16.msra.mxu3 %v1047_v23  ;;  %v1053_v14 = vld [vmem:[%s1386_s1 + $0x100] sm:$0xff]  ;;  %v773_v18 = vld [vmem:[%s1387_s0 + $0x48] sm:$0xf]  ;;  %v1009_v20 = vld [vmem:[%s1387_s0 + $0x14] sm:$0xf] }
  0x1a   :  { %560 = vmatpush.bf16.msra.mxu0 %v1022_v24  ;;  %v1061_v15 = vld [vmem:[%s1386_s1 + $0x140] sm:$0xff]  ;;  %v747_v21 = vld [vmem:[%s1387_s0 + $0x2c] sm:$0xf0]  ;;  %v753_v22 = vld [vmem:[%s1387_s0 + $0x18] sm:$0xf]  ;;  %v746_v24 = vor.u32 %v1012_v17, %v745_v16 }
  0x1b   :  { %579 = vmatpush.bf16.msra.mxu1 %v1030_v25  ;;  %v1019_v19 = vld [vmem:[%s1387_s0 + $0x60] sm:$0xf0]  ;;  %v1013_v23 = vld [vmem:[%s1387_s0 + $0x30] sm:$0xf0] }
  0x1c   :  { %598 = vmatpush.bf16.msra.mxu2 %v1038_v26  ;;  %v774_v25 = vor.u32 %v1019_v19, %v773_v18  ;;  %v750_v26 = vor.u32 %v1009_v20, %v747_v21 }
  0x1d   :  { %617 = vmatpush.bf16.msra.mxu3 %v1046_v27  ;;  %v754_v27 = vor.u32 %v1013_v23, %v753_v22 }
  0x1e   :  { %561 = vmatpush.bf16.msra.mxu0 %v1021_v28  ;;  %v1016_v28 = vld [vmem:[%s1387_s0 + $0x4c] sm:$0xf] }
  0x1f   :  { %580 = vmatpush.bf16.msra.mxu1 %v1029_v29  ;;  %v775_v29 = vld [vmem:[%s1387_s0 + $0x64] sm:$0xf0] }
  0x20   :  { %599 = vmatpush.bf16.msra.mxu2 %v1037_v30  ;;  %v781_v30 = vld [vmem:[%s1387_s0 + $0x50] sm:$0xf]  ;;  %v778_v32 = vor.u32 %v1016_v28, %v775_v29 }
  0x21   :  { %618 = vmatpush.bf16.msra.mxu3 %v1045_v31  ;;  %562 = vmatmul.bf16.vlgmr.msra.gmra.mxu0 %v730_v42  ;;  %v1020_v31 = vld [vmem:[%s1387_s0 + $0x68] sm:$0xf0] }
  0x22   :  { %630 = vmatpush.bf16.msrb.mxu0 %v1060_v41  ;;  %581 = vmatmul.bf16.vlgmr.msra.gmra.mxu1 %v734_v43  ;;  %v782_v33 = vor.u32 %v1020_v31, %v781_v30 }
  0x23   :  { %600 = vmatmul.bf16.vlgmr.msra.gmra.mxu2 %v738_v44  ;;  %649 = vmatpush.bf16.msrb.mxu1 %v1068_v46 }
  0x24   :  { %668 = vmatpush.bf16.msrb.mxu2 %v1076_v40  ;;  %619 = vmatmul.bf16.vlgmr.msra.gmra.mxu3 %v742_v45 }
  0x25   :  { %1077 = vmatpush.bf16.msrb.mxu3 %v1060_v41 }
  0x26   :  { %631 = vmatpush.bf16.msrb.mxu0 %v1059_v48 }
  0x27   :  { %650 = vmatpush.bf16.msrb.mxu1 %v1067_v49 }
  0x28   :  { %669 = vmatpush.bf16.msrb.mxu2 %v1075_v47 }
  0x29   :  { %1078 = vmatpush.bf16.msrb.mxu3 %v1059_v48 }
  0x2a   :  { %632 = vmatpush.bf16.msrb.mxu0 %v1058_v51 }
  0x2b   :  { %651 = vmatpush.bf16.msrb.mxu1 %v1066_v52 }
  0x2c   :  { %670 = vmatpush.bf16.msrb.mxu2 %v1074_v50  ;;  %v1086_v50 = vmov 0.0  }
  0x2d   :  { %1079 = vmatpush.bf16.msrb.mxu3 %v1058_v51  ;;  %17 = vst [vmem:[%s1388_s3] sm:$0x3] %v1086_v50 }
  0x2e   :  { %633 = vmatpush.bf16.msrb.mxu0 %v1057_v54 }
  0x2f   :  { %652 = vmatpush.bf16.msrb.mxu1 %v1065_v55 }
  0x30   :  { %671 = vmatpush.bf16.msrb.mxu2 %v1073_v53 }
  0x31   :  { %1080 = vmatpush.bf16.msrb.mxu3 %v1057_v54  ;;  %567 = vmatmul.bf16.gmra.mxu0 %v758_v2 }
  0x32   :  { %634 = vmatpush.bf16.msrb.mxu0 %v1056_v1  ;;  %586 = vmatmul.bf16.gmra.mxu1 %v762_v3 }
  0x33   :  { %605 = vmatmul.bf16.gmra.mxu2 %v766_v4  ;;  %653 = vmatpush.bf16.msrb.mxu1 %v1064_v6 }
  0x34   :  { %672 = vmatpush.bf16.msrb.mxu2 %v1072_v0  ;;  %624 = vmatmul.bf16.gmra.mxu3 %v770_v5 }
  0x35   :  { %1081 = vmatpush.bf16.msrb.mxu3 %v1056_v1 }
  0x36   :  { %635 = vmatpush.bf16.msrb.mxu0 %v1055_v8 }
  0x37   :  { %654 = vmatpush.bf16.msrb.mxu1 %v1063_v9 }
  0x38   :  { %673 = vmatpush.bf16.msrb.mxu2 %v1071_v7 }
  0x39   :  { %1082 = vmatpush.bf16.msrb.mxu3 %v1055_v8 }
  0x3a   :  { %636 = vmatpush.bf16.msrb.mxu0 %v1054_v11 }
  0x3b   :  { %655 = vmatpush.bf16.msrb.mxu1 %v1062_v12 }
  0x3c   :  { %674 = vmatpush.bf16.msrb.mxu2 %v1070_v10 }
  0x3d   :  { %1083 = vmatpush.bf16.msrb.mxu3 %v1054_v11 }
  0x3e   :  { %637 = vmatpush.bf16.msrb.mxu0 %v1053_v14 }
  0x3f   :  { %656 = vmatpush.bf16.msrb.mxu1 %v1061_v15 }
  0x40   :  { %675 = vmatpush.bf16.msrb.mxu2 %v1069_v13 }
  0x41   :  { %1084 = vmatpush.bf16.msrb.mxu3 %v1053_v14  ;;  %638 = vmatmul.bf16.vlgmr.msrb.gmra.mxu0 %v746_v24 }
  0x42   :  { %657 = vmatmul.bf16.vlgmr.msrb.gmra.mxu1 %v750_v26 }
  0x43   :  { %676 = vmatmul.bf16.vlgmr.msrb.gmra.mxu2 %v754_v27 }
  0x44   :  { %643 = vmatmul.bf16.vlgmr.msrb.gmra.mxu3 %v774_v25 }
  0x52   :  { %662 = vmatmul.bf16.gmra.mxu1 %v778_v32 }
  0x53   :  { %681 = vmatmul.bf16.gmra.mxu2 %v782_v33 }
  0x9e   :  { %v563_v34 = vpop.f32.mrf.mxu0 }
  0x9f   :  { %v582_v35 = vpop.f32.mrf.mxu1 }
  0xa0   :  { %v583_v47 = vadd.f32 %v582_v35, %v563_v34 }
  0xa6   :  { %v601_v36 = vpop.f32.mrf.mxu2  ;;  %v565_v38 = vpop.f32.mrf.mxu0 }
  0xa7   :  { %v620_v37 = vpop.f32.mrf.mxu3  ;;  %v584_v39 = vpop.f32.mrf.mxu1  ;;  %v602_v49 = vadd.f32 %v601_v36, %v583_v47 }
  0xa8   :  { %v585_v55 = vadd.f32 %v584_v39, %v565_v38 }
  0xa9   :  { %v621_v53 = vadd.f32 %v620_v37, %v602_v49 }
  0xae   :  { %v603_v40 = vpop.f32.mrf.mxu2  ;;  %v568_v41 = vpop.f32.mrf.mxu0 }
  0xaf   :  { %v587_v42 = vpop.f32.mrf.mxu1  ;;  %v622_v43 = vpop.f32.mrf.mxu3  ;;  %v604_v57 = vadd.f32 %v603_v40, %v585_v55 }
  0xb0   :  { %v588_v1 = vadd.f32 %v587_v42, %v568_v41  ;;  %v691_v42 = vld [vmem:[%s1388_s3] sm:$0x1] }
  0xb1   :  { %v623_v62 = vadd.f32 %v622_v43, %v604_v57 }
  0xb6   :  { %v606_v44 = vpop.f32.mrf.mxu2  ;;  %v570_v45 = vpop.f32.mrf.mxu0 }
  0xb7   :  { %v589_v46 = vpop.f32.mrf.mxu1  ;;  %v625_v48 = vpop.f32.mrf.mxu3  ;;  %v607_v3 = vadd.f32 %v606_v44, %v588_v1 }
  0xb8   :  { %v590_v10 = vadd.f32 %v589_v46, %v570_v45  ;;  %v703_v45 = vld [vmem:[%s1388_s3 + $0x1] sm:$0x1] }
  0xb9   :  { %v626_v9 = vadd.f32 %v625_v48, %v607_v3 }
  0xbe   :  { %v608_v51 = vpop.f32.mrf.mxu2  ;;  %v639_v52 = vpop.f32.mrf.mxu0 }
  0xbf   :  { %v658_v54 = vpop.f32.mrf.mxu1  ;;  %v640_v56 = vadd.f32 %v639_v52, %v621_v53  ;;  %v627_v58 = vpop.f32.mrf.mxu3  ;;  %v609_v12 = vadd.f32 %v608_v51, %v590_v10 }
  0xc1   :  { %v659_v59 = vadd.f32 %v658_v54, %v640_v56  ;;  %v628_v17 = vadd.f32 %v627_v58, %v609_v12 }
  0xc6   :  { %v677_v60 = vpop.f32.mrf.mxu2  ;;  %v641_v61 = vpop.f32.mrf.mxu0 }
  0xc7   :  { %v678_v63 = vadd.f32 %v677_v60, %v659_v59  ;;  %v660_v0 = vpop.f32.mrf.mxu1  ;;  %v642_v2 = vadd.f32 %v641_v61, %v623_v62  ;;  %v644_v5 = vpop.f32.mrf.mxu3 }
  0xc8   :  { %v645_v11 = vadd.f32 %v644_v5, %v626_v9 }
  0xc9   :  { %687 = vst [vmem:[%s1389_s2] sm:$0xff] %v678_v63  ;;  %v661_v4 = vadd.f32 %v660_v0, %v642_v2  ;;  %v704_v21 = vmul.f32 %v678_v63, %v678_v63 }
  0xce   :  { %v679_v6 = vpop.f32.mrf.mxu2 }
  0xcf   :  { %v680_v7 = vadd.f32 %v679_v6, %v661_v4  ;;  %v663_v8 = vpop.f32.mrf.mxu1  ;;  %v646_v16 = vpop.f32.mrf.mxu3 }
  0xd0   :  { %v664_v13 = vadd.f32 %v663_v8, %v645_v11  ;;  %v647_v19 = vadd.f32 %v646_v16, %v628_v17 }
  0xd1   :  { %688 = vst [vmem:[%s1389_s2 + $0x8] sm:$0xff] %v680_v7  ;;  %v705_v20 = vmul.f32 %v680_v7, %v680_v7  ;;  %v692_v22 = vadd.f32 %v680_v7, %v678_v63 }
  0xd3   :  { %v708_v26 = vadd.f32 %v705_v20, %v704_v21 }
  0xd6   :  { %v682_v14 = vpop.f32.mrf.mxu2 }
  0xd7   :  { %v683_v15 = vadd.f32 %v682_v14, %v664_v13  ;;  %v665_v18 = vpop.f32.mrf.mxu1 }
  0xd8   :  { %v666_v24 = vadd.f32 %v665_v18, %v647_v19 }
  0xd9   :  { %689 = vst [vmem:[%s1389_s2 + $0x10] sm:$0xff] %v683_v15  ;;  %v706_v23 = vmul.f32 %v683_v15, %v683_v15  ;;  %v693_v27 = vadd.f32 %v692_v22, %v683_v15 }
  0xdb   :  { %v709_v29 = vadd.f32 %v708_v26, %v706_v23 }
  0xde   :  { %v684_v25 = vpop.f32.mrf.mxu2 }
  0xdf   :  { %v685_v28 = vadd.f32 %v684_v25, %v666_v24 }
  0xe1   :  { %690 = vst [vmem:[%s1389_s2 + $0x18] sm:$0xff] %v685_v28  ;;  %v694_v30 = vadd.f32 %v693_v27, %v685_v28  ;;  %v707_v31 = vmul.f32 %v685_v28, %v685_v28 }
  0xe3   :  { %v695_v32 = vrot.slane %v694_v30, 4  ;;  %v710_v33 = vadd.f32 %v709_v29, %v707_v31 }
  0xe5   :  { %v696_v34 = vadd.f32 %v695_v32, %v694_v30  ;;  %v711_v35 = vrot.slane %v710_v33, 4 }
  0xe7   :  { %v697_v36 = vrot.slane %v696_v34, 2  ;;  %v712_v37 = vadd.f32 %v711_v35, %v710_v33 }
  0xe9   :  { %v698_v38 = vadd.f32 %v697_v36, %v696_v34  ;;  %v713_v39 = vrot.slane %v712_v37, 2 }
  0xeb   :  { %v699_v40 = vrot.slane %v698_v38, 1  ;;  %v714_v41 = vadd.f32 %v713_v39, %v712_v37 }
  0xed   :  { %v700_v43 = vadd.f32 %v699_v40, %v698_v38  ;;  %v715_v44 = vrot.slane %v714_v41, 1 }
  0xef   :  { %v701_v46 = vadd.f32 %v700_v43, %v691_v42  ;;  %v716_v47 = vadd.f32 %v715_v44, %v714_v41 }
  0xf1   :  { %702 = vst [vmem:[%s1388_s3] sm:$0x1] %v701_v46  ;;  %v717_v48 = vadd.f32 %v716_v47, %v703_v45 }
  0xf3   :  { %718 = vst [vmem:[%s1388_s3 + $0x1] sm:$0x1] %v717_v48 }

// kernel: simple_discriminator_forward.16
= control target key start
LH: loop header
LB: loop body
LE: loop exit
PB: predicated region body
PF: predicated region fallthrough
CT: control target
= control target key end

     0   :  { %s115_s1 = inlined_call_operand.vmem [shape: f32[2,128], index: 1, kind: input, shape index: {}]   ;;  %s116_s2 = inlined_call_operand.vmem [shape: f32[1,128], index: 2, kind: input, shape index: {}]   ;;  %s117_s0 = inlined_call_operand.vmem [shape: f32[16,128], index: 0, kind: input, shape index: {}]   ;;  %s118_s3 = inlined_call_operand.vmem [shape: f32[1,128], index: 3, kind: input, shape index: {}]   ;;  %s119_s4 = inlined_call_operand.vmem [shape: f32[16,128], index: 4, kind: output, shape index: {}]  }
   0x1   :  { %v17_v0 = vld [vmem:[%s115_s1] sm:$0x1]  ;;  %v19_v1 = vld [vmem:[%s115_s1 + $0x1] sm:$0x1]  ;;  %v41_v19 = vld [vmem:[%s117_s0 + $0x8] sm:$0xff] }
   0x2   :  { %v18_v2 = vmul.f32 0.125, %v17_v0  ;;  %v20_v3 = vmul.f32 0.125, %v19_v1  ;;  %v24_v13 = vld [vmem:[%s116_s2] sm:$0x1] }
   0x3   :  { %v37_v17 = vld [vmem:[%s118_s3] sm:$0x1] }
   0x4   :  { %v21_v4 = vmul.f32 %v18_v2, %v18_v2  ;;  %v40_v18 = vld [vmem:[%s117_s0] sm:$0xff] }
   0x6   :  { %v22_v5 = vsub.f32 %v20_v3, %v21_v4 }
   0x8   :  { %v23_v6 = vmax.f32 %v22_v5, 0.0 }
   0xa   :  { %v25_v7 = vadd.f32 1e-05, %v23_v6 }
   0xc   :  { %64 = vrsqrt.f32 %v25_v7  ;;  %vm32_vm0 = vweird.f32 %v25_v7 }
  0x12   :  { %v65_v8 = vpop.eup %64 }
  0x13   :  { %v27_v9 = vmul.f32 %v65_v8, %v25_v7  ;;  %vm33_vm1 = vweird.f32 %v65_v8 }
  0x14   :  { %vm34_vm2 = vmor %vm32_vm0, %vm33_vm1 }
  0x15   :  { %v28_v10 = vmul.f32 %v65_v8, %v27_v9 }
  0x17   :  { %v29_v11 = vmul.f32 0.5, %v28_v10 }
  0x19   :  { %v30_v12 = vsub.f32 1.5, %v29_v11 }
  0x1b   :  { %v31_v14 = vmul.f32 %v65_v8, %v30_v12 }
  0x1d   :  { %v35_v15 = vsel %vm34_vm2, %v65_v8, %v31_v14 }
  0x1e   :  { %v36_v16 = vmul.f32 %v35_v15, %v24_v13 }
  0x20   :  { %v38_v20 = vmul.f32 %v36_v16, %v18_v2  ;;  %v43_v21 = vperm.slane %v36_v16, 0 }
  0x22   :  { %v39_v22 = vsub.f32 %v37_v17, %v38_v20  ;;  %v45_v23 = vmul.f32 %v43_v21, %v40_v18  ;;  %v46_v24 = vmul.f32 %v43_v21, %v41_v19 }
  0x24   :  { %v48_v25 = vperm.slane %v39_v22, 0 }
  0x26   :  { %v50_v26 = vadd.f32 %v48_v25, %v45_v23  ;;  %v51_v27 = vadd.f32 %v48_v25, %v46_v24 }
  0x28   :  { %vm52_vm3 = vcmp.ge.f32.partialorder %v50_v26, 0.0  ;;  %v54_v28 = vmul.f32 0.2, %v50_v26  ;;  %vm53_vm4 = vcmp.ge.f32.partialorder %v51_v27, 0.0  ;;  %v55_v29 = vmul.f32 0.2, %v51_v27 }
  0x2a   :  { %v56_v30 = vsel %vm52_vm3, %v50_v26, %v54_v28  ;;  %v57_v31 = vsel %vm53_vm4, %v51_v27, %v55_v29 }
  0x2b   :  { %58 = vst [vmem:[%s119_s4] sm:$0xff] %v56_v30 }
  0x2c   :  { %59 = vst [vmem:[%s119_s4 + $0x8] sm:$0xff] %v57_v31 }

// kernel: simple_discriminator_forward.15
= control target key start
LH: loop header
LB: loop body
LE: loop exit
PB: predicated region body
PF: predicated region fallthrough
CT: control target
= control target key end

     0   :  { %s2162_s1 = inlined_call_operand.vmem [shape: bf16[1664,128], index: 1, kind: input, shape index: {}]   ;;  %s2163_s0 = inlined_call_operand.vmem [shape: bf16[16,1664], index: 0, kind: input, shape index: {}]   ;;  %s2164_s3 = inlined_call_operand.vmem [shape: f32[2,128], index: 3, kind: output, shape index: {1}]   ;;  %s2165_s2 = inlined_call_operand.vmem [shape: f32[16,128], index: 2, kind: output, shape index: {0}]  }
   0x1   :  { %v1632_v0 = vld [vmem:[%s2162_s1 + $0x38] sm:$0xff]  ;;  %v1631_v4 = vld [vmem:[%s2162_s1 + $0x30] sm:$0xff]  ;;  %v1630_v8 = vld [vmem:[%s2162_s1 + $0x28] sm:$0xff] }
   0x2   :  { %v1648_v1 = vld [vmem:[%s2162_s1 + $0xb8] sm:$0xff]  ;;  %930 = vmatpush.bf16.msra.mxu0 %v1632_v0  ;;  %v1647_v5 = vld [vmem:[%s2162_s1 + $0xb0] sm:$0xff]  ;;  %v1646_v9 = vld [vmem:[%s2162_s1 + $0xa8] sm:$0xff] }
   0x3   :  { %v1640_v2 = vld [vmem:[%s2162_s1 + $0x78] sm:$0xff]  ;;  %958 = vmatpush.bf16.msra.mxu2 %v1648_v1  ;;  %v1639_v6 = vld [vmem:[%s2162_s1 + $0x70] sm:$0xff]  ;;  %v1638_v10 = vld [vmem:[%s2162_s1 + $0x68] sm:$0xff] }
   0x4   :  { %v1656_v3 = vld [vmem:[%s2162_s1 + $0xf8] sm:$0xff]  ;;  %944 = vmatpush.bf16.msra.mxu1 %v1640_v2  ;;  %v1655_v7 = vld [vmem:[%s2162_s1 + $0xf0] sm:$0xff]  ;;  %v1654_v11 = vld [vmem:[%s2162_s1 + $0xe8] sm:$0xff] }
   0x5   :  { %972 = vmatpush.bf16.msra.mxu3 %v1656_v3  ;;  %v1629_v12 = vld [vmem:[%s2162_s1 + $0x20] sm:$0xff]  ;;  %v1628_v16 = vld [vmem:[%s2162_s1 + $0x18] sm:$0xff]  ;;  %v1627_v20 = vld [vmem:[%s2162_s1 + $0x10] sm:$0xff] }
   0x6   :  { %931 = vmatpush.bf16.msra.mxu0 %v1631_v4  ;;  %v1645_v13 = vld [vmem:[%s2162_s1 + $0xa0] sm:$0xff]  ;;  %v1644_v17 = vld [vmem:[%s2162_s1 + $0x98] sm:$0xff]  ;;  %v1643_v21 = vld [vmem:[%s2162_s1 + $0x90] sm:$0xff] }
   0x7   :  { %959 = vmatpush.bf16.msra.mxu2 %v1647_v5  ;;  %v1637_v14 = vld [vmem:[%s2162_s1 + $0x60] sm:$0xff]  ;;  %v1636_v18 = vld [vmem:[%s2162_s1 + $0x58] sm:$0xff]  ;;  %v1635_v22 = vld [vmem:[%s2162_s1 + $0x50] sm:$0xff] }
   0x8   :  { %945 = vmatpush.bf16.msra.mxu1 %v1639_v6  ;;  %v1653_v15 = vld [vmem:[%s2162_s1 + $0xe0] sm:$0xff]  ;;  %v1652_v19 = vld [vmem:[%s2162_s1 + $0xd8] sm:$0xff]  ;;  %v1651_v23 = vld [vmem:[%s2162_s1 + $0xd0] sm:$0xff] }
   0x9   :  { %973 = vmatpush.bf16.msra.mxu3 %v1655_v7  ;;  %v1626_v24 = vld [vmem:[%s2162_s1 + $0x8] sm:$0xff]  ;;  %v1625_v28 = vld [vmem:[%s2162_s1] sm:$0xff]  ;;  %v1664_v30 = vld [vmem:[%s2162_s1 + $0x138] sm:$0xff] }
   0xa   :  { %932 = vmatpush.bf16.msra.mxu0 %v1630_v8  ;;  %v1642_v25 = vld [vmem:[%s2162_s1 + $0x88] sm:$0xff]  ;;  %v1641_v29 = vld [vmem:[%s2162_s1 + $0x80] sm:$0xff]  ;;  %v1680_v31 = vld [vmem:[%s2162_s1 + $0x1b8] sm:$0xff] }
   0xb   :  { %960 = vmatpush.bf16.msra.mxu2 %v1646_v9  ;;  %v1634_v26 = vld [vmem:[%s2162_s1 + $0x48] sm:$0xff]  ;;  %v1633_v32 = vld [vmem:[%s2162_s1 + $0x40] sm:$0xff]  ;;  %v1618_v35 = vld [vmem:[%s2163_s0 + $0x30] sm:$0xf0] }
   0xc   :  { %946 = vmatpush.bf16.msra.mxu1 %v1638_v10  ;;  %v1650_v27 = vld [vmem:[%s2162_s1 + $0xc8] sm:$0xff]  ;;  %v1649_v33 = vld [vmem:[%s2162_s1 + $0xc0] sm:$0xff]  ;;  %v1619_v37 = vld [vmem:[%s2163_s0 + $0x38] sm:$0xf0] }
   0xd   :  { %974 = vmatpush.bf16.msra.mxu3 %v1654_v11  ;;  %v1146_v34 = vld [vmem:[%s2163_s0] sm:$0xf]  ;;  %v1154_v36 = vld [vmem:[%s2163_s0 + $0x8] sm:$0xf]  ;;  %v1672_v38 = vld [vmem:[%s2162_s1 + $0x178] sm:$0xff] }
   0xe   :  { %933 = vmatpush.bf16.msra.mxu0 %v1629_v12  ;;  %v1688_v39 = vld [vmem:[%s2162_s1 + $0x1f8] sm:$0xff]  ;;  %v1612_v40 = vld [vmem:[%s2163_s0 + $0x4] sm:$0xf]  ;;  %v1613_v42 = vld [vmem:[%s2163_s0 + $0xc] sm:$0xf]  ;;  %v1147_v44 = vor.u32 %v1618_v35, %v1146_v34  ;;  %v1155_v45 = vor.u32 %v1619_v37, %v1154_v36 }
   0xf   :  { %961 = vmatpush.bf16.msra.mxu2 %v1645_v13  ;;  %v1148_v41 = vld [vmem:[%s2163_s0 + $0x34] sm:$0xf0]  ;;  %v1156_v43 = vld [vmem:[%s2163_s0 + $0x3c] sm:$0xf0]  ;;  %v1663_v46 = vld [vmem:[%s2162_s1 + $0x130] sm:$0xff] }
  0x10   :  { %947 = vmatpush.bf16.msra.mxu1 %v1637_v14  ;;  %v1679_v47 = vld [vmem:[%s2162_s1 + $0x1b0] sm:$0xff]  ;;  %v1151_v48 = vor.u32 %v1612_v40, %v1148_v41  ;;  %v1159_v49 = vor.u32 %v1613_v42, %v1156_v43  ;;  %v1662_v52 = vld [vmem:[%s2162_s1 + $0x128] sm:$0xff]  ;;  %v1661_v56 = vld [vmem:[%s2162_s1 + $0x120] sm:$0xff] }
  0x11   :  { %975 = vmatpush.bf16.msra.mxu3 %v1653_v15  ;;  %v1671_v50 = vld [vmem:[%s2162_s1 + $0x170] sm:$0xff]  ;;  %v1678_v53 = vld [vmem:[%s2162_s1 + $0x1a8] sm:$0xff]  ;;  %v1677_v57 = vld [vmem:[%s2162_s1 + $0x1a0] sm:$0xff] }
  0x12   :  { %934 = vmatpush.bf16.msra.mxu0 %v1628_v16  ;;  %v1687_v51 = vld [vmem:[%s2162_s1 + $0x1f0] sm:$0xff]  ;;  %v1670_v54 = vld [vmem:[%s2162_s1 + $0x168] sm:$0xff]  ;;  %v1669_v58 = vld [vmem:[%s2162_s1 + $0x160] sm:$0xff] }
  0x13   :  { %962 = vmatpush.bf16.msra.mxu2 %v1644_v17  ;;  %v1686_v55 = vld [vmem:[%s2162_s1 + $0x1e8] sm:$0xff]  ;;  %v1685_v59 = vld [vmem:[%s2162_s1 + $0x1e0] sm:$0xff]  ;;  %v1660_v60 = vld [vmem:[%s2162_s1 + $0x118] sm:$0xff] }
  0x14   :  { %948 = vmatpush.bf16.msra.mxu1 %v1636_v18  ;;  %v1676_v61 = vld [vmem:[%s2162_s1 + $0x198] sm:$0xff]  ;;  %v1659_v0 = vld [vmem:[%s2162_s1 + $0x110] sm:$0xff]  ;;  %v1658_v4 = vld [vmem:[%s2162_s1 + $0x108] sm:$0xff] }
  0x15   :  { %976 = vmatpush.bf16.msra.mxu3 %v1652_v19  ;;  %v1668_v62 = vld [vmem:[%s2162_s1 + $0x158] sm:$0xff]  ;;  %v1675_v1 = vld [vmem:[%s2162_s1 + $0x190] sm:$0xff]  ;;  %v1674_v5 = vld [vmem:[%s2162_s1 + $0x188] sm:$0xff] }
  0x16   :  { %935 = vmatpush.bf16.msra.mxu0 %v1627_v20  ;;  %v1684_v63 = vld [vmem:[%s2162_s1 + $0x1d8] sm:$0xff]  ;;  %v1667_v2 = vld [vmem:[%s2162_s1 + $0x150] sm:$0xff]  ;;  %v1666_v6 = vld [vmem:[%s2162_s1 + $0x148] sm:$0xff] }
  0x17   :  { %963 = vmatpush.bf16.msra.mxu2 %v1643_v21  ;;  %v1683_v3 = vld [vmem:[%s2162_s1 + $0x1d0] sm:$0xff]  ;;  %v1682_v7 = vld [vmem:[%s2162_s1 + $0x1c8] sm:$0xff]  ;;  %v1657_v8 = vld [vmem:[%s2162_s1 + $0x100] sm:$0xff] }
  0x18   :  { %949 = vmatpush.bf16.msra.mxu1 %v1635_v22  ;;  %v1673_v9 = vld [vmem:[%s2162_s1 + $0x180] sm:$0xff]  ;;  %v1696_v10 = vld [vmem:[%s2162_s1 + $0x238] sm:$0xff]  ;;  %v1162_v12 = vld [vmem:[%s2163_s0 + $0x10] sm:$0xf] }
  0x19   :  { %977 = vmatpush.bf16.msra.mxu3 %v1651_v23  ;;  %v1712_v11 = vld [vmem:[%s2162_s1 + $0x2b8] sm:$0xff]  ;;  %v1620_v13 = vld [vmem:[%s2163_s0 + $0x40] sm:$0xf0]  ;;  %v1621_v15 = vld [vmem:[%s2163_s0 + $0x48] sm:$0xf0] }
  0x1a   :  { %936 = vmatpush.bf16.msra.mxu0 %v1626_v24  ;;  %v1170_v14 = vld [vmem:[%s2163_s0 + $0x18] sm:$0xf]  ;;  %v1665_v16 = vld [vmem:[%s2162_s1 + $0x140] sm:$0xff]  ;;  %v1614_v18 = vld [vmem:[%s2163_s0 + $0x14] sm:$0xf]  ;;  %v1163_v22 = vor.u32 %v1620_v13, %v1162_v12 }
  0x1b   :  { %964 = vmatpush.bf16.msra.mxu2 %v1642_v25  ;;  %v1681_v17 = vld [vmem:[%s2162_s1 + $0x1c0] sm:$0xff]  ;;  %v1164_v19 = vld [vmem:[%s2163_s0 + $0x44] sm:$0xf0]  ;;  %v1615_v20 = vld [vmem:[%s2163_s0 + $0x1c] sm:$0xf]  ;;  %v1171_v23 = vor.u32 %v1621_v15, %v1170_v14 }
  0x1c   :  { %950 = vmatpush.bf16.msra.mxu1 %v1634_v26  ;;  %v1172_v21 = vld [vmem:[%s2163_s0 + $0x4c] sm:$0xf0]  ;;  %v1704_v24 = vld [vmem:[%s2162_s1 + $0x278] sm:$0xff]  ;;  %v1167_v26 = vor.u32 %v1614_v18, %v1164_v19  ;;  %v1702_v34 = vld [vmem:[%s2162_s1 + $0x268] sm:$0xff] }
  0x1d   :  { %978 = vmatpush.bf16.msra.mxu3 %v1650_v27  ;;  %v1720_v25 = vld [vmem:[%s2162_s1 + $0x2f8] sm:$0xff]  ;;  %v1175_v27 = vor.u32 %v1615_v20, %v1172_v21  ;;  %v1718_v35 = vld [vmem:[%s2162_s1 + $0x2e8] sm:$0xff]  ;;  %v1693_v36 = vld [vmem:[%s2162_s1 + $0x220] sm:$0xff] }
  0x1e   :  { %937 = vmatpush.bf16.msra.mxu0 %v1625_v28  ;;  %v1695_v28 = vld [vmem:[%s2162_s1 + $0x230] sm:$0xff]  ;;  %v1709_v37 = vld [vmem:[%s2162_s1 + $0x2a0] sm:$0xff]  ;;  %v1692_v40 = vld [vmem:[%s2162_s1 + $0x218] sm:$0xff] }
  0x1f   :  { %965 = vmatpush.bf16.msra.mxu2 %v1641_v29  ;;  %v1711_v29 = vld [vmem:[%s2162_s1 + $0x2b0] sm:$0xff]  ;;  %v1708_v41 = vld [vmem:[%s2162_s1 + $0x298] sm:$0xff]  ;;  %v1624_v13 = vld [vmem:[%s2163_s0 + $0x60] sm:$0xf0] }
  0x20   :  { %951 = vmatpush.bf16.msra.mxu1 %v1633_v32  ;;  %v1694_v32 = vld [vmem:[%s2162_s1 + $0x228] sm:$0xff]  ;;  %v1700_v42 = vld [vmem:[%s2162_s1 + $0x258] sm:$0xff]  ;;  %v1194_v12 = vld [vmem:[%s2163_s0 + $0x30] sm:$0xf] }
  0x21   :  { %979 = vmatpush.bf16.msra.mxu3 %v1649_v33  ;;  %938 = vmatmul.bf16.vlgmr.msra.gmra.mxu0 %v1147_v44  ;;  %v1710_v33 = vld [vmem:[%s2162_s1 + $0x2a8] sm:$0xff]  ;;  %v1716_v43 = vld [vmem:[%s2162_s1 + $0x2d8] sm:$0xff]  ;;  %v1691_v44 = vld [vmem:[%s2162_s1 + $0x210] sm:$0xff]  ;;  %v1195_v14 = vor.u32 %v1624_v13, %v1194_v12 }
  0x22   :  { %986 = vmatpush.bf16.msrb.mxu0 %v1664_v30  ;;  %966 = vmatmul.bf16.vlgmr.msra.gmra.mxu2 %v1155_v45  ;;  %v1703_v30 = vld [vmem:[%s2162_s1 + $0x270] sm:$0xff] }
  0x23   :  { %1014 = vmatpush.bf16.msrb.mxu2 %v1680_v31  ;;  %952 = vmatmul.bf16.vlgmr.msra.gmra.mxu1 %v1151_v48  ;;  %v1719_v31 = vld [vmem:[%s2162_s1 + $0x2f0] sm:$0xff]  ;;  %v1690_v48 = vld [vmem:[%s2162_s1 + $0x208] sm:$0xff] }
  0x24   :  { %1000 = vmatpush.bf16.msrb.mxu1 %v1672_v38  ;;  %980 = vmatmul.bf16.vlgmr.msra.gmra.mxu3 %v1159_v49  ;;  %v1701_v38 = vld [vmem:[%s2162_s1 + $0x260] sm:$0xff]  ;;  %v1707_v45 = vld [vmem:[%s2162_s1 + $0x290] sm:$0xff]  ;;  %v1706_v49 = vld [vmem:[%s2162_s1 + $0x288] sm:$0xff] }
  0x25   :  { %1028 = vmatpush.bf16.msrb.mxu3 %v1688_v39  ;;  %v1717_v39 = vld [vmem:[%s2162_s1 + $0x2e0] sm:$0xff] }
  0x26   :  { %987 = vmatpush.bf16.msrb.mxu0 %v1663_v46  ;;  %v1699_v46 = vld [vmem:[%s2162_s1 + $0x250] sm:$0xff] }
  0x27   :  { %1015 = vmatpush.bf16.msrb.mxu2 %v1679_v47  ;;  %v1715_v47 = vld [vmem:[%s2162_s1 + $0x2d0] sm:$0xff] }
  0x28   :  { %1001 = vmatpush.bf16.msrb.mxu1 %v1671_v50  ;;  %v1698_v50 = vld [vmem:[%s2162_s1 + $0x248] sm:$0xff] }
  0x29   :  { %1029 = vmatpush.bf16.msrb.mxu3 %v1687_v51  ;;  %v1714_v51 = vld [vmem:[%s2162_s1 + $0x2c8] sm:$0xff] }
  0x2a   :  { %988 = vmatpush.bf16.msrb.mxu0 %v1662_v52  ;;  %v1689_v52 = vld [vmem:[%s2162_s1 + $0x200] sm:$0xff] }
  0x2b   :  { %1016 = vmatpush.bf16.msrb.mxu2 %v1678_v53  ;;  %v1705_v53 = vld [vmem:[%s2162_s1 + $0x280] sm:$0xff] }
  0x2c   :  { %1002 = vmatpush.bf16.msrb.mxu1 %v1670_v54  ;;  %v1728_v54 = vld [vmem:[%s2162_s1 + $0x338] sm:$0xff] }
  0x2d   :  { %1030 = vmatpush.bf16.msrb.mxu3 %v1686_v55  ;;  %v1178_v55 = vld [vmem:[%s2163_s0 + $0x20] sm:$0xf] }
  0x2e   :  { %989 = vmatpush.bf16.msrb.mxu0 %v1661_v56  ;;  %v1622_v56 = vld [vmem:[%s2163_s0 + $0x50] sm:$0xf0] }
  0x2f   :  { %1017 = vmatpush.bf16.msrb.mxu2 %v1677_v57  ;;  %v1186_v57 = vld [vmem:[%s2163_s0 + $0x28] sm:$0xf] }
  0x30   :  { %1003 = vmatpush.bf16.msrb.mxu1 %v1669_v58  ;;  %v1623_v58 = vld [vmem:[%s2163_s0 + $0x58] sm:$0xf0] }
  0x31   :  { %1031 = vmatpush.bf16.msrb.mxu3 %v1685_v59  ;;  %v1697_v59 = vld [vmem:[%s2162_s1 + $0x240] sm:$0xff] }
  0x32   :  { %990 = vmatpush.bf16.msrb.mxu0 %v1660_v60  ;;  %v1713_v60 = vld [vmem:[%s2162_s1 + $0x2c0] sm:$0xff] }
  0x33   :  { %1018 = vmatpush.bf16.msrb.mxu2 %v1676_v61  ;;  %v1616_v61 = vld [vmem:[%s2163_s0 + $0x24] sm:$0xf] }
  0x34   :  { %1004 = vmatpush.bf16.msrb.mxu1 %v1668_v62  ;;  %v1180_v62 = vld [vmem:[%s2163_s0 + $0x54] sm:$0xf0] }
  0x35   :  { %1032 = vmatpush.bf16.msrb.mxu3 %v1684_v63  ;;  %v1617_v63 = vld [vmem:[%s2163_s0 + $0x2c] sm:$0xf] }
  0x36   :  { %991 = vmatpush.bf16.msrb.mxu0 %v1659_v0  ;;  %v1188_v0 = vld [vmem:[%s2163_s0 + $0x5c] sm:$0xf0] }
  0x37   :  { %1019 = vmatpush.bf16.msrb.mxu2 %v1675_v1  ;;  %v1179_v1 = vor.u32 %v1622_v56, %v1178_v55 }
  0x38   :  { %1005 = vmatpush.bf16.msrb.mxu1 %v1667_v2  ;;  %v1187_v2 = vor.u32 %v1623_v58, %v1186_v57 }
  0x39   :  { %1033 = vmatpush.bf16.msrb.mxu3 %v1683_v3  ;;  %v1183_v3 = vor.u32 %v1616_v61, %v1180_v62 }
  0x3a   :  { %992 = vmatpush.bf16.msrb.mxu0 %v1658_v4  ;;  %v1191_v4 = vor.u32 %v1617_v63, %v1188_v0 }
  0x3b   :  { %1020 = vmatpush.bf16.msrb.mxu2 %v1674_v5  ;;  %v1727_v5 = vld [vmem:[%s2162_s1 + $0x330] sm:$0xff] }
  0x3c   :  { %1006 = vmatpush.bf16.msrb.mxu1 %v1666_v6  ;;  %v1726_v6 = vld [vmem:[%s2162_s1 + $0x328] sm:$0xff] }
  0x3d   :  { %1034 = vmatpush.bf16.msrb.mxu3 %v1682_v7  ;;  %v1725_v7 = vld [vmem:[%s2162_s1 + $0x320] sm:$0xff] }
  0x3e   :  { %993 = vmatpush.bf16.msrb.mxu0 %v1657_v8  ;;  %v1724_v8 = vld [vmem:[%s2162_s1 + $0x318] sm:$0xff] }
  0x3f   :  { %1021 = vmatpush.bf16.msrb.mxu2 %v1673_v9  ;;  %v1723_v9 = vld [vmem:[%s2162_s1 + $0x310] sm:$0xff] }
  0x40   :  { %1007 = vmatpush.bf16.msrb.mxu1 %v1665_v16 }
  0x41   :  { %1035 = vmatpush.bf16.msrb.mxu3 %v1681_v17  ;;  %994 = vmatmul.bf16.vlgmr.msrb.gmra.mxu0 %v1163_v22 }
  0x42   :  { %1042 = vmatpush.bf16.msra.mxu0 %v1696_v10  ;;  %1022 = vmatmul.bf16.vlgmr.msrb.gmra.mxu2 %v1171_v23  ;;  %v1722_v10 = vld [vmem:[%s2162_s1 + $0x308] sm:$0xff] }
  0x43   :  { %1070 = vmatpush.bf16.msra.mxu2 %v1712_v11  ;;  %1008 = vmatmul.bf16.vlgmr.msrb.gmra.mxu1 %v1167_v26  ;;  %v1721_v11 = vld [vmem:[%s2162_s1 + $0x300] sm:$0xff] }
  0x44   :  { %1056 = vmatpush.bf16.msra.mxu1 %v1704_v24  ;;  %1036 = vmatmul.bf16.vlgmr.msrb.gmra.mxu3 %v1175_v27 }
  0x45   :  { %1084 = vmatpush.bf16.msra.mxu3 %v1720_v25 }
  0x46   :  { %1043 = vmatpush.bf16.msra.mxu0 %v1695_v28 }
  0x47   :  { %1071 = vmatpush.bf16.msra.mxu2 %v1711_v29  ;;  %v1730_v29 = vmov 0.0  }
  0x48   :  { %1057 = vmatpush.bf16.msra.mxu1 %v1703_v30  ;;  %17 = vst [vmem:[%s2164_s3] sm:$0x3] %v1730_v29 }
  0x49   :  { %1085 = vmatpush.bf16.msra.mxu3 %v1719_v31 }
  0x4a   :  { %1044 = vmatpush.bf16.msra.mxu0 %v1694_v32 }
  0x4b   :  { %1072 = vmatpush.bf16.msra.mxu2 %v1710_v33 }
  0x4c   :  { %1058 = vmatpush.bf16.msra.mxu1 %v1702_v34 }
  0x4d   :  { %1086 = vmatpush.bf16.msra.mxu3 %v1718_v35 }
  0x4e   :  { %1045 = vmatpush.bf16.msra.mxu0 %v1693_v36 }
  0x4f   :  { %1073 = vmatpush.bf16.msra.mxu2 %v1709_v37 }
  0x50   :  { %1059 = vmatpush.bf16.msra.mxu1 %v1701_v38 }
  0x51   :  { %1087 = vmatpush.bf16.msra.mxu3 %v1717_v39 }
  0x52   :  { %1046 = vmatpush.bf16.msra.mxu0 %v1692_v40 }
  0x53   :  { %1074 = vmatpush.bf16.msra.mxu2 %v1708_v41 }
  0x54   :  { %1060 = vmatpush.bf16.msra.mxu1 %v1700_v42 }
  0x55   :  { %1088 = vmatpush.bf16.msra.mxu3 %v1716_v43 }
  0x56   :  { %1047 = vmatpush.bf16.msra.mxu0 %v1691_v44 }
  0x57   :  { %1075 = vmatpush.bf16.msra.mxu2 %v1707_v45 }
  0x58   :  { %1061 = vmatpush.bf16.msra.mxu1 %v1699_v46 }
  0x59   :  { %1089 = vmatpush.bf16.msra.mxu3 %v1715_v47 }
  0x5a   :  { %1048 = vmatpush.bf16.msra.mxu0 %v1690_v48 }
  0x5b   :  { %1076 = vmatpush.bf16.msra.mxu2 %v1706_v49 }
  0x5c   :  { %1062 = vmatpush.bf16.msra.mxu1 %v1698_v50 }
  0x5d   :  { %1090 = vmatpush.bf16.msra.mxu3 %v1714_v51 }
  0x5e   :  { %1049 = vmatpush.bf16.msra.mxu0 %v1689_v52 }
  0x5f   :  { %1077 = vmatpush.bf16.msra.mxu2 %v1705_v53 }
  0x60   :  { %1063 = vmatpush.bf16.msra.mxu1 %v1697_v59 }
  0x61   :  { %1091 = vmatpush.bf16.msra.mxu3 %v1713_v60  ;;  %1050 = vmatmul.bf16.vlgmr.msra.gmra.mxu0 %v1179_v1 }
  0x62   :  { %1098 = vmatpush.bf16.msrb.mxu0 %v1728_v54  ;;  %1078 = vmatmul.bf16.vlgmr.msra.gmra.mxu2 %v1187_v2 }
  0x63   :  { %1064 = vmatmul.bf16.vlgmr.msra.gmra.mxu1 %v1183_v3 }
  0x64   :  { %1092 = vmatmul.bf16.vlgmr.msra.gmra.mxu3 %v1191_v4 }
  0x66   :  { %1099 = vmatpush.bf16.msrb.mxu0 %v1727_v5 }
  0x6a   :  { %1100 = vmatpush.bf16.msrb.mxu0 %v1726_v6 }
  0x6e   :  { %1101 = vmatpush.bf16.msrb.mxu0 %v1725_v7 }
  0x72   :  { %1102 = vmatpush.bf16.msrb.mxu0 %v1724_v8 }
  0x76   :  { %1103 = vmatpush.bf16.msrb.mxu0 %v1723_v9 }
  0x7a   :  { %1104 = vmatpush.bf16.msrb.mxu0 %v1722_v10 }
  0x7e   :  { %1105 = vmatpush.bf16.msrb.mxu0 %v1721_v11 }
  0x81   :  { %1106 = vmatmul.bf16.vlgmr.msrb.gmra.mxu0 %v1195_v14 }
  0x9e   :  { %v939_v15 = vpop.f32.mrf.mxu0 }
  0xa0   :  { %v953_v16 = vpop.f32.mrf.mxu1 }
  0xa1   :  { %v954_v22 = vadd.f32 %v953_v16, %v939_v15  ;;  %v1114_v15 = vld [vmem:[%s2164_s3] sm:$0x1] }
  0xa5   :  { %v967_v17 = vpop.f32.mrf.mxu2 }
  0xa6   :  { %v941_v18 = vpop.f32.mrf.mxu0  ;;  %v968_v25 = vadd.f32 %v967_v17, %v954_v22 }
  0xa7   :  { %v981_v19 = vpop.f32.mrf.mxu3 }
  0xa8   :  { %v955_v20 = vpop.f32.mrf.mxu1  ;;  %v982_v27 = vadd.f32 %v981_v19, %v968_v25 }
  0xa9   :  { %v956_v31 = vadd.f32 %v955_v20, %v941_v18  ;;  %v1124_v18 = vld [vmem:[%s2164_s3 + $0x1] sm:$0x1] }
  0xad   :  { %v969_v21 = vpop.f32.mrf.mxu2 }
  0xae   :  { %v970_v34 = vadd.f32 %v969_v21, %v956_v31 }
  0xaf   :  { %v983_v24 = vpop.f32.mrf.mxu3 }
  0xb0   :  { %v984_v39 = vadd.f32 %v983_v24, %v970_v34 }
  0xbe   :  { %v995_v23 = vpop.f32.mrf.mxu0 }
  0xbf   :  { %v996_v32 = vadd.f32 %v995_v23, %v982_v27 }
  0xc0   :  { %v1009_v26 = vpop.f32.mrf.mxu1 }
  0xc1   :  { %v1010_v35 = vadd.f32 %v1009_v26, %v996_v32 }
  0xc5   :  { %v1023_v28 = vpop.f32.mrf.mxu2 }
  0xc6   :  { %v997_v30 = vpop.f32.mrf.mxu0  ;;  %v1024_v40 = vadd.f32 %v1023_v28, %v1010_v35 }
  0xc7   :  { %v1037_v33 = vpop.f32.mrf.mxu3  ;;  %v998_v41 = vadd.f32 %v997_v30, %v984_v39 }
  0xc8   :  { %v1011_v36 = vpop.f32.mrf.mxu1  ;;  %v1038_v43 = vadd.f32 %v1037_v33, %v1024_v40 }
  0xc9   :  { %v1012_v45 = vadd.f32 %v1011_v36, %v998_v41 }
  0xcd   :  { %v1025_v37 = vpop.f32.mrf.mxu2 }
  0xce   :  { %v1026_v48 = vadd.f32 %v1025_v37, %v1012_v45 }
  0xcf   :  { %v1039_v42 = vpop.f32.mrf.mxu3 }
  0xd0   :  { %v1040_v52 = vadd.f32 %v1039_v42, %v1026_v48 }
  0xde   :  { %v1051_v38 = vpop.f32.mrf.mxu0 }
  0xdf   :  { %v1052_v46 = vadd.f32 %v1051_v38, %v1038_v43 }
  0xe0   :  { %v1065_v44 = vpop.f32.mrf.mxu1 }
  0xe1   :  { %v1066_v50 = vadd.f32 %v1065_v44, %v1052_v46 }
  0xe5   :  { %v1079_v47 = vpop.f32.mrf.mxu2 }
  0xe6   :  { %v1053_v49 = vpop.f32.mrf.mxu0  ;;  %v1080_v53 = vadd.f32 %v1079_v47, %v1066_v50 }
  0xe7   :  { %v1093_v51 = vpop.f32.mrf.mxu3  ;;  %v1054_v54 = vadd.f32 %v1053_v49, %v1040_v52 }
  0xe8   :  { %v1067_v55 = vpop.f32.mrf.mxu1  ;;  %v1094_v56 = vadd.f32 %v1093_v51, %v1080_v53 }
  0xe9   :  { %v1068_v59 = vadd.f32 %v1067_v55, %v1054_v54 }
  0xed   :  { %v1081_v57 = vpop.f32.mrf.mxu2 }
  0xee   :  { %v1082_v61 = vadd.f32 %v1081_v57, %v1068_v59 }
  0xef   :  { %v1095_v62 = vpop.f32.mrf.mxu3 }
  0xf0   :  { %v1096_v63 = vadd.f32 %v1095_v62, %v1082_v61 }
  0xfe   :  { %v1107_v58 = vpop.f32.mrf.mxu0 }
  0xff   :  { %v1108_v60 = vadd.f32 %v1107_v58, %v1094_v56 }
 0x101   :  { %1112 = vst [vmem:[%s2165_s2] sm:$0xff] %v1108_v60  ;;  %v1125_v2 = vmul.f32 %v1108_v60, %v1108_v60 }
 0x106   :  { %v1109_v0 = vpop.f32.mrf.mxu0 }
 0x107   :  { %v1110_v1 = vadd.f32 %v1109_v0, %v1096_v63 }
 0x109   :  { %1113 = vst [vmem:[%s2165_s2 + $0x8] sm:$0xff] %v1110_v1  ;;  %v1115_v3 = vadd.f32 %v1110_v1, %v1108_v60  ;;  %v1126_v4 = vmul.f32 %v1110_v1, %v1110_v1 }
 0x10b   :  { %v1116_v5 = vrot.slane %v1115_v3, 4  ;;  %v1127_v6 = vadd.f32 %v1126_v4, %v1125_v2 }
 0x10d   :  { %v1117_v7 = vadd.f32 %v1116_v5, %v1115_v3  ;;  %v1128_v8 = vrot.slane %v1127_v6, 4 }
 0x10f   :  { %v1118_v9 = vrot.slane %v1117_v7, 2  ;;  %v1129_v10 = vadd.f32 %v1128_v8, %v1127_v6 }
 0x111   :  { %v1119_v11 = vadd.f32 %v1118_v9, %v1117_v7  ;;  %v1130_v12 = vrot.slane %v1129_v10, 2 }
 0x113   :  { %v1120_v13 = vrot.slane %v1119_v11, 1  ;;  %v1131_v14 = vadd.f32 %v1130_v12, %v1129_v10 }
 0x115   :  { %v1121_v16 = vadd.f32 %v1120_v13, %v1119_v11  ;;  %v1132_v17 = vrot.slane %v1131_v14, 1 }
 0x117   :  { %v1122_v19 = vadd.f32 %v1121_v16, %v1114_v15  ;;  %v1133_v20 = vadd.f32 %v1132_v17, %v1131_v14 }
 0x119   :  { %1123 = vst [vmem:[%s2164_s3] sm:$0x1] %v1122_v19  ;;  %v1134_v21 = vadd.f32 %v1133_v20, %v1124_v18 }
 0x11b   :  { %1135 = vst [vmem:[%s2164_s3 + $0x1] sm:$0x1] %v1134_v21 }

// kernel: simple_discriminator_forward.19
= control target key start
LH: loop header
LB: loop body
LE: loop exit
PB: predicated region body
PF: predicated region fallthrough
CT: control target
= control target key end

     0   :  { %vm22_vm0 = vcmask 1041408   ;;  %vm31_vm1 = vcmask 1024   ;;  %s71_s0 = inlined_call_operand.vmem [shape: f32[2,128], index: 0, kind: input, shape index: {}]   ;;  %s72_s1 = inlined_call_operand.vmem [shape: f32[1,128], index: 1, kind: input, shape index: {}]   ;;  %s73_s2 = inlined_call_operand.<no memory space> [shape: f32[1,1], index: 2, kind: input, shape index: {}]   ;;  %s74_s3 = inlined_call_operand.vmem [shape: f32[2,1], index: 3, kind: output, shape index: {}]  }
   0x1   :  { %v16_v0 = vld [vmem:[%s71_s0] sm:$0x3]  ;;  %v8_v2 = vstv %s73_s2 }
   0x2   :  { %v37_v1 = vld [vmem:[%s72_s1] ss:$0 sm:$0xff]  ;;  %9 = vst [vmem:[#allocation2] sm:$0x1] %v8_v2 }
   0x3   :  { %v21_v3 = vmul.f32 %v37_v1, %v16_v0 }
   0x5   :  { %v23_v4 = vsel %vm22_vm0, %v21_v3, 0.0 }
   0x6   :  { %24 = vadd.xlane.f32.xlu0 %v23_v4 }
   0x9   :  { %v38_v5 = vld [vmem:[#allocation2] ss:$0 sm:$0xff] }
  0x79   :  { %v25_v6 = vpop.xlane.xlu0 %24 }
  0x7a   :  { %v30_v7 = vadd.f32 %v38_v5, %v25_v6 }
  0x7c   :  { %32 = vst.msk [vmem:[%s74_s3] sm:$0x3] %vm31_vm1, %v30_v7 }

// kernel: simple_discriminator_forward.18
= control target key start
LH: loop header
LB: loop body
LE: loop exit
PB: predicated region body
PF: predicated region fallthrough
CT: control target
= control target key end

     0   :  { %s115_s1 = inlined_call_operand.vmem [shape: f32[2,128], index: 1, kind: input, shape index: {}]   ;;  %s116_s2 = inlined_call_operand.vmem [shape: f32[1,128], index: 2, kind: input, shape index: {}]   ;;  %s117_s0 = inlined_call_operand.vmem [shape: f32[16,128], index: 0, kind: input, shape index: {}]   ;;  %s118_s3 = inlined_call_operand.vmem [shape: f32[1,128], index: 3, kind: input, shape index: {}]   ;;  %s119_s4 = inlined_call_operand.vmem [shape: f32[16,128], index: 4, kind: output, shape index: {}]  }
   0x1   :  { %v17_v0 = vld [vmem:[%s115_s1] sm:$0x1]  ;;  %v19_v1 = vld [vmem:[%s115_s1 + $0x1] sm:$0x1]  ;;  %v41_v19 = vld [vmem:[%s117_s0 + $0x8] sm:$0xff] }
   0x2   :  { %v18_v2 = vmul.f32 0.5, %v17_v0  ;;  %v20_v3 = vmul.f32 0.5, %v19_v1  ;;  %v24_v13 = vld [vmem:[%s116_s2] sm:$0x1] }
   0x3   :  { %v37_v17 = vld [vmem:[%s118_s3] sm:$0x1] }
   0x4   :  { %v21_v4 = vmul.f32 %v18_v2, %v18_v2  ;;  %v40_v18 = vld [vmem:[%s117_s0] sm:$0xff] }
   0x6   :  { %v22_v5 = vsub.f32 %v20_v3, %v21_v4 }
   0x8   :  { %v23_v6 = vmax.f32 %v22_v5, 0.0 }
   0xa   :  { %v25_v7 = vadd.f32 1e-05, %v23_v6 }
   0xc   :  { %64 = vrsqrt.f32 %v25_v7  ;;  %vm32_vm0 = vweird.f32 %v25_v7 }
  0x12   :  { %v65_v8 = vpop.eup %64 }
  0x13   :  { %v27_v9 = vmul.f32 %v65_v8, %v25_v7  ;;  %vm33_vm1 = vweird.f32 %v65_v8 }
  0x14   :  { %vm34_vm2 = vmor %vm32_vm0, %vm33_vm1 }
  0x15   :  { %v28_v10 = vmul.f32 %v65_v8, %v27_v9 }
  0x17   :  { %v29_v11 = vmul.f32 0.5, %v28_v10 }
  0x19   :  { %v30_v12 = vsub.f32 1.5, %v29_v11 }
  0x1b   :  { %v31_v14 = vmul.f32 %v65_v8, %v30_v12 }
  0x1d   :  { %v35_v15 = vsel %vm34_vm2, %v65_v8, %v31_v14 }
  0x1e   :  { %v36_v16 = vmul.f32 %v35_v15, %v24_v13 }
  0x20   :  { %v38_v20 = vmul.f32 %v36_v16, %v18_v2  ;;  %v43_v21 = vperm.slane %v36_v16, 0 }
  0x22   :  { %v39_v22 = vsub.f32 %v37_v17, %v38_v20  ;;  %v45_v23 = vmul.f32 %v43_v21, %v40_v18  ;;  %v46_v24 = vmul.f32 %v43_v21, %v41_v19 }
  0x24   :  { %v48_v25 = vperm.slane %v39_v22, 0 }
  0x26   :  { %v50_v26 = vadd.f32 %v48_v25, %v45_v23  ;;  %v51_v27 = vadd.f32 %v48_v25, %v46_v24 }
  0x28   :  { %vm52_vm3 = vcmp.ge.f32.partialorder %v50_v26, 0.0  ;;  %v54_v28 = vmul.f32 0.2, %v50_v26  ;;  %vm53_vm4 = vcmp.ge.f32.partialorder %v51_v27, 0.0  ;;  %v55_v29 = vmul.f32 0.2, %v51_v27 }
  0x2a   :  { %v56_v30 = vsel %vm52_vm3, %v50_v26, %v54_v28  ;;  %v57_v31 = vsel %vm53_vm4, %v51_v27, %v55_v29 }
  0x2b   :  { %58 = vst [vmem:[%s119_s4] sm:$0xff] %v56_v30 }
  0x2c   :  { %59 = vst [vmem:[%s119_s4 + $0x8] sm:$0xff] %v57_v31 }

// kernel: simple_discriminator_forward.17
= control target key start
LH: loop header
LB: loop body
LE: loop exit
PB: predicated region body
PF: predicated region fallthrough
CT: control target
= control target key end

     0   :  { %s4070_s1 = inlined_call_operand.vmem [shape: bf16[3200,128], index: 1, kind: input, shape index: {}]   ;;  %s4071_s0 = inlined_call_operand.vmem [shape: bf16[16,3200], index: 0, kind: input, shape index: {}]   ;;  %s4072_s3 = inlined_call_operand.vmem [shape: f32[2,128], index: 3, kind: output, shape index: {1}]   ;;  %s4073_s2 = inlined_call_operand.vmem [shape: f32[16,128], index: 2, kind: output, shape index: {0}]  }
   0x1   :  { %v3084_v0 = vld [vmem:[%s4070_s1 + $0x38] sm:$0xff]  ;;  %v3083_v4 = vld [vmem:[%s4070_s1 + $0x30] sm:$0xff]  ;;  %v3082_v8 = vld [vmem:[%s4070_s1 + $0x28] sm:$0xff] }
   0x2   :  { %v3100_v1 = vld [vmem:[%s4070_s1 + $0xb8] sm:$0xff]  ;;  %1770 = vmatpush.bf16.msra.mxu0 %v3084_v0  ;;  %v3099_v5 = vld [vmem:[%s4070_s1 + $0xb0] sm:$0xff]  ;;  %v3098_v9 = vld [vmem:[%s4070_s1 + $0xa8] sm:$0xff] }
   0x3   :  { %v3092_v2 = vld [vmem:[%s4070_s1 + $0x78] sm:$0xff]  ;;  %1798 = vmatpush.bf16.msra.mxu2 %v3100_v1  ;;  %v3091_v6 = vld [vmem:[%s4070_s1 + $0x70] sm:$0xff]  ;;  %v3090_v10 = vld [vmem:[%s4070_s1 + $0x68] sm:$0xff] }
   0x4   :  { %v3108_v3 = vld [vmem:[%s4070_s1 + $0xf8] sm:$0xff]  ;;  %1784 = vmatpush.bf16.msra.mxu1 %v3092_v2  ;;  %v3107_v7 = vld [vmem:[%s4070_s1 + $0xf0] sm:$0xff]  ;;  %v3106_v11 = vld [vmem:[%s4070_s1 + $0xe8] sm:$0xff] }
   0x5   :  { %1812 = vmatpush.bf16.msra.mxu3 %v3108_v3  ;;  %v3081_v12 = vld [vmem:[%s4070_s1 + $0x20] sm:$0xff]  ;;  %v3080_v16 = vld [vmem:[%s4070_s1 + $0x18] sm:$0xff]  ;;  %v3079_v20 = vld [vmem:[%s4070_s1 + $0x10] sm:$0xff] }
   0x6   :  { %1771 = vmatpush.bf16.msra.mxu0 %v3083_v4  ;;  %v3097_v13 = vld [vmem:[%s4070_s1 + $0xa0] sm:$0xff]  ;;  %v3096_v17 = vld [vmem:[%s4070_s1 + $0x98] sm:$0xff]  ;;  %v3095_v21 = vld [vmem:[%s4070_s1 + $0x90] sm:$0xff] }
   0x7   :  { %1799 = vmatpush.bf16.msra.mxu2 %v3099_v5  ;;  %v3089_v14 = vld [vmem:[%s4070_s1 + $0x60] sm:$0xff]  ;;  %v3088_v18 = vld [vmem:[%s4070_s1 + $0x58] sm:$0xff]  ;;  %v3087_v22 = vld [vmem:[%s4070_s1 + $0x50] sm:$0xff] }
   0x8   :  { %1785 = vmatpush.bf16.msra.mxu1 %v3091_v6  ;;  %v3105_v15 = vld [vmem:[%s4070_s1 + $0xe0] sm:$0xff]  ;;  %v3104_v19 = vld [vmem:[%s4070_s1 + $0xd8] sm:$0xff]  ;;  %v3103_v23 = vld [vmem:[%s4070_s1 + $0xd0] sm:$0xff] }
   0x9   :  { %1813 = vmatpush.bf16.msra.mxu3 %v3107_v7  ;;  %v3078_v24 = vld [vmem:[%s4070_s1 + $0x8] sm:$0xff]  ;;  %v3077_v28 = vld [vmem:[%s4070_s1] sm:$0xff]  ;;  %v3116_v30 = vld [vmem:[%s4070_s1 + $0x138] sm:$0xff] }
   0xa   :  { %1772 = vmatpush.bf16.msra.mxu0 %v3082_v8  ;;  %v3094_v25 = vld [vmem:[%s4070_s1 + $0x88] sm:$0xff]  ;;  %v3093_v29 = vld [vmem:[%s4070_s1 + $0x80] sm:$0xff]  ;;  %v3132_v31 = vld [vmem:[%s4070_s1 + $0x1b8] sm:$0xff] }
   0xb   :  { %1800 = vmatpush.bf16.msra.mxu2 %v3098_v9  ;;  %v3086_v26 = vld [vmem:[%s4070_s1 + $0x48] sm:$0xff]  ;;  %v3085_v32 = vld [vmem:[%s4070_s1 + $0x40] sm:$0xff]  ;;  %v3124_v38 = vld [vmem:[%s4070_s1 + $0x178] sm:$0xff] }
   0xc   :  { %1786 = vmatpush.bf16.msra.mxu1 %v3090_v10  ;;  %v3102_v27 = vld [vmem:[%s4070_s1 + $0xc8] sm:$0xff]  ;;  %v3101_v33 = vld [vmem:[%s4070_s1 + $0xc0] sm:$0xff]  ;;  %v3140_v39 = vld [vmem:[%s4070_s1 + $0x1f8] sm:$0xff] }
   0xd   :  { %1814 = vmatpush.bf16.msra.mxu3 %v3106_v11  ;;  %v2154_v34 = vld [vmem:[%s4071_s0] sm:$0xf]  ;;  %v3064_v35 = vld [vmem:[%s4071_s0 + $0x60] sm:$0xf0]  ;;  %v2162_v36 = vld [vmem:[%s4071_s0 + $0x8] sm:$0xf] }
   0xe   :  { %1773 = vmatpush.bf16.msra.mxu0 %v3081_v12  ;;  %v3065_v37 = vld [vmem:[%s4071_s0 + $0x68] sm:$0xf0]  ;;  %v3052_v40 = vld [vmem:[%s4071_s0 + $0x4] sm:$0xf]  ;;  %v2156_v41 = vld [vmem:[%s4071_s0 + $0x64] sm:$0xf0]  ;;  %v2155_v44 = vor.u32 %v3064_v35, %v2154_v34 }
   0xf   :  { %1801 = vmatpush.bf16.msra.mxu2 %v3097_v13  ;;  %v3053_v42 = vld [vmem:[%s4071_s0 + $0xc] sm:$0xf]  ;;  %v2164_v43 = vld [vmem:[%s4071_s0 + $0x6c] sm:$0xf0]  ;;  %v2163_v45 = vor.u32 %v3065_v37, %v2162_v36  ;;  %v2159_v48 = vor.u32 %v3052_v40, %v2156_v41  ;;  %v3113_v56 = vld [vmem:[%s4070_s1 + $0x120] sm:$0xff] }
  0x10   :  { %1787 = vmatpush.bf16.msra.mxu1 %v3089_v14  ;;  %v3115_v46 = vld [vmem:[%s4070_s1 + $0x130] sm:$0xff]  ;;  %v2167_v49 = vor.u32 %v3053_v42, %v2164_v43  ;;  %v3114_v52 = vld [vmem:[%s4070_s1 + $0x128] sm:$0xff]  ;;  %v3129_v57 = vld [vmem:[%s4070_s1 + $0x1a0] sm:$0xff] }
  0x11   :  { %1815 = vmatpush.bf16.msra.mxu3 %v3105_v15  ;;  %v3131_v47 = vld [vmem:[%s4070_s1 + $0x1b0] sm:$0xff]  ;;  %v3130_v53 = vld [vmem:[%s4070_s1 + $0x1a8] sm:$0xff]  ;;  %v3121_v58 = vld [vmem:[%s4070_s1 + $0x160] sm:$0xff] }
  0x12   :  { %1774 = vmatpush.bf16.msra.mxu0 %v3080_v16  ;;  %v3123_v50 = vld [vmem:[%s4070_s1 + $0x170] sm:$0xff]  ;;  %v3122_v54 = vld [vmem:[%s4070_s1 + $0x168] sm:$0xff]  ;;  %v3137_v59 = vld [vmem:[%s4070_s1 + $0x1e0] sm:$0xff] }
  0x13   :  { %1802 = vmatpush.bf16.msra.mxu2 %v3096_v17  ;;  %v3139_v51 = vld [vmem:[%s4070_s1 + $0x1f0] sm:$0xff]  ;;  %v3138_v55 = vld [vmem:[%s4070_s1 + $0x1e8] sm:$0xff]  ;;  %v3112_v60 = vld [vmem:[%s4070_s1 + $0x118] sm:$0xff] }
  0x14   :  { %1788 = vmatpush.bf16.msra.mxu1 %v3088_v18  ;;  %v3128_v61 = vld [vmem:[%s4070_s1 + $0x198] sm:$0xff]  ;;  %v3111_v0 = vld [vmem:[%s4070_s1 + $0x110] sm:$0xff]  ;;  %v3110_v4 = vld [vmem:[%s4070_s1 + $0x108] sm:$0xff] }
  0x15   :  { %1816 = vmatpush.bf16.msra.mxu3 %v3104_v19  ;;  %v3120_v62 = vld [vmem:[%s4070_s1 + $0x158] sm:$0xff]  ;;  %v3127_v1 = vld [vmem:[%s4070_s1 + $0x190] sm:$0xff]  ;;  %v3126_v5 = vld [vmem:[%s4070_s1 + $0x188] sm:$0xff] }
  0x16   :  { %1775 = vmatpush.bf16.msra.mxu0 %v3079_v20  ;;  %v3136_v63 = vld [vmem:[%s4070_s1 + $0x1d8] sm:$0xff]  ;;  %v3119_v2 = vld [vmem:[%s4070_s1 + $0x150] sm:$0xff]  ;;  %v3118_v6 = vld [vmem:[%s4070_s1 + $0x148] sm:$0xff] }
  0x17   :  { %1803 = vmatpush.bf16.msra.mxu2 %v3095_v21  ;;  %v3135_v3 = vld [vmem:[%s4070_s1 + $0x1d0] sm:$0xff]  ;;  %v3134_v7 = vld [vmem:[%s4070_s1 + $0x1c8] sm:$0xff]  ;;  %v3109_v8 = vld [vmem:[%s4070_s1 + $0x100] sm:$0xff] }
  0x18   :  { %1789 = vmatpush.bf16.msra.mxu1 %v3087_v22  ;;  %v3125_v9 = vld [vmem:[%s4070_s1 + $0x180] sm:$0xff]  ;;  %v3148_v10 = vld [vmem:[%s4070_s1 + $0x238] sm:$0xff]  ;;  %v2170_v12 = vld [vmem:[%s4071_s0 + $0x10] sm:$0xf] }
  0x19   :  { %1817 = vmatpush.bf16.msra.mxu3 %v3103_v23  ;;  %v3164_v11 = vld [vmem:[%s4070_s1 + $0x2b8] sm:$0xff]  ;;  %v3066_v13 = vld [vmem:[%s4071_s0 + $0x70] sm:$0xf0]  ;;  %v3117_v16 = vld [vmem:[%s4070_s1 + $0x140] sm:$0xff] }
  0x1a   :  { %1776 = vmatpush.bf16.msra.mxu0 %v3078_v24  ;;  %v2178_v14 = vld [vmem:[%s4071_s0 + $0x18] sm:$0xf]  ;;  %v3067_v15 = vld [vmem:[%s4071_s0 + $0x78] sm:$0xf0]  ;;  %v3133_v17 = vld [vmem:[%s4070_s1 + $0x1c0] sm:$0xff]  ;;  %v2171_v22 = vor.u32 %v3066_v13, %v2170_v12 }
  0x1b   :  { %1804 = vmatpush.bf16.msra.mxu2 %v3094_v25  ;;  %v3054_v18 = vld [vmem:[%s4071_s0 + $0x14] sm:$0xf]  ;;  %v2172_v19 = vld [vmem:[%s4071_s0 + $0x74] sm:$0xf0]  ;;  %v3055_v20 = vld [vmem:[%s4071_s0 + $0x1c] sm:$0xf]  ;;  %v2179_v23 = vor.u32 %v3067_v15, %v2178_v14 }
  0x1c   :  { %1790 = vmatpush.bf16.msra.mxu1 %v3086_v26  ;;  %v2180_v21 = vld [vmem:[%s4071_s0 + $0x7c] sm:$0xf0]  ;;  %v3156_v24 = vld [vmem:[%s4070_s1 + $0x278] sm:$0xff]  ;;  %v2175_v26 = vor.u32 %v3054_v18, %v2172_v19  ;;  %v3154_v34 = vld [vmem:[%s4070_s1 + $0x268] sm:$0xff] }
  0x1d   :  { %1818 = vmatpush.bf16.msra.mxu3 %v3102_v27  ;;  %v3172_v25 = vld [vmem:[%s4070_s1 + $0x2f8] sm:$0xff]  ;;  %v2183_v27 = vor.u32 %v3055_v20, %v2180_v21  ;;  %v3170_v35 = vld [vmem:[%s4070_s1 + $0x2e8] sm:$0xff]  ;;  %v3145_v36 = vld [vmem:[%s4070_s1 + $0x220] sm:$0xff] }
  0x1e   :  { %1777 = vmatpush.bf16.msra.mxu0 %v3077_v28  ;;  %v3147_v28 = vld [vmem:[%s4070_s1 + $0x230] sm:$0xff]  ;;  %v3161_v37 = vld [vmem:[%s4070_s1 + $0x2a0] sm:$0xff]  ;;  %v3144_v40 = vld [vmem:[%s4070_s1 + $0x218] sm:$0xff] }
  0x1f   :  { %1805 = vmatpush.bf16.msra.mxu2 %v3093_v29  ;;  %v3163_v29 = vld [vmem:[%s4070_s1 + $0x2b0] sm:$0xff]  ;;  %v3160_v41 = vld [vmem:[%s4070_s1 + $0x298] sm:$0xff]  ;;  %v3178_v12 = vld [vmem:[%s4070_s1 + $0x328] sm:$0xff] }
  0x20   :  { %1791 = vmatpush.bf16.msra.mxu1 %v3085_v32  ;;  %v3146_v32 = vld [vmem:[%s4070_s1 + $0x228] sm:$0xff]  ;;  %v3152_v42 = vld [vmem:[%s4070_s1 + $0x258] sm:$0xff]  ;;  %v3185_v18 = vld [vmem:[%s4070_s1 + $0x360] sm:$0xff] }
  0x21   :  { %1819 = vmatpush.bf16.msra.mxu3 %v3101_v33  ;;  %1778 = vmatmul.bf16.vlgmr.msra.gmra.mxu0 %v2155_v44  ;;  %v3162_v33 = vld [vmem:[%s4070_s1 + $0x2a8] sm:$0xff]  ;;  %v3168_v43 = vld [vmem:[%s4070_s1 + $0x2d8] sm:$0xff]  ;;  %v3143_v44 = vld [vmem:[%s4070_s1 + $0x210] sm:$0xff] }
  0x22   :  { %1826 = vmatpush.bf16.msrb.mxu0 %v3116_v30  ;;  %1806 = vmatmul.bf16.vlgmr.msra.gmra.mxu2 %v2163_v45  ;;  %v3155_v30 = vld [vmem:[%s4070_s1 + $0x270] sm:$0xff]  ;;  %v3194_v13 = vld [vmem:[%s4070_s1 + $0x3a8] sm:$0xff]  ;;  %v3201_v19 = vld [vmem:[%s4070_s1 + $0x3e0] sm:$0xff] }
  0x23   :  { %1854 = vmatpush.bf16.msrb.mxu2 %v3132_v31  ;;  %1792 = vmatmul.bf16.vlgmr.msra.gmra.mxu1 %v2159_v48  ;;  %v3171_v31 = vld [vmem:[%s4070_s1 + $0x2f0] sm:$0xff]  ;;  %v3142_v48 = vld [vmem:[%s4070_s1 + $0x208] sm:$0xff]  ;;  %v3176_v20 = vld [vmem:[%s4070_s1 + $0x318] sm:$0xff] }
  0x24   :  { %1840 = vmatpush.bf16.msrb.mxu1 %v3124_v38  ;;  %1820 = vmatmul.bf16.vlgmr.msra.gmra.mxu3 %v2167_v49  ;;  %v3153_v38 = vld [vmem:[%s4070_s1 + $0x260] sm:$0xff]  ;;  %v3159_v45 = vld [vmem:[%s4070_s1 + $0x290] sm:$0xff]  ;;  %v3158_v49 = vld [vmem:[%s4070_s1 + $0x288] sm:$0xff] }
  0x25   :  { %1868 = vmatpush.bf16.msrb.mxu3 %v3140_v39  ;;  %v3169_v39 = vld [vmem:[%s4070_s1 + $0x2e0] sm:$0xff]  ;;  %v3186_v14 = vld [vmem:[%s4070_s1 + $0x368] sm:$0xff]  ;;  %v3192_v21 = vld [vmem:[%s4070_s1 + $0x398] sm:$0xff] }
  0x26   :  { %1827 = vmatpush.bf16.msrb.mxu0 %v3115_v46  ;;  %v3151_v46 = vld [vmem:[%s4070_s1 + $0x250] sm:$0xff]  ;;  %v3202_v15 = vld [vmem:[%s4070_s1 + $0x3e8] sm:$0xff] }
  0x27   :  { %1855 = vmatpush.bf16.msrb.mxu2 %v3131_v47  ;;  %v3167_v47 = vld [vmem:[%s4070_s1 + $0x2d0] sm:$0xff] }
  0x28   :  { %1841 = vmatpush.bf16.msrb.mxu1 %v3123_v50  ;;  %v3150_v50 = vld [vmem:[%s4070_s1 + $0x248] sm:$0xff] }
  0x29   :  { %1869 = vmatpush.bf16.msrb.mxu3 %v3139_v51  ;;  %v3166_v51 = vld [vmem:[%s4070_s1 + $0x2c8] sm:$0xff] }
  0x2a   :  { %1828 = vmatpush.bf16.msrb.mxu0 %v3114_v52  ;;  %v3141_v52 = vld [vmem:[%s4070_s1 + $0x200] sm:$0xff] }
  0x2b   :  { %1856 = vmatpush.bf16.msrb.mxu2 %v3130_v53  ;;  %v3157_v53 = vld [vmem:[%s4070_s1 + $0x280] sm:$0xff] }
  0x2c   :  { %1842 = vmatpush.bf16.msrb.mxu1 %v3122_v54  ;;  %v3180_v54 = vld [vmem:[%s4070_s1 + $0x338] sm:$0xff] }
  0x2d   :  { %1870 = vmatpush.bf16.msrb.mxu3 %v3138_v55  ;;  %v3196_v55 = vld [vmem:[%s4070_s1 + $0x3b8] sm:$0xff] }
  0x2e   :  { %1829 = vmatpush.bf16.msrb.mxu0 %v3113_v56  ;;  %v2186_v56 = vld [vmem:[%s4071_s0 + $0x20] sm:$0xf] }
  0x2f   :  { %1857 = vmatpush.bf16.msrb.mxu2 %v3129_v57  ;;  %v3068_v57 = vld [vmem:[%s4071_s0 + $0x80] sm:$0xf0] }
  0x30   :  { %1843 = vmatpush.bf16.msrb.mxu1 %v3121_v58  ;;  %v2194_v58 = vld [vmem:[%s4071_s0 + $0x28] sm:$0xf] }
  0x31   :  { %1871 = vmatpush.bf16.msrb.mxu3 %v3137_v59  ;;  %v3069_v59 = vld [vmem:[%s4071_s0 + $0x88] sm:$0xf0] }
  0x32   :  { %1830 = vmatpush.bf16.msrb.mxu0 %v3112_v60  ;;  %v3149_v60 = vld [vmem:[%s4070_s1 + $0x240] sm:$0xff] }
  0x33   :  { %1858 = vmatpush.bf16.msrb.mxu2 %v3128_v61  ;;  %v3165_v61 = vld [vmem:[%s4070_s1 + $0x2c0] sm:$0xff] }
  0x34   :  { %1844 = vmatpush.bf16.msrb.mxu1 %v3120_v62  ;;  %v3056_v62 = vld [vmem:[%s4071_s0 + $0x24] sm:$0xf] }
  0x35   :  { %1872 = vmatpush.bf16.msrb.mxu3 %v3136_v63  ;;  %v2188_v63 = vld [vmem:[%s4071_s0 + $0x84] sm:$0xf0] }
  0x36   :  { %1831 = vmatpush.bf16.msrb.mxu0 %v3111_v0  ;;  %v3057_v0 = vld [vmem:[%s4071_s0 + $0x2c] sm:$0xf] }
  0x37   :  { %1859 = vmatpush.bf16.msrb.mxu2 %v3127_v1  ;;  %v2196_v1 = vld [vmem:[%s4071_s0 + $0x8c] sm:$0xf0] }
  0x38   :  { %1845 = vmatpush.bf16.msrb.mxu1 %v3119_v2  ;;  %v2187_v2 = vor.u32 %v3068_v57, %v2186_v56  ;;  %v3210_v56 = vld [vmem:[%s4070_s1 + $0x428] sm:$0xff] }
  0x39   :  { %1873 = vmatpush.bf16.msrb.mxu3 %v3135_v3  ;;  %v2195_v3 = vor.u32 %v3069_v59, %v2194_v58  ;;  %v3226_v57 = vld [vmem:[%s4070_s1 + $0x4a8] sm:$0xff] }
  0x3a   :  { %1832 = vmatpush.bf16.msrb.mxu0 %v3110_v4  ;;  %v3188_v4 = vld [vmem:[%s4070_s1 + $0x378] sm:$0xff]  ;;  %v3218_v58 = vld [vmem:[%s4070_s1 + $0x468] sm:$0xff] }
  0x3b   :  { %1860 = vmatpush.bf16.msrb.mxu2 %v3126_v5  ;;  %v3204_v5 = vld [vmem:[%s4070_s1 + $0x3f8] sm:$0xff]  ;;  %v3234_v59 = vld [vmem:[%s4070_s1 + $0x4e8] sm:$0xff] }
  0x3c   :  { %1846 = vmatpush.bf16.msrb.mxu1 %v3118_v6  ;;  %v2191_v6 = vor.u32 %v3056_v62, %v2188_v63  ;;  %v3217_v62 = vld [vmem:[%s4070_s1 + $0x460] sm:$0xff] }
  0x3d   :  { %1874 = vmatpush.bf16.msrb.mxu3 %v3134_v7  ;;  %v2199_v7 = vor.u32 %v3057_v0, %v2196_v1  ;;  %v3233_v63 = vld [vmem:[%s4070_s1 + $0x4e0] sm:$0xff]  ;;  %v3208_v0 = vld [vmem:[%s4070_s1 + $0x418] sm:$0xff] }
  0x3e   :  { %1833 = vmatpush.bf16.msrb.mxu0 %v3109_v8  ;;  %v3179_v8 = vld [vmem:[%s4070_s1 + $0x330] sm:$0xff]  ;;  %v3224_v1 = vld [vmem:[%s4070_s1 + $0x498] sm:$0xff] }
  0x3f   :  { %1861 = vmatpush.bf16.msrb.mxu2 %v3125_v9  ;;  %v3195_v9 = vld [vmem:[%s4070_s1 + $0x3b0] sm:$0xff] }
  0x40   :  { %1847 = vmatpush.bf16.msrb.mxu1 %v3117_v16  ;;  %v3177_v16 = vld [vmem:[%s4070_s1 + $0x320] sm:$0xff] }
  0x41   :  { %1875 = vmatpush.bf16.msrb.mxu3 %v3133_v17  ;;  %1834 = vmatmul.bf16.vlgmr.msrb.gmra.mxu0 %v2171_v22  ;;  %v3193_v17 = vld [vmem:[%s4070_s1 + $0x3a0] sm:$0xff]  ;;  %v3184_v22 = vld [vmem:[%s4070_s1 + $0x358] sm:$0xff] }
  0x42   :  { %1882 = vmatpush.bf16.msra.mxu0 %v3148_v10  ;;  %1862 = vmatmul.bf16.vlgmr.msrb.gmra.mxu2 %v2179_v23  ;;  %v3187_v10 = vld [vmem:[%s4070_s1 + $0x370] sm:$0xff]  ;;  %v3200_v23 = vld [vmem:[%s4070_s1 + $0x3d8] sm:$0xff] }
  0x43   :  { %1910 = vmatpush.bf16.msra.mxu2 %v3164_v11  ;;  %1848 = vmatmul.bf16.vlgmr.msrb.gmra.mxu1 %v2175_v26  ;;  %v3203_v11 = vld [vmem:[%s4070_s1 + $0x3f0] sm:$0xff] }
  0x44   :  { %1896 = vmatpush.bf16.msra.mxu1 %v3156_v24  ;;  %1876 = vmatmul.bf16.vlgmr.msrb.gmra.mxu3 %v2183_v27  ;;  %v3175_v24 = vld [vmem:[%s4070_s1 + $0x310] sm:$0xff] }
  0x45   :  { %1924 = vmatpush.bf16.msra.mxu3 %v3172_v25  ;;  %v3191_v25 = vld [vmem:[%s4070_s1 + $0x390] sm:$0xff] }
  0x46   :  { %1883 = vmatpush.bf16.msra.mxu0 %v3147_v28  ;;  %v3183_v26 = vld [vmem:[%s4070_s1 + $0x350] sm:$0xff]  ;;  %v3174_v28 = vld [vmem:[%s4070_s1 + $0x308] sm:$0xff] }
  0x47   :  { %1911 = vmatpush.bf16.msra.mxu2 %v3163_v29  ;;  %v3199_v27 = vld [vmem:[%s4070_s1 + $0x3d0] sm:$0xff]  ;;  %v3190_v29 = vld [vmem:[%s4070_s1 + $0x388] sm:$0xff] }
  0x48   :  { %1897 = vmatpush.bf16.msra.mxu1 %v3155_v30  ;;  %v3182_v30 = vld [vmem:[%s4070_s1 + $0x348] sm:$0xff] }
  0x49   :  { %1925 = vmatpush.bf16.msra.mxu3 %v3171_v31  ;;  %v3198_v31 = vld [vmem:[%s4070_s1 + $0x3c8] sm:$0xff] }
  0x4a   :  { %1884 = vmatpush.bf16.msra.mxu0 %v3146_v32  ;;  %v3173_v32 = vld [vmem:[%s4070_s1 + $0x300] sm:$0xff] }
  0x4b   :  { %1912 = vmatpush.bf16.msra.mxu2 %v3162_v33  ;;  %v3189_v33 = vld [vmem:[%s4070_s1 + $0x380] sm:$0xff] }
  0x4c   :  { %1898 = vmatpush.bf16.msra.mxu1 %v3154_v34  ;;  %v3212_v34 = vld [vmem:[%s4070_s1 + $0x438] sm:$0xff] }
  0x4d   :  { %1926 = vmatpush.bf16.msra.mxu3 %v3170_v35  ;;  %v3228_v35 = vld [vmem:[%s4070_s1 + $0x4b8] sm:$0xff] }
  0x4e   :  { %1885 = vmatpush.bf16.msra.mxu0 %v3145_v36  ;;  %v2202_v36 = vld [vmem:[%s4071_s0 + $0x30] sm:$0xf] }
  0x4f   :  { %1913 = vmatpush.bf16.msra.mxu2 %v3161_v37  ;;  %v3070_v37 = vld [vmem:[%s4071_s0 + $0x90] sm:$0xf0] }
  0x50   :  { %1899 = vmatpush.bf16.msra.mxu1 %v3153_v38  ;;  %v2210_v38 = vld [vmem:[%s4071_s0 + $0x38] sm:$0xf] }
  0x51   :  { %1927 = vmatpush.bf16.msra.mxu3 %v3169_v39  ;;  %v3071_v39 = vld [vmem:[%s4071_s0 + $0x98] sm:$0xf0] }
  0x52   :  { %1886 = vmatpush.bf16.msra.mxu0 %v3144_v40  ;;  %v3181_v40 = vld [vmem:[%s4070_s1 + $0x340] sm:$0xff] }
  0x53   :  { %1914 = vmatpush.bf16.msra.mxu2 %v3160_v41  ;;  %v3197_v41 = vld [vmem:[%s4070_s1 + $0x3c0] sm:$0xff] }
  0x54   :  { %1900 = vmatpush.bf16.msra.mxu1 %v3152_v42  ;;  %v3058_v42 = vld [vmem:[%s4071_s0 + $0x34] sm:$0xf] }
  0x55   :  { %1928 = vmatpush.bf16.msra.mxu3 %v3168_v43  ;;  %v2204_v43 = vld [vmem:[%s4071_s0 + $0x94] sm:$0xf0] }
  0x56   :  { %1887 = vmatpush.bf16.msra.mxu0 %v3143_v44  ;;  %v3059_v44 = vld [vmem:[%s4071_s0 + $0x3c] sm:$0xf] }
  0x57   :  { %1915 = vmatpush.bf16.msra.mxu2 %v3159_v45  ;;  %v2212_v45 = vld [vmem:[%s4071_s0 + $0x9c] sm:$0xf0] }
  0x58   :  { %1901 = vmatpush.bf16.msra.mxu1 %v3151_v46  ;;  %v2203_v46 = vor.u32 %v3070_v37, %v2202_v36  ;;  %v3242_v36 = vld [vmem:[%s4070_s1 + $0x528] sm:$0xff] }
  0x59   :  { %1929 = vmatpush.bf16.msra.mxu3 %v3167_v47  ;;  %v2211_v47 = vor.u32 %v3071_v39, %v2210_v38  ;;  %v3258_v37 = vld [vmem:[%s4070_s1 + $0x5a8] sm:$0xff] }
  0x5a   :  { %1888 = vmatpush.bf16.msra.mxu0 %v3142_v48  ;;  %v3220_v48 = vld [vmem:[%s4070_s1 + $0x478] sm:$0xff]  ;;  %v3250_v38 = vld [vmem:[%s4070_s1 + $0x568] sm:$0xff] }
  0x5b   :  { %1916 = vmatpush.bf16.msra.mxu2 %v3158_v49  ;;  %v3236_v49 = vld [vmem:[%s4070_s1 + $0x4f8] sm:$0xff]  ;;  %v3266_v39 = vld [vmem:[%s4070_s1 + $0x5e8] sm:$0xff] }
  0x5c   :  { %1902 = vmatpush.bf16.msra.mxu1 %v3150_v50  ;;  %v2207_v50 = vor.u32 %v3058_v42, %v2204_v43  ;;  %v3249_v42 = vld [vmem:[%s4070_s1 + $0x560] sm:$0xff] }
  0x5d   :  { %1930 = vmatpush.bf16.msra.mxu3 %v3166_v51  ;;  %v2215_v51 = vor.u32 %v3059_v44, %v2212_v45  ;;  %v3265_v43 = vld [vmem:[%s4070_s1 + $0x5e0] sm:$0xff]  ;;  %v3240_v44 = vld [vmem:[%s4070_s1 + $0x518] sm:$0xff] }
  0x5e   :  { %1889 = vmatpush.bf16.msra.mxu0 %v3141_v52  ;;  %v3211_v52 = vld [vmem:[%s4070_s1 + $0x430] sm:$0xff]  ;;  %v3256_v45 = vld [vmem:[%s4070_s1 + $0x598] sm:$0xff] }
  0x5f   :  { %1917 = vmatpush.bf16.msra.mxu2 %v3157_v53  ;;  %v3227_v53 = vld [vmem:[%s4070_s1 + $0x4b0] sm:$0xff] }
  0x60   :  { %1903 = vmatpush.bf16.msra.mxu1 %v3149_v60  ;;  %v3209_v60 = vld [vmem:[%s4070_s1 + $0x420] sm:$0xff] }
  0x61   :  { %1931 = vmatpush.bf16.msra.mxu3 %v3165_v61  ;;  %1890 = vmatmul.bf16.vlgmr.msra.gmra.mxu0 %v2187_v2  ;;  %v3225_v61 = vld [vmem:[%s4070_s1 + $0x4a0] sm:$0xff]  ;;  %v3216_v2 = vld [vmem:[%s4070_s1 + $0x458] sm:$0xff] }
  0x62   :  { %1938 = vmatpush.bf16.msrb.mxu0 %v3180_v54  ;;  %1918 = vmatmul.bf16.vlgmr.msra.gmra.mxu2 %v2195_v3  ;;  %v3219_v54 = vld [vmem:[%s4070_s1 + $0x470] sm:$0xff]  ;;  %v3232_v3 = vld [vmem:[%s4070_s1 + $0x4d8] sm:$0xff] }
  0x63   :  { %1966 = vmatpush.bf16.msrb.mxu2 %v3196_v55  ;;  %1904 = vmatmul.bf16.vlgmr.msra.gmra.mxu1 %v2191_v6  ;;  %v3235_v55 = vld [vmem:[%s4070_s1 + $0x4f0] sm:$0xff] }
  0x64   :  { %1952 = vmatpush.bf16.msrb.mxu1 %v3188_v4  ;;  %1932 = vmatmul.bf16.vlgmr.msra.gmra.mxu3 %v2199_v7  ;;  %v3207_v4 = vld [vmem:[%s4070_s1 + $0x410] sm:$0xff] }
  0x65   :  { %1980 = vmatpush.bf16.msrb.mxu3 %v3204_v5  ;;  %v3223_v5 = vld [vmem:[%s4070_s1 + $0x490] sm:$0xff] }
  0x66   :  { %1939 = vmatpush.bf16.msrb.mxu0 %v3179_v8  ;;  %v3215_v6 = vld [vmem:[%s4070_s1 + $0x450] sm:$0xff]  ;;  %v3206_v8 = vld [vmem:[%s4070_s1 + $0x408] sm:$0xff] }
  0x67   :  { %1967 = vmatpush.bf16.msrb.mxu2 %v3195_v9  ;;  %v3231_v7 = vld [vmem:[%s4070_s1 + $0x4d0] sm:$0xff]  ;;  %v3222_v9 = vld [vmem:[%s4070_s1 + $0x488] sm:$0xff] }
  0x68   :  { %1953 = vmatpush.bf16.msrb.mxu1 %v3187_v10  ;;  %v3214_v10 = vld [vmem:[%s4070_s1 + $0x448] sm:$0xff] }
  0x69   :  { %1981 = vmatpush.bf16.msrb.mxu3 %v3203_v11  ;;  %v3230_v11 = vld [vmem:[%s4070_s1 + $0x4c8] sm:$0xff] }
  0x6a   :  { %1940 = vmatpush.bf16.msrb.mxu0 %v3178_v12  ;;  %v3205_v12 = vld [vmem:[%s4070_s1 + $0x400] sm:$0xff] }
  0x6b   :  { %1968 = vmatpush.bf16.msrb.mxu2 %v3194_v13  ;;  %v3221_v13 = vld [vmem:[%s4070_s1 + $0x480] sm:$0xff] }
  0x6c   :  { %1954 = vmatpush.bf16.msrb.mxu1 %v3186_v14  ;;  %v3244_v14 = vld [vmem:[%s4070_s1 + $0x538] sm:$0xff] }
  0x6d   :  { %1982 = vmatpush.bf16.msrb.mxu3 %v3202_v15  ;;  %v3260_v15 = vld [vmem:[%s4070_s1 + $0x5b8] sm:$0xff] }
  0x6e   :  { %1941 = vmatpush.bf16.msrb.mxu0 %v3177_v16  ;;  %v2218_v16 = vld [vmem:[%s4071_s0 + $0x40] sm:$0xf] }
  0x6f   :  { %1969 = vmatpush.bf16.msrb.mxu2 %v3193_v17  ;;  %v3072_v17 = vld [vmem:[%s4071_s0 + $0xa0] sm:$0xf0] }
  0x70   :  { %1955 = vmatpush.bf16.msrb.mxu1 %v3185_v18  ;;  %v2226_v18 = vld [vmem:[%s4071_s0 + $0x48] sm:$0xf] }
  0x71   :  { %1983 = vmatpush.bf16.msrb.mxu3 %v3201_v19  ;;  %v3073_v19 = vld [vmem:[%s4071_s0 + $0xa8] sm:$0xf0] }
  0x72   :  { %1942 = vmatpush.bf16.msrb.mxu0 %v3176_v20  ;;  %v3213_v20 = vld [vmem:[%s4070_s1 + $0x440] sm:$0xff] }
  0x73   :  { %1970 = vmatpush.bf16.msrb.mxu2 %v3192_v21  ;;  %v3229_v21 = vld [vmem:[%s4070_s1 + $0x4c0] sm:$0xff] }
  0x74   :  { %1956 = vmatpush.bf16.msrb.mxu1 %v3184_v22  ;;  %v3060_v22 = vld [vmem:[%s4071_s0 + $0x44] sm:$0xf] }
  0x75   :  { %1984 = vmatpush.bf16.msrb.mxu3 %v3200_v23  ;;  %v2220_v23 = vld [vmem:[%s4071_s0 + $0xa4] sm:$0xf0] }
  0x76   :  { %1943 = vmatpush.bf16.msrb.mxu0 %v3175_v24  ;;  %v3061_v24 = vld [vmem:[%s4071_s0 + $0x4c] sm:$0xf] }
  0x77   :  { %1971 = vmatpush.bf16.msrb.mxu2 %v3191_v25  ;;  %v2228_v25 = vld [vmem:[%s4071_s0 + $0xac] sm:$0xf0] }
  0x78   :  { %1957 = vmatpush.bf16.msrb.mxu1 %v3183_v26  ;;  %v2219_v26 = vor.u32 %v3072_v17, %v2218_v16  ;;  %v2250_v16 = vld [vmem:[%s4071_s0 + $0x60] sm:$0xf]  ;;  %v3076_v17 = vld [vmem:[%s4071_s0 + $0xc0] sm:$0xf0] }
  0x79   :  { %1985 = vmatpush.bf16.msrb.mxu3 %v3199_v27  ;;  %v2227_v27 = vor.u32 %v3073_v19, %v2226_v18  ;;  %v2251_v18 = vor.u32 %v3076_v17, %v2250_v16 }
  0x7a   :  { %1944 = vmatpush.bf16.msrb.mxu0 %v3174_v28  ;;  %v3252_v28 = vld [vmem:[%s4070_s1 + $0x578] sm:$0xff] }
  0x7b   :  { %1972 = vmatpush.bf16.msrb.mxu2 %v3190_v29  ;;  %v3268_v29 = vld [vmem:[%s4070_s1 + $0x5f8] sm:$0xff] }
  0x7c   :  { %1958 = vmatpush.bf16.msrb.mxu1 %v3182_v30  ;;  %v2223_v30 = vor.u32 %v3060_v22, %v2220_v23 }
  0x7d   :  { %1986 = vmatpush.bf16.msrb.mxu3 %v3198_v31  ;;  %v2231_v31 = vor.u32 %v3061_v24, %v2228_v25 }
  0x7e   :  { %1945 = vmatpush.bf16.msrb.mxu0 %v3173_v32  ;;  %v3243_v32 = vld [vmem:[%s4070_s1 + $0x530] sm:$0xff] }
  0x7f   :  { %1973 = vmatpush.bf16.msrb.mxu2 %v3189_v33  ;;  %v3259_v33 = vld [vmem:[%s4070_s1 + $0x5b0] sm:$0xff] }
  0x80   :  { %1959 = vmatpush.bf16.msrb.mxu1 %v3181_v40  ;;  %v3241_v40 = vld [vmem:[%s4070_s1 + $0x520] sm:$0xff] }
  0x81   :  { %1987 = vmatpush.bf16.msrb.mxu3 %v3197_v41  ;;  %1946 = vmatmul.bf16.vlgmr.msrb.gmra.mxu0 %v2203_v46  ;;  %v3257_v41 = vld [vmem:[%s4070_s1 + $0x5a0] sm:$0xff]  ;;  %v3248_v46 = vld [vmem:[%s4070_s1 + $0x558] sm:$0xff] }
  0x82   :  { %1994 = vmatpush.bf16.msra.mxu0 %v3212_v34  ;;  %1974 = vmatmul.bf16.vlgmr.msrb.gmra.mxu2 %v2211_v47  ;;  %v3251_v34 = vld [vmem:[%s4070_s1 + $0x570] sm:$0xff]  ;;  %v3264_v47 = vld [vmem:[%s4070_s1 + $0x5d8] sm:$0xff] }
  0x83   :  { %2022 = vmatpush.bf16.msra.mxu2 %v3228_v35  ;;  %1960 = vmatmul.bf16.vlgmr.msrb.gmra.mxu1 %v2207_v50  ;;  %v3267_v35 = vld [vmem:[%s4070_s1 + $0x5f0] sm:$0xff] }
  0x84   :  { %2008 = vmatpush.bf16.msra.mxu1 %v3220_v48  ;;  %1988 = vmatmul.bf16.vlgmr.msrb.gmra.mxu3 %v2215_v51  ;;  %v3239_v48 = vld [vmem:[%s4070_s1 + $0x510] sm:$0xff] }
  0x85   :  { %2036 = vmatpush.bf16.msra.mxu3 %v3236_v49  ;;  %v3255_v49 = vld [vmem:[%s4070_s1 + $0x590] sm:$0xff] }
  0x86   :  { %1995 = vmatpush.bf16.msra.mxu0 %v3211_v52  ;;  %v3247_v50 = vld [vmem:[%s4070_s1 + $0x550] sm:$0xff]  ;;  %v3238_v52 = vld [vmem:[%s4070_s1 + $0x508] sm:$0xff] }
  0x87   :  { %2023 = vmatpush.bf16.msra.mxu2 %v3227_v53  ;;  %v3263_v51 = vld [vmem:[%s4070_s1 + $0x5d0] sm:$0xff]  ;;  %v3254_v53 = vld [vmem:[%s4070_s1 + $0x588] sm:$0xff] }
  0x88   :  { %2009 = vmatpush.bf16.msra.mxu1 %v3219_v54  ;;  %v3246_v54 = vld [vmem:[%s4070_s1 + $0x548] sm:$0xff] }
  0x89   :  { %2037 = vmatpush.bf16.msra.mxu3 %v3235_v55  ;;  %v3262_v55 = vld [vmem:[%s4070_s1 + $0x5c8] sm:$0xff] }
  0x8a   :  { %1996 = vmatpush.bf16.msra.mxu0 %v3210_v56  ;;  %v3237_v56 = vld [vmem:[%s4070_s1 + $0x500] sm:$0xff] }
  0x8b   :  { %2024 = vmatpush.bf16.msra.mxu2 %v3226_v57  ;;  %v3253_v57 = vld [vmem:[%s4070_s1 + $0x580] sm:$0xff] }
  0x8c   :  { %2010 = vmatpush.bf16.msra.mxu1 %v3218_v58  ;;  %v3276_v58 = vld [vmem:[%s4070_s1 + $0x638] sm:$0xff] }
  0x8d   :  { %2038 = vmatpush.bf16.msra.mxu3 %v3234_v59  ;;  %v2234_v59 = vld [vmem:[%s4071_s0 + $0x50] sm:$0xf] }
  0x8e   :  { %1997 = vmatpush.bf16.msra.mxu0 %v3209_v60  ;;  %v3074_v60 = vld [vmem:[%s4071_s0 + $0xb0] sm:$0xf0] }
  0x8f   :  { %2025 = vmatpush.bf16.msra.mxu2 %v3225_v61  ;;  %v2242_v61 = vld [vmem:[%s4071_s0 + $0x58] sm:$0xf] }
  0x90   :  { %2011 = vmatpush.bf16.msra.mxu1 %v3217_v62  ;;  %v3075_v62 = vld [vmem:[%s4071_s0 + $0xb8] sm:$0xf0] }
  0x91   :  { %2039 = vmatpush.bf16.msra.mxu3 %v3233_v63  ;;  %v3245_v63 = vld [vmem:[%s4070_s1 + $0x540] sm:$0xff] }
  0x92   :  { %1998 = vmatpush.bf16.msra.mxu0 %v3208_v0  ;;  %v3261_v0 = vld [vmem:[%s4070_s1 + $0x5c0] sm:$0xff] }
  0x93   :  { %2026 = vmatpush.bf16.msra.mxu2 %v3224_v1  ;;  %v3062_v1 = vld [vmem:[%s4071_s0 + $0x54] sm:$0xf] }
  0x94   :  { %2012 = vmatpush.bf16.msra.mxu1 %v3216_v2  ;;  %v2236_v2 = vld [vmem:[%s4071_s0 + $0xb4] sm:$0xf0] }
  0x95   :  { %2040 = vmatpush.bf16.msra.mxu3 %v3232_v3  ;;  %v3063_v3 = vld [vmem:[%s4071_s0 + $0x5c] sm:$0xf] }
  0x96   :  { %1999 = vmatpush.bf16.msra.mxu0 %v3207_v4  ;;  %v2244_v4 = vld [vmem:[%s4071_s0 + $0xbc] sm:$0xf0] }
  0x97   :  { %2027 = vmatpush.bf16.msra.mxu2 %v3223_v5  ;;  %v2235_v5 = vor.u32 %v3074_v60, %v2234_v59 }
  0x98   :  { %2013 = vmatpush.bf16.msra.mxu1 %v3215_v6  ;;  %v2243_v6 = vor.u32 %v3075_v62, %v2242_v61 }
  0x99   :  { %2041 = vmatpush.bf16.msra.mxu3 %v3231_v7  ;;  %v2239_v7 = vor.u32 %v3062_v1, %v2236_v2 }
  0x9a   :  { %2000 = vmatpush.bf16.msra.mxu0 %v3206_v8  ;;  %v2247_v8 = vor.u32 %v3063_v3, %v2244_v4 }
  0x9b   :  { %2028 = vmatpush.bf16.msra.mxu2 %v3222_v9  ;;  %v3275_v9 = vld [vmem:[%s4070_s1 + $0x630] sm:$0xff] }
  0x9c   :  { %2014 = vmatpush.bf16.msra.mxu1 %v3214_v10  ;;  %v3274_v10 = vld [vmem:[%s4070_s1 + $0x628] sm:$0xff] }
  0x9d   :  { %2042 = vmatpush.bf16.msra.mxu3 %v3230_v11  ;;  %v3273_v11 = vld [vmem:[%s4070_s1 + $0x620] sm:$0xff] }
  0x9e   :  { %2001 = vmatpush.bf16.msra.mxu0 %v3205_v12  ;;  %v3272_v12 = vld [vmem:[%s4070_s1 + $0x618] sm:$0xff]  ;;  %v1779_v19 = vpop.f32.mrf.mxu0 }
  0x9f   :  { %2029 = vmatpush.bf16.msra.mxu2 %v3221_v13  ;;  %v3271_v13 = vld [vmem:[%s4070_s1 + $0x610] sm:$0xff] }
  0xa0   :  { %2015 = vmatpush.bf16.msra.mxu1 %v3213_v20  ;;  %v1793_v20 = vpop.f32.mrf.mxu1 }
  0xa1   :  { %2043 = vmatpush.bf16.msra.mxu3 %v3229_v21  ;;  %2002 = vmatmul.bf16.vlgmr.msra.gmra.mxu0 %v2219_v26 }
  0xa2   :  { %2050 = vmatpush.bf16.msrb.mxu0 %v3244_v14  ;;  %2030 = vmatmul.bf16.vlgmr.msra.gmra.mxu2 %v2227_v27  ;;  %v3270_v14 = vld [vmem:[%s4070_s1 + $0x608] sm:$0xff] }
  0xa3   :  { %2078 = vmatpush.bf16.msrb.mxu2 %v3260_v15  ;;  %2016 = vmatmul.bf16.vlgmr.msra.gmra.mxu1 %v2223_v30  ;;  %v3269_v15 = vld [vmem:[%s4070_s1 + $0x600] sm:$0xff] }
  0xa4   :  { %2064 = vmatpush.bf16.msrb.mxu1 %v3252_v28  ;;  %2044 = vmatmul.bf16.vlgmr.msra.gmra.mxu3 %v2231_v31 }
  0xa5   :  { %2092 = vmatpush.bf16.msrb.mxu3 %v3268_v29  ;;  %v1807_v21 = vpop.f32.mrf.mxu2 }
  0xa6   :  { %2051 = vmatpush.bf16.msrb.mxu0 %v3243_v32  ;;  %v1781_v22 = vpop.f32.mrf.mxu0 }
  0xa7   :  { %2079 = vmatpush.bf16.msrb.mxu2 %v3259_v33  ;;  %v1821_v23 = vpop.f32.mrf.mxu3  ;;  %v1794_v33 = vadd.f32 %v1793_v20, %v1779_v19 }
  0xa8   :  { %2065 = vmatpush.bf16.msrb.mxu1 %v3251_v34  ;;  %v1795_v24 = vpop.f32.mrf.mxu1 }
  0xa9   :  { %2093 = vmatpush.bf16.msrb.mxu3 %v3267_v35 }
  0xaa   :  { %2052 = vmatpush.bf16.msrb.mxu0 %v3242_v36  ;;  %v1808_v36 = vadd.f32 %v1807_v21, %v1794_v33 }
  0xab   :  { %2080 = vmatpush.bf16.msrb.mxu2 %v3258_v37 }
  0xac   :  { %2066 = vmatpush.bf16.msrb.mxu1 %v3250_v38 }
  0xad   :  { %2094 = vmatpush.bf16.msrb.mxu3 %v3266_v39  ;;  %v1809_v25 = vpop.f32.mrf.mxu2  ;;  %v1822_v39 = vadd.f32 %v1821_v23, %v1808_v36 }
  0xae   :  { %2053 = vmatpush.bf16.msrb.mxu0 %v3241_v40 }
  0xaf   :  { %2081 = vmatpush.bf16.msrb.mxu2 %v3257_v41  ;;  %v1823_v27 = vpop.f32.mrf.mxu3 }
  0xb0   :  { %2067 = vmatpush.bf16.msrb.mxu1 %v3249_v42  ;;  %v1796_v42 = vadd.f32 %v1795_v24, %v1781_v22 }
  0xb1   :  { %2095 = vmatpush.bf16.msrb.mxu3 %v3265_v43 }
  0xb2   :  { %2054 = vmatpush.bf16.msrb.mxu0 %v3240_v44 }
  0xb3   :  { %2082 = vmatpush.bf16.msrb.mxu2 %v3256_v45  ;;  %v1810_v45 = vadd.f32 %v1809_v25, %v1796_v42 }
  0xb4   :  { %2068 = vmatpush.bf16.msrb.mxu1 %v3248_v46 }
  0xb5   :  { %2096 = vmatpush.bf16.msrb.mxu3 %v3264_v47 }
  0xb6   :  { %2055 = vmatpush.bf16.msrb.mxu0 %v3239_v48 }
  0xb7   :  { %2083 = vmatpush.bf16.msrb.mxu2 %v3255_v49 }
  0xb8   :  { %2069 = vmatpush.bf16.msrb.mxu1 %v3247_v50  ;;  %v1824_v50 = vadd.f32 %v1823_v27, %v1810_v45 }
  0xb9   :  { %2097 = vmatpush.bf16.msrb.mxu3 %v3263_v51 }
  0xba   :  { %2056 = vmatpush.bf16.msrb.mxu0 %v3238_v52 }
  0xbb   :  { %2084 = vmatpush.bf16.msrb.mxu2 %v3254_v53 }
  0xbc   :  { %2070 = vmatpush.bf16.msrb.mxu1 %v3246_v54 }
  0xbd   :  { %2098 = vmatpush.bf16.msrb.mxu3 %v3262_v55 }
  0xbe   :  { %2057 = vmatpush.bf16.msrb.mxu0 %v3237_v56  ;;  %v1835_v26 = vpop.f32.mrf.mxu0 }
  0xbf   :  { %2085 = vmatpush.bf16.msrb.mxu2 %v3253_v57  ;;  %v1836_v43 = vadd.f32 %v1835_v26, %v1822_v39 }
  0xc0   :  { %2071 = vmatpush.bf16.msrb.mxu1 %v3245_v63  ;;  %v1849_v28 = vpop.f32.mrf.mxu1 }
  0xc1   :  { %2099 = vmatpush.bf16.msrb.mxu3 %v3261_v0  ;;  %2058 = vmatmul.bf16.vlgmr.msrb.gmra.mxu0 %v2235_v5  ;;  %v1850_v46 = vadd.f32 %v1849_v28, %v1836_v43 }
  0xc2   :  { %2106 = vmatpush.bf16.msra.mxu0 %v3276_v58  ;;  %2086 = vmatmul.bf16.vlgmr.msrb.gmra.mxu2 %v2243_v6 }
  0xc3   :  { %2072 = vmatmul.bf16.vlgmr.msrb.gmra.mxu1 %v2239_v7 }
  0xc4   :  { %2100 = vmatmul.bf16.vlgmr.msrb.gmra.mxu3 %v2247_v8 }
  0xc5   :  { %v1863_v29 = vpop.f32.mrf.mxu2 }
  0xc6   :  { %2107 = vmatpush.bf16.msra.mxu0 %v3275_v9  ;;  %v1837_v30 = vpop.f32.mrf.mxu0  ;;  %v1864_v51 = vadd.f32 %v1863_v29, %v1850_v46 }
  0xc7   :  { %v1877_v31 = vpop.f32.mrf.mxu3  ;;  %v1838_v52 = vadd.f32 %v1837_v30, %v1824_v50 }
  0xc8   :  { %v1851_v32 = vpop.f32.mrf.mxu1  ;;  %v1878_v54 = vadd.f32 %v1877_v31, %v1864_v51 }
  0xc9   :  { %v1852_v56 = vadd.f32 %v1851_v32, %v1838_v52 }
  0xca   :  { %2108 = vmatpush.bf16.msra.mxu0 %v3274_v10 }
  0xcd   :  { %v1865_v34 = vpop.f32.mrf.mxu2 }
  0xce   :  { %2109 = vmatpush.bf16.msra.mxu0 %v3273_v11  ;;  %v1866_v59 = vadd.f32 %v1865_v34, %v1852_v56 }
  0xcf   :  { %v1879_v37 = vpop.f32.mrf.mxu3 }
  0xd0   :  { %v1880_v63 = vadd.f32 %v1879_v37, %v1866_v59 }
  0xd2   :  { %2110 = vmatpush.bf16.msra.mxu0 %v3272_v12 }
  0xd6   :  { %2111 = vmatpush.bf16.msra.mxu0 %v3271_v13 }
  0xda   :  { %2112 = vmatpush.bf16.msra.mxu0 %v3270_v14 }
  0xde   :  { %2113 = vmatpush.bf16.msra.mxu0 %v3269_v15  ;;  %v1891_v35 = vpop.f32.mrf.mxu0  ;;  %v3278_v15 = vmov 0.0  }
  0xdf   :  { %v1892_v57 = vadd.f32 %v1891_v35, %v1878_v54  ;;  %17 = vst [vmem:[%s4072_s3] sm:$0x3] %v3278_v15 }
  0xe0   :  { %v1905_v38 = vpop.f32.mrf.mxu1 }
  0xe1   :  { %2114 = vmatmul.bf16.vlgmr.msra.gmra.mxu0 %v2251_v18  ;;  %v1906_v61 = vadd.f32 %v1905_v38, %v1892_v57 }
  0xe5   :  { %v1919_v40 = vpop.f32.mrf.mxu2 }
  0xe6   :  { %v1893_v41 = vpop.f32.mrf.mxu0  ;;  %v1920_v0 = vadd.f32 %v1919_v40, %v1906_v61 }
  0xe7   :  { %v1933_v44 = vpop.f32.mrf.mxu3  ;;  %v1894_v1 = vadd.f32 %v1893_v41, %v1880_v63 }
  0xe8   :  { %v1907_v47 = vpop.f32.mrf.mxu1  ;;  %v1934_v3 = vadd.f32 %v1933_v44, %v1920_v0 }
  0xe9   :  { %v1908_v6 = vadd.f32 %v1907_v47, %v1894_v1 }
  0xed   :  { %v1921_v48 = vpop.f32.mrf.mxu2 }
  0xee   :  { %v1922_v8 = vadd.f32 %v1921_v48, %v1908_v6  ;;  %v2132_v6 = vld [vmem:[%s4072_s3 + $0x1] sm:$0x1] }
  0xef   :  { %v1935_v53 = vpop.f32.mrf.mxu3 }
  0xf0   :  { %v1936_v12 = vadd.f32 %v1935_v53, %v1922_v8 }
  0xfe   :  { %v1947_v49 = vpop.f32.mrf.mxu0 }
  0xff   :  { %v1948_v7 = vadd.f32 %v1947_v49, %v1934_v3  ;;  %v2122_v3 = vld [vmem:[%s4072_s3] sm:$0x1] }
 0x100   :  { %v1961_v55 = vpop.f32.mrf.mxu1 }
 0x101   :  { %v1962_v10 = vadd.f32 %v1961_v55, %v1948_v7 }
 0x105   :  { %v1975_v58 = vpop.f32.mrf.mxu2 }
 0x106   :  { %v1949_v60 = vpop.f32.mrf.mxu0  ;;  %v1976_v13 = vadd.f32 %v1975_v58, %v1962_v10 }
 0x107   :  { %v1989_v62 = vpop.f32.mrf.mxu3  ;;  %v1950_v16 = vadd.f32 %v1949_v60, %v1936_v12 }
 0x108   :  { %v1963_v2 = vpop.f32.mrf.mxu1  ;;  %v1990_v18 = vadd.f32 %v1989_v62, %v1976_v13 }
 0x109   :  { %v1964_v20 = vadd.f32 %v1963_v2, %v1950_v16 }
 0x10d   :  { %v1977_v4 = vpop.f32.mrf.mxu2 }
 0x10e   :  { %v1978_v22 = vadd.f32 %v1977_v4, %v1964_v20 }
 0x10f   :  { %v1991_v9 = vpop.f32.mrf.mxu3 }
 0x110   :  { %v1992_v27 = vadd.f32 %v1991_v9, %v1978_v22 }
 0x11e   :  { %v2003_v5 = vpop.f32.mrf.mxu0 }
 0x11f   :  { %v2004_v21 = vadd.f32 %v2003_v5, %v1990_v18 }
 0x120   :  { %v2017_v11 = vpop.f32.mrf.mxu1 }
 0x121   :  { %v2018_v24 = vadd.f32 %v2017_v11, %v2004_v21 }
 0x125   :  { %v2031_v14 = vpop.f32.mrf.mxu2 }
 0x126   :  { %v2005_v17 = vpop.f32.mrf.mxu0  ;;  %v2032_v28 = vadd.f32 %v2031_v14, %v2018_v24 }
 0x127   :  { %v2045_v19 = vpop.f32.mrf.mxu3  ;;  %v2006_v29 = vadd.f32 %v2005_v17, %v1992_v27 }
 0x128   :  { %v2019_v23 = vpop.f32.mrf.mxu1  ;;  %v2046_v31 = vadd.f32 %v2045_v19, %v2032_v28 }
 0x129   :  { %v2020_v33 = vadd.f32 %v2019_v23, %v2006_v29 }
 0x12d   :  { %v2033_v25 = vpop.f32.mrf.mxu2 }
 0x12e   :  { %v2034_v36 = vadd.f32 %v2033_v25, %v2020_v33 }
 0x12f   :  { %v2047_v30 = vpop.f32.mrf.mxu3 }
 0x130   :  { %v2048_v40 = vadd.f32 %v2047_v30, %v2034_v36 }
 0x13e   :  { %v2059_v26 = vpop.f32.mrf.mxu0 }
 0x13f   :  { %v2060_v34 = vadd.f32 %v2059_v26, %v2046_v31 }
 0x140   :  { %v2073_v32 = vpop.f32.mrf.mxu1 }
 0x141   :  { %v2074_v38 = vadd.f32 %v2073_v32, %v2060_v34 }
 0x145   :  { %v2087_v35 = vpop.f32.mrf.mxu2 }
 0x146   :  { %v2061_v37 = vpop.f32.mrf.mxu0  ;;  %v2088_v41 = vadd.f32 %v2087_v35, %v2074_v38 }
 0x147   :  { %v2101_v39 = vpop.f32.mrf.mxu3  ;;  %v2062_v42 = vadd.f32 %v2061_v37, %v2048_v40 }
 0x148   :  { %v2075_v43 = vpop.f32.mrf.mxu1  ;;  %v2102_v44 = vadd.f32 %v2101_v39, %v2088_v41 }
 0x149   :  { %v2076_v47 = vadd.f32 %v2075_v43, %v2062_v42 }
 0x14d   :  { %v2089_v45 = vpop.f32.mrf.mxu2 }
 0x14e   :  { %v2090_v49 = vadd.f32 %v2089_v45, %v2076_v47 }
 0x14f   :  { %v2103_v50 = vpop.f32.mrf.mxu3 }
 0x150   :  { %v2104_v51 = vadd.f32 %v2103_v50, %v2090_v49 }
 0x15e   :  { %v2115_v46 = vpop.f32.mrf.mxu0 }
 0x15f   :  { %v2116_v48 = vadd.f32 %v2115_v46, %v2102_v44 }
 0x161   :  { %2120 = vst [vmem:[%s4073_s2] sm:$0xff] %v2116_v48  ;;  %v2133_v54 = vmul.f32 %v2116_v48, %v2116_v48 }
 0x166   :  { %v2117_v52 = vpop.f32.mrf.mxu0 }
 0x167   :  { %v2118_v53 = vadd.f32 %v2117_v52, %v2104_v51 }
 0x169   :  { %2121 = vst [vmem:[%s4073_s2 + $0x8] sm:$0xff] %v2118_v53  ;;  %v2123_v55 = vadd.f32 %v2118_v53, %v2116_v48  ;;  %v2134_v56 = vmul.f32 %v2118_v53, %v2118_v53 }
 0x16b   :  { %v2124_v57 = vrot.slane %v2123_v55, 4  ;;  %v2135_v58 = vadd.f32 %v2134_v56, %v2133_v54 }
 0x16d   :  { %v2125_v59 = vadd.f32 %v2124_v57, %v2123_v55  ;;  %v2136_v60 = vrot.slane %v2135_v58, 4 }
 0x16f   :  { %v2126_v61 = vrot.slane %v2125_v59, 2  ;;  %v2137_v62 = vadd.f32 %v2136_v60, %v2135_v58 }
 0x171   :  { %v2127_v63 = vadd.f32 %v2126_v61, %v2125_v59  ;;  %v2138_v0 = vrot.slane %v2137_v62, 2 }
 0x173   :  { %v2128_v1 = vrot.slane %v2127_v63, 1  ;;  %v2139_v2 = vadd.f32 %v2138_v0, %v2137_v62 }
 0x175   :  { %v2129_v4 = vadd.f32 %v2128_v1, %v2127_v63  ;;  %v2140_v5 = vrot.slane %v2139_v2, 1 }
 0x177   :  { %v2130_v7 = vadd.f32 %v2129_v4, %v2122_v3  ;;  %v2141_v8 = vadd.f32 %v2140_v5, %v2139_v2 }
 0x179   :  { %2131 = vst [vmem:[%s4072_s3] sm:$0x1] %v2130_v7  ;;  %v2142_v9 = vadd.f32 %v2141_v8, %v2132_v6 }
 0x17b   :  { %2143 = vst [vmem:[%s4072_s3 + $0x1] sm:$0x1] %v2142_v9 }

</bundles_post_ra>
